<compile_context>
chip_gen: v7x
topology: tpu7x:2x2x1
jax: 0.10.0
libtpu: 0.0.40
codegen_flags: <defaults>
</compile_context>

<pallas_src>
import jax
import jax.numpy as jnp
from jax.experimental import pallas as pl
from jax.experimental.pallas import tpu as pltpu

IN_DIM = 1264 + 241      # 1505
IN_PAD = 1536            # 12 * 128, lane-aligned K
HIDDEN = 512
OUT_DIM = 1


def _round_up(n, m):
    return (n + m - 1) // m * m


def _cdiv(a, b):
    return -(-a // b)


def _mlp_kernel(x_ref,
                w1_ref, b1_ref, w2_ref, b2_ref, w3_ref, b3_ref,
                w4_ref, b4_ref, w5_ref, b5_ref, w6_ref, b6_ref,
                out_ref):
    """Fused 6-layer MLP forward on one (TB, IN_PAD) bf16 batch tile.

    bf16 x bf16 MXU matmuls with f32 accumulation; bias/ReLU in f32 on the VPU.
    Last layer = VPU broadcast-mul + lane reduction (avoids an MXU push/drain
    for a single live output column).
    """
    # dense1: x tile is already bf16 (no upcast/downcast round-trip).
    h = jnp.dot(x_ref[...], w1_ref[...],
                preferred_element_type=jnp.float32) + b1_ref[...]
    h = jnp.maximum(h, 0.0)
    for w_ref, b_ref in ((w2_ref, b2_ref), (w3_ref, b3_ref),
                         (w4_ref, b4_ref), (w5_ref, b5_ref)):
        h = jnp.dot(h.astype(jnp.bfloat16), w_ref[...],
                    preferred_element_type=jnp.float32) + b_ref[...]
        h = jnp.maximum(h, 0.0)
    # dense6: (TB,512) x (512,1) done as broadcast-mul + lane reduction.
    # Output block stays (TB, 1); it is tiny, so lane-dense re-layout of the
    # store (perf-review "low priority" item) is intentionally skipped.
    out = jnp.sum(h * w6_ref[...], axis=-1, keepdims=True) + b6_ref[...]
    out_ref[...] = out.astype(out_ref.dtype)


def _const_spec(shape):
    """Whole-array block whose block index is constant across the batch axis:
    the tile is DMA'd once per pallas_call and stays VMEM-resident across
    batch tiles.  (Total bf16 weight footprint is only ~3.7 MiB, so the default
    double-buffer allocation still leaves large headroom under the 24 MiB
    scoped limit; single-buffering via pipeline_mode is not needed here.)"""
    return pl.BlockSpec(shape, lambda i, _n=len(shape): (0,) * _n)


def _choose_batch_tile(B):
    """Rows per grid step: multiple of 16 (bf16 sublane packing), up to 512 to
    amortize the per-step overhead and fill the MXU M dimension.  When the
    batch spans several tiles, prefer an even tile count so the 'parallel'
    batch axis splits evenly across v7x's two TensorCores."""
    TB = min(512, _round_up(max(B, 1), 16))
    n_tiles = _cdiv(B, TB)
    if n_tiles > 1 and n_tiles % 2 == 1:
        TB = min(512, _round_up(_cdiv(B, n_tiles + 1), 16))
    return TB


@jax.jit
def axie_forward_values(x, params):
    """Value head output (B, 1), like forward(..., return_value=True)."""
    B = x.shape[0]
    w1, b1, w2, b2, w3, b3, w4, b4, w5, b5, w6t, b6 = params

    TB = _choose_batch_tile(B)
    B_pad = _round_up(B, TB)

    # Cast to bf16 FIRST, then zero-pad batch rows and the K dim (exact: the
    # padded columns hit zero rows of w1).  Padding in bf16 halves both the
    # wrapper-side pad traffic and the per-tile x DMA inside the kernel.
    x_p = jnp.pad(x.astype(jnp.bfloat16),
                  ((0, B_pad - B), (0, IN_PAD - IN_DIM)))

    weights = (w1, b1, w2, b2, w3, b3, w4, b4, w5, b5, w6t, b6)
    in_specs = [pl.BlockSpec((TB, IN_PAD), lambda i: (i, 0))]
    in_specs += [_const_spec(p.shape) for p in weights]

    out = pl.pallas_call(
        _mlp_kernel,
        out_shape=jax.ShapeDtypeStruct((B_pad, OUT_DIM), jnp.float32),
        grid=(B_pad // TB,),
        in_specs=in_specs,
        out_specs=pl.BlockSpec((TB, OUT_DIM), lambda i: (i, 0)),
        compiler_params=pltpu.CompilerParams(
            dimension_semantics=("parallel",),   # v7x: shard batch tiles over 2 TCs
            vmem_limit_bytes=24 << 20),          # fits v5e/v6e/v7x budgets
    )(x_p, *weights)

    # Padded batch rows produce nonzero garbage after bias+ReLU; slice them off
    # before anything (argmax!) consumes the result.
    return out[:B]


def axie_forward_action(x, params):
    """Greedy-action path.
    TODO(synk): the exp_epsilon random-exploration branch uses host-side
    numpy RNG in the original module and stays outside the kernel."""
    values = axie_forward_values(x, params)           # (B, 1)
    action = jnp.argmax(values[:, 0], axis=0)         # == torch.argmax(x, dim=0)[0]
    return {"action": action, "values": values}


def init_params(key):
    """Deterministic init matching PyTorch nn.Linear default U(-1/sqrt(fan_in), +).
    Weights stored as (in, out) so the forward computes h @ W (== torch x @ W.T)."""
    dims = [(IN_DIM, HIDDEN), (HIDDEN, HIDDEN), (HIDDEN, HIDDEN),
            (HIDDEN, HIDDEN), (HIDDEN, HIDDEN), (HIDDEN, OUT_DIM)]
    params = []
    for fan_in, fan_out in dims:
        key, kw, kb = jax.random.split(key, 3)
        bound = 1.0 / jnp.sqrt(jnp.float32(fan_in))
        w = jax.random.uniform(kw, (fan_in, fan_out), jnp.float32, -bound, bound)
        b = jax.random.uniform(kb, (1, fan_out), jnp.float32, -bound, bound)
        params += [w, b]
    return tuple(params)


def prepare_params(raw_params):
    """Convert f32 (in, out)-layout params to the kernel layout (do once):
       - w1 zero-padded 1505 -> 1536 rows; w1..w5 cast to bf16
       - w6 transposed to a (1, 512) f32 row for the VPU epilogue
       - biases kept f32."""
    w1, b1, w2, b2, w3, b3, w4, b4, w5, b5, w6, b6 = raw_params
    w1p = jnp.zeros((IN_PAD, HIDDEN), jnp.float32).at[:IN_DIM].set(w1)
    return (w1p.astype(jnp.bfloat16), b1,
            w2.astype(jnp.bfloat16), b2,
            w3.astype(jnp.bfloat16), b3,
            w4.astype(jnp.bfloat16), b4,
            w5.astype(jnp.bfloat16), b5,
            w6.T.astype(jnp.float32), b6)


def _reference_forward_mixed(x, params):
    """Plain-JAX reference using the same mixed-precision recipe as the kernel."""
    w1, b1, w2, b2, w3, b3, w4, b4, w5, b5, w6t, b6 = params
    h = jnp.pad(x.astype(jnp.bfloat16), ((0, 0), (0, IN_PAD - IN_DIM)))
    h = jnp.maximum(jnp.dot(h, w1, preferred_element_type=jnp.float32) + b1, 0.0)
    for w, b in ((w2, b2), (w3, b3), (w4, b4), (w5, b5)):
        h = jnp.maximum(jnp.dot(h.astype(jnp.bfloat16), w,
                                preferred_element_type=jnp.float32) + b, 0.0)
    return jnp.sum(h * w6t, axis=-1, keepdims=True) + b6


def _reference_forward_f32(x, raw_params):
    """Pure-f32 reference matching the original PyTorch model's numerics."""
    w1, b1, w2, b2, w3, b3, w4, b4, w5, b5, w6, b6 = raw_params
    h = x.astype(jnp.float32)
    for w, b in ((w1, b1), (w2, b2), (w3, b3), (w4, b4), (w5, b5)):
        h = jnp.maximum(h @ w + b, 0.0)
    return h @ w6 + b6


if __name__ == "__main__":
    key = jax.random.PRNGKey(0)
    kx, kp = jax.random.split(key)

    B = 8  # number of candidate actions scored by the value head
    x = jax.random.normal(kx, (B, IN_DIM), jnp.float32)
    raw_params = init_params(kp)
    params = prepare_params(raw_params)

    out = axie_forward_action(x, params)
    values = jax.block_until_ready(out["values"])
    action = jax.block_until_ready(out["action"])

    ref_mixed = _reference_forward_mixed(x, params)
    ref_f32 = _reference_forward_f32(x, raw_params)

    assert values.shape == (B, 1)
    # exact-recipe parity (tight) ...
    assert jnp.allclose(values, ref_mixed, atol=1e-3, rtol=1e-3), "mismatch vs mixed ref"
    # ... and parity vs the original f32 model's numerics (bf16 drift bound)
    assert jnp.allclose(values, ref_f32, atol=5e-2, rtol=5e-2), "mismatch vs f32 ref"
    assert int(action) == int(jnp.argmax(ref_mixed[:, 0]))

    print("KERNEL_OK")
</pallas_src>

<mosaic_0001>
module attributes {stable_mosaic.version = 11 : i64} {
  func.func @_mlp_kernel(%arg0: i32, %arg1: memref<16x1536xbf16, #tpu.memory_space<vmem>>, %arg2: memref<1536x512xbf16, #tpu.memory_space<vmem>>, %arg3: memref<1x512xf32, #tpu.memory_space<vmem>>, %arg4: memref<512x512xbf16, #tpu.memory_space<vmem>>, %arg5: memref<1x512xf32, #tpu.memory_space<vmem>>, %arg6: memref<512x512xbf16, #tpu.memory_space<vmem>>, %arg7: memref<1x512xf32, #tpu.memory_space<vmem>>, %arg8: memref<512x512xbf16, #tpu.memory_space<vmem>>, %arg9: memref<1x512xf32, #tpu.memory_space<vmem>>, %arg10: memref<512x512xbf16, #tpu.memory_space<vmem>>, %arg11: memref<1x512xf32, #tpu.memory_space<vmem>>, %arg12: memref<1x512xf32, #tpu.memory_space<vmem>>, %arg13: memref<1x1xf32, #tpu.memory_space<vmem>>, %arg14: memref<16x1xf32, #tpu.memory_space<vmem>>) attributes {dimension_semantics = [#tpu.dimension_semantics<parallel>], iteration_bounds = array<i64: 1>, scalar_prefetch = 0 : i64, scratch_operands = 0 : i64, tpu.core_type = #tpu.core_type<tc>, window_params = [{transform_indices = @transform_0, window_bounds = array<i64: 16, 1536>}, {pipeline_mode = #tpu.pipeline_mode<synchronous>, transform_indices = @transform_1, window_bounds = array<i64: 1536, 512>}, {pipeline_mode = #tpu.pipeline_mode<synchronous>, transform_indices = @transform_2, window_bounds = array<i64: 1, 512>}, {pipeline_mode = #tpu.pipeline_mode<synchronous>, transform_indices = @transform_3, window_bounds = array<i64: 512, 512>}, {pipeline_mode = #tpu.pipeline_mode<synchronous>, transform_indices = @transform_4, window_bounds = array<i64: 1, 512>}, {pipeline_mode = #tpu.pipeline_mode<synchronous>, transform_indices = @transform_5, window_bounds = array<i64: 512, 512>}, {pipeline_mode = #tpu.pipeline_mode<synchronous>, transform_indices = @transform_6, window_bounds = array<i64: 1, 512>}, {pipeline_mode = #tpu.pipeline_mode<synchronous>, transform_indices = @transform_7, window_bounds = array<i64: 512, 512>}, {pipeline_mode = #tpu.pipeline_mode<synchronous>, transform_indices = @transform_8, window_bounds = array<i64: 1, 512>}, {pipeline_mode = #tpu.pipeline_mode<synchronous>, transform_indices = @transform_9, window_bounds = array<i64: 512, 512>}, {pipeline_mode = #tpu.pipeline_mode<synchronous>, transform_indices = @transform_10, window_bounds = array<i64: 1, 512>}, {pipeline_mode = #tpu.pipeline_mode<synchronous>, transform_indices = @transform_11, window_bounds = array<i64: 1, 512>}, {pipeline_mode = #tpu.pipeline_mode<synchronous>, transform_indices = @transform_12, window_bounds = array<i64: 1, 1>}, {transform_indices = @transform_13, window_bounds = array<i64: 16, 1>}]} {
    %c0 = arith.constant 0 : index
    %c0_0 = arith.constant 0 : index
    %0 = vector.load %arg1[%c0, %c0_0] : memref<16x1536xbf16, #tpu.memory_space<vmem>>, vector<16x1536xbf16>
    %c0_1 = arith.constant 0 : index
    %c0_2 = arith.constant 0 : index
    %1 = vector.load %arg2[%c0_1, %c0_2] : memref<1536x512xbf16, #tpu.memory_space<vmem>>, vector<1536x512xbf16>
    %cst = arith.constant dense<0.000000e+00> : vector<16x512xf32>
    %2 = tpu.matmul %0, %1, %cst {dimension_numbers = #tpu.dot_dimension_numbers<[1], [0], [0], [1], [0, 0, 1, 1], [], []>} : vector<16x1536xbf16>, vector<1536x512xbf16>, vector<16x512xf32> -> vector<16x512xf32>
    %c0_3 = arith.constant 0 : index
    %c0_4 = arith.constant 0 : index
    %3 = vector.load %arg3[%c0_3, %c0_4] : memref<1x512xf32, #tpu.memory_space<vmem>>, vector<1x512xf32>
    %4 = vector.broadcast %3 : vector<1x512xf32> to vector<16x512xf32>
    %5 = arith.addf %2, %4 : vector<16x512xf32>
    %cst_5 = arith.constant 0.000000e+00 : f32
    %6 = vector.broadcast %cst_5 : f32 to vector<16x512xf32>
    %7 = arith.maximumf %5, %6 : vector<16x512xf32>
    %8 = arith.truncf %7 : vector<16x512xf32> to vector<16x512xbf16>
    %c0_6 = arith.constant 0 : index
    %c0_7 = arith.constant 0 : index
    %9 = vector.load %arg4[%c0_6, %c0_7] : memref<512x512xbf16, #tpu.memory_space<vmem>>, vector<512x512xbf16>
    %cst_8 = arith.constant dense<0.000000e+00> : vector<16x512xf32>
    %10 = tpu.matmul %8, %9, %cst_8 {dimension_numbers = #tpu.dot_dimension_numbers<[1], [0], [0], [1], [0, 0, 1, 1], [], []>} : vector<16x512xbf16>, vector<512x512xbf16>, vector<16x512xf32> -> vector<16x512xf32>
    %c0_9 = arith.constant 0 : index
    %c0_10 = arith.constant 0 : index
    %11 = vector.load %arg5[%c0_9, %c0_10] : memref<1x512xf32, #tpu.memory_space<vmem>>, vector<1x512xf32>
    %12 = vector.broadcast %11 : vector<1x512xf32> to vector<16x512xf32>
    %13 = arith.addf %10, %12 : vector<16x512xf32>
    %cst_11 = arith.constant 0.000000e+00 : f32
    %14 = vector.broadcast %cst_11 : f32 to vector<16x512xf32>
    %15 = arith.maximumf %13, %14 : vector<16x512xf32>
    %16 = arith.truncf %15 : vector<16x512xf32> to vector<16x512xbf16>
    %c0_12 = arith.constant 0 : index
    %c0_13 = arith.constant 0 : index
    %17 = vector.load %arg6[%c0_12, %c0_13] : memref<512x512xbf16, #tpu.memory_space<vmem>>, vector<512x512xbf16>
    %cst_14 = arith.constant dense<0.000000e+00> : vector<16x512xf32>
    %18 = tpu.matmul %16, %17, %cst_14 {dimension_numbers = #tpu.dot_dimension_numbers<[1], [0], [0], [1], [0, 0, 1, 1], [], []>} : vector<16x512xbf16>, vector<512x512xbf16>, vector<16x512xf32> -> vector<16x512xf32>
    %c0_15 = arith.constant 0 : index
    %c0_16 = arith.constant 0 : index
    %19 = vector.load %arg7[%c0_15, %c0_16] : memref<1x512xf32, #tpu.memory_space<vmem>>, vector<1x512xf32>
    %20 = vector.broadcast %19 : vector<1x512xf32> to vector<16x512xf32>
    %21 = arith.addf %18, %20 : vector<16x512xf32>
    %cst_17 = arith.constant 0.000000e+00 : f32
    %22 = vector.broadcast %cst_17 : f32 to vector<16x512xf32>
    %23 = arith.maximumf %21, %22 : vector<16x512xf32>
    %24 = arith.truncf %23 : vector<16x512xf32> to vector<16x512xbf16>
    %c0_18 = arith.constant 0 : index
    %c0_19 = arith.constant 0 : index
    %25 = vector.load %arg8[%c0_18, %c0_19] : memref<512x512xbf16, #tpu.memory_space<vmem>>, vector<512x512xbf16>
    %cst_20 = arith.constant dense<0.000000e+00> : vector<16x512xf32>
    %26 = tpu.matmul %24, %25, %cst_20 {dimension_numbers = #tpu.dot_dimension_numbers<[1], [0], [0], [1], [0, 0, 1, 1], [], []>} : vector<16x512xbf16>, vector<512x512xbf16>, vector<16x512xf32> -> vector<16x512xf32>
    %c0_21 = arith.constant 0 : index
    %c0_22 = arith.constant 0 : index
    %27 = vector.load %arg9[%c0_21, %c0_22] : memref<1x512xf32, #tpu.memory_space<vmem>>, vector<1x512xf32>
    %28 = vector.broadcast %27 : vector<1x512xf32> to vector<16x512xf32>
    %29 = arith.addf %26, %28 : vector<16x512xf32>
    %cst_23 = arith.constant 0.000000e+00 : f32
    %30 = vector.broadcast %cst_23 : f32 to vector<16x512xf32>
    %31 = arith.maximumf %29, %30 : vector<16x512xf32>
    %32 = arith.truncf %31 : vector<16x512xf32> to vector<16x512xbf16>
    %c0_24 = arith.constant 0 : index
    %c0_25 = arith.constant 0 : index
    %33 = vector.load %arg10[%c0_24, %c0_25] : memref<512x512xbf16, #tpu.memory_space<vmem>>, vector<512x512xbf16>
    %cst_26 = arith.constant dense<0.000000e+00> : vector<16x512xf32>
    %34 = tpu.matmul %32, %33, %cst_26 {dimension_numbers = #tpu.dot_dimension_numbers<[1], [0], [0], [1], [0, 0, 1, 1], [], []>} : vector<16x512xbf16>, vector<512x512xbf16>, vector<16x512xf32> -> vector<16x512xf32>
    %c0_27 = arith.constant 0 : index
    %c0_28 = arith.constant 0 : index
    %35 = vector.load %arg11[%c0_27, %c0_28] : memref<1x512xf32, #tpu.memory_space<vmem>>, vector<1x512xf32>
    %36 = vector.broadcast %35 : vector<1x512xf32> to vector<16x512xf32>
    %37 = arith.addf %34, %36 : vector<16x512xf32>
    %cst_29 = arith.constant 0.000000e+00 : f32
    %38 = vector.broadcast %cst_29 : f32 to vector<16x512xf32>
    %39 = arith.maximumf %37, %38 : vector<16x512xf32>
    %c0_30 = arith.constant 0 : index
    %c0_31 = arith.constant 0 : index
    %40 = vector.load %arg12[%c0_30, %c0_31] : memref<1x512xf32, #tpu.memory_space<vmem>>, vector<1x512xf32>
    %41 = vector.broadcast %40 : vector<1x512xf32> to vector<16x512xf32>
    %42 = arith.mulf %39, %41 : vector<16x512xf32>
    %cst_32 = arith.constant dense<0.000000e+00> : vector<16xf32>
    %43 = vector.multi_reduction <add>, %42, %cst_32 [1] : vector<16x512xf32> to vector<16xf32>
    %44 = vector.shape_cast %43 : vector<16xf32> to vector<16x1xf32>
    %c0_33 = arith.constant 0 : index
    %c0_34 = arith.constant 0 : index
    %45 = vector.load %arg13[%c0_33, %c0_34] : memref<1x1xf32, #tpu.memory_space<vmem>>, vector<1x1xf32>
    %46 = vector.broadcast %45 : vector<1x1xf32> to vector<16x1xf32>
    %47 = arith.addf %44, %46 : vector<16x1xf32>
    %c0_35 = arith.constant 0 : index
    %c0_36 = arith.constant 0 : index
    %48 = vector.load %arg14[%c0_35, %c0_36] : memref<16x1xf32, #tpu.memory_space<vmem>>, vector<16x1xf32>
    tpu.vector_store %arg14[%c0_35, %c0_36], %47 {strides = array<i32>} : memref<16x1xf32, #tpu.memory_space<vmem>>, vector<16x1xf32>,
    return
  }
  func.func @transform_0(%arg0: i32) -> (i32, i32) {
    %c0_i32 = arith.constant 0 : i32
    %c0_i32_0 = arith.constant 0 : i32
    return %arg0, %c0_i32 : i32, i32
  }
  func.func @transform_1(%arg0: i32) -> (i32, i32) {
    %c0_i32 = arith.constant 0 : i32
    %c0_i32_0 = arith.constant 0 : i32
    %c0_i32_1 = arith.constant 0 : i32
    return %c0_i32, %c0_i32_0 : i32, i32
  }
  func.func @transform_2(%arg0: i32) -> (i32, i32) {
    %c0_i32 = arith.constant 0 : i32
    %c0_i32_0 = arith.constant 0 : i32
    %c0_i32_1 = arith.constant 0 : i32
    return %c0_i32, %c0_i32_0 : i32, i32
  }
  func.func @transform_3(%arg0: i32) -> (i32, i32) {
    %c0_i32 = arith.constant 0 : i32
    %c0_i32_0 = arith.constant 0 : i32
    %c0_i32_1 = arith.constant 0 : i32
    return %c0_i32, %c0_i32_0 : i32, i32
  }
  func.func @transform_4(%arg0: i32) -> (i32, i32) {
    %c0_i32 = arith.constant 0 : i32
    %c0_i32_0 = arith.constant 0 : i32
    %c0_i32_1 = arith.constant 0 : i32
    return %c0_i32, %c0_i32_0 : i32, i32
  }
  func.func @transform_5(%arg0: i32) -> (i32, i32) {
    %c0_i32 = arith.constant 0 : i32
    %c0_i32_0 = arith.constant 0 : i32
    %c0_i32_1 = arith.constant 0 : i32
    return %c0_i32, %c0_i32_0 : i32, i32
  }
  func.func @transform_6(%arg0: i32) -> (i32, i32) {
    %c0_i32 = arith.constant 0 : i32
    %c0_i32_0 = arith.constant 0 : i32
    %c0_i32_1 = arith.constant 0 : i32
    return %c0_i32, %c0_i32_0 : i32, i32
  }
  func.func @transform_7(%arg0: i32) -> (i32, i32) {
    %c0_i32 = arith.constant 0 : i32
    %c0_i32_0 = arith.constant 0 : i32
    %c0_i32_1 = arith.constant 0 : i32
    return %c0_i32, %c0_i32_0 : i32, i32
  }
  func.func @transform_8(%arg0: i32) -> (i32, i32) {
    %c0_i32 = arith.constant 0 : i32
    %c0_i32_0 = arith.constant 0 : i32
    %c0_i32_1 = arith.constant 0 : i32
    return %c0_i32, %c0_i32_0 : i32, i32
  }
  func.func @transform_9(%arg0: i32) -> (i32, i32) {
    %c0_i32 = arith.constant 0 : i32
    %c0_i32_0 = arith.constant 0 : i32
    %c0_i32_1 = arith.constant 0 : i32
    return %c0_i32, %c0_i32_0 : i32, i32
  }
  func.func @transform_10(%arg0: i32) -> (i32, i32) {
    %c0_i32 = arith.constant 0 : i32
    %c0_i32_0 = arith.constant 0 : i32
    %c0_i32_1 = arith.constant 0 : i32
    return %c0_i32, %c0_i32_0 : i32, i32
  }
  func.func @transform_11(%arg0: i32) -> (i32, i32) {
    %c0_i32 = arith.constant 0 : i32
    %c0_i32_0 = arith.constant 0 : i32
    %c0_i32_1 = arith.constant 0 : i32
    return %c0_i32, %c0_i32_0 : i32, i32
  }
  func.func @transform_12(%arg0: i32) -> (i32, i32) {
    %c0_i32 = arith.constant 0 : i32
    %c0_i32_0 = arith.constant 0 : i32
    %c0_i32_1 = arith.constant 0 : i32
    return %c0_i32, %c0_i32_0 : i32, i32
  }
  func.func @transform_13(%arg0: i32) -> (i32, i32) {
    %c0_i32 = arith.constant 0 : i32
    %c0_i32_0 = arith.constant 0 : i32
    return %arg0, %c0_i32 : i32, i32
  }
}

</mosaic_0001>

<bundles_post_ra>
// kernel: axie_forward_values.1
= control target key start
LH: loop header
LB: loop body
LE: loop exit
PB: predicated region body
PF: predicated region fallthrough
CT: control target
= control target key end

     0   :  { %s10057_s0 = inlined_call_operand.vmem [shape: bf16[16,1536], index: 0, kind: input, shape index: {}]   ;;  %s10058_s1 = inlined_call_operand.hbm [shape: bf16[1536,512], index: 1, kind: input, shape index: {}]   ;;  %s10059_s2 = inlined_call_operand.hbm [shape: f32[1,512], index: 2, kind: input, shape index: {}]   ;;  %s10060_s3 = inlined_call_operand.hbm [shape: bf16[512,512], index: 3, kind: input, shape index: {}]   ;;  %s10061_s4 = inlined_call_operand.hbm [shape: f32[1,512], index: 4, kind: input, shape index: {}]   ;;  %s10062_s5 = inlined_call_operand.hbm [shape: bf16[512,512], index: 5, kind: input, shape index: {}]   ;;  %s10063_s6 = inlined_call_operand.hbm [shape: f32[1,512], index: 6, kind: input, shape index: {}]   ;;  %s10064_s7 = inlined_call_operand.hbm [shape: bf16[512,512], index: 7, kind: input, shape index: {}]   ;;  %s10065_s8 = inlined_call_operand.hbm [shape: f32[1,512], index: 8, kind: input, shape index: {}]   ;;  %s10066_s9 = inlined_call_operand.hbm [shape: bf16[512,512], index: 9, kind: input, shape index: {}]   ;;  %s10067_s10 = inlined_call_operand.hbm [shape: f32[1,512], index: 10, kind: input, shape index: {}]   ;;  %s10068_s11 = inlined_call_operand.hbm [shape: f32[1,512], index: 11, kind: input, shape index: {}]   ;;  %s10069_s12 = inlined_call_operand.<no memory space> [shape: f32[1,1], index: 12, kind: input, shape index: {}]   ;;  %s10070_s13 = inlined_call_operand.vmem [shape: f32[16,1], index: 13, kind: output, shape index: {}]  }
   0x1   :  { %v18_v0 = vstv %s10069_s12 }
   0x2   :  { %19 = vst [vmem:[#allocation2] sm:$0x1] %v18_v0 }
   0x3   :  { %20 = vsyncpa [#allocation4], 0 }
   0x4   :  { %21 = vsyncpa [#allocation6], 0 }
   0x5   :  { %22 = vsyncpa [#allocation9], 0 }
   0x6   :  { %23 = vsyncpa [#allocation12], 0 }
   0x7   :  { %24 = vsyncpa [#allocation15], 0 }
   0x8   :  { %25 = vsyncpa [#allocation18], 0  ;;  %s9713_s27 = smov [#allocation5]   ;;  %s9714_s29 = smov [#allocation8]  }
   0x9   :  { %s46_s28 = sshll.u32 %s9713_s27, 4  ;;  %s68_s30 = sshll.u32 %s9714_s29, 4  ;;  %s47_s28 = int_to_ptr.vmem [resolvable:$true] %s46_s28  ;;  %s69_s30 = int_to_ptr.vmem [resolvable:$true] %s68_s30 }
   0xa   :  { %s9459_s16 = scalar_lea.hbm %s10059_s2, 64 }
   0xb   :  { %p9460_p0 = scmp.ne.s32.totalorder %s10059_s2, %s9459_s16  ;;  %p9463_p1 = scmp.lt.u32.totalorder %s9459_s16, %s10059_s2 }
   0xd   :  { %p9465_p2 = pnand %p9463_p1, %p9460_p0 }
   0xf   :  { %9468 = shalt.err (!%p9465_p2)
}
  0x10   :  { %s9469_s20 = scalar_lea.vmem %s47_s28, 64  ;;  %p9474_p4 = scmp.lt.s32.totalorder %s47_s28, %s47_s28 }
  0x11   :  { %p9470_p3 = scmp.ne.s32.totalorder %s47_s28, %s9469_s20  ;;  %p9475_p5 = scmp.lt.s32.totalorder %s9469_s20, %s9469_s20 }
  0x13   :  { %p9476_p6 = por %p9475_p5, %p9474_p4 }
  0x15   :  { %p9477_p7 = pnand %p9476_p6, %p9470_p3 }
  0x17   :  { %9480 = shalt.err (!%p9477_p7)
}
  0x18   :  { %49 = dma.hbm_to_vmem [thread:$0]  %s10059_s2, 64, %s47_s28, [#allocation6]  }
  0x19   :  { %s9481_s25 = scalar_lea.hbm %s10061_s4, 64 }
  0x1a   :  { %p9482_p8 = scmp.ne.s32.totalorder %s10061_s4, %s9481_s25  ;;  %p9485_p9 = scmp.lt.u32.totalorder %s9481_s25, %s10061_s4 }
  0x1c   :  { %p9487_p10 = pnand %p9485_p9, %p9482_p8 }
  0x1e   :  { %9490 = shalt.err (!%p9487_p10)
}
  0x1f   :  { %s9491_s15 = scalar_lea.vmem %s69_s30, 64  ;;  %p9496_p12 = scmp.lt.s32.totalorder %s69_s30, %s69_s30 }
  0x20   :  { %p9492_p11 = scmp.ne.s32.totalorder %s69_s30, %s9491_s15  ;;  %p9497_p13 = scmp.lt.s32.totalorder %s9491_s15, %s9491_s15 }
  0x22   :  { %p9498_p0 = por %p9497_p13, %p9496_p12 }
  0x24   :  { %p9499_p1 = pnand %p9498_p0, %p9492_p11 }
  0x26   :  { %9502 = shalt.err (!%p9499_p1)
}
  0x27   :  { %71 = dma.hbm_to_vmem [thread:$0]  %s10061_s4, 64, %s69_s30, [#allocation9]  }
  0x28   :  { %s9715_s16 = smov [#allocation11]   ;;  %s9716_s18 = smov [#allocation14]  }
  0x29   :  { %s90_s17 = sshll.u32 %s9715_s16, 4  ;;  %s112_s12 = sshll.u32 %s9716_s18, 4  ;;  %s91_s17 = int_to_ptr.vmem [resolvable:$true] %s90_s17  ;;  %s113_s12 = int_to_ptr.vmem [resolvable:$true] %s112_s12 }
  0x2a   :  { %s9503_s21 = scalar_lea.hbm %s10063_s6, 64 }
  0x2b   :  { %p9504_p2 = scmp.ne.s32.totalorder %s10063_s6, %s9503_s21  ;;  %p9507_p3 = scmp.lt.u32.totalorder %s9503_s21, %s10063_s6 }
  0x2d   :  { %p9509_p4 = pnand %p9507_p3, %p9504_p2 }
  0x2f   :  { %9512 = shalt.err (!%p9509_p4)
}
  0x30   :  { %s9513_s4 = scalar_lea.vmem %s91_s17, 64  ;;  %p9518_p6 = scmp.lt.s32.totalorder %s91_s17, %s91_s17 }
  0x31   :  { %p9514_p5 = scmp.ne.s32.totalorder %s91_s17, %s9513_s4  ;;  %p9519_p7 = scmp.lt.s32.totalorder %s9513_s4, %s9513_s4 }
  0x33   :  { %p9520_p8 = por %p9519_p7, %p9518_p6 }
  0x35   :  { %p9521_p9 = pnand %p9520_p8, %p9514_p5 }
  0x37   :  { %9524 = shalt.err (!%p9521_p9)
}
  0x38   :  { %93 = dma.hbm_to_vmem [thread:$0]  %s10063_s6, 64, %s91_s17, [#allocation12]  }
  0x39   :  { %s9525_s14 = scalar_lea.hbm %s10065_s8, 64 }
  0x3a   :  { %p9526_p10 = scmp.ne.s32.totalorder %s10065_s8, %s9525_s14  ;;  %p9529_p11 = scmp.lt.u32.totalorder %s9525_s14, %s10065_s8 }
  0x3c   :  { %p9531_p12 = pnand %p9529_p11, %p9526_p10 }
  0x3e   :  { %9534 = shalt.err (!%p9531_p12)
}
  0x3f   :  { %s9535_s18 = scalar_lea.vmem %s113_s12, 64  ;;  %p9540_p0 = scmp.lt.s32.totalorder %s113_s12, %s113_s12 }
  0x40   :  { %p9536_p13 = scmp.ne.s32.totalorder %s113_s12, %s9535_s18  ;;  %p9541_p1 = scmp.lt.s32.totalorder %s9535_s18, %s9535_s18 }
  0x42   :  { %p9542_p2 = por %p9541_p1, %p9540_p0 }
  0x44   :  { %p9543_p3 = pnand %p9542_p2, %p9536_p13 }
  0x46   :  { %9546 = shalt.err (!%p9543_p3)
}
  0x47   :  { %115 = dma.hbm_to_vmem [thread:$0]  %s10065_s8, 64, %s113_s12, [#allocation15]  }
  0x48   :  { %s9717_s19 = smov [#allocation17]   ;;  %s9718_s21 = smov [#allocation3]  }
  0x49   :  { %s134_s20 = sshll.u32 %s9717_s19, 4  ;;  %s33_s22 = sshll.u32 %s9718_s21, 4  ;;  %s135_s20 = int_to_ptr.vmem [resolvable:$true] %s134_s20  ;;  %s9847_s22 = int_to_ptr.vmem [resolvable:$true] %s33_s22 }
  0x4a   :  { %s9547_s25 = scalar_lea.hbm %s10067_s10, 64 }
  0x4b   :  { %p9548_p4 = scmp.ne.s32.totalorder %s10067_s10, %s9547_s25  ;;  %p9551_p5 = scmp.lt.u32.totalorder %s9547_s25, %s10067_s10 }
  0x4d   :  { %p9553_p6 = pnand %p9551_p5, %p9548_p4 }
  0x4f   :  { %9556 = shalt.err (!%p9553_p6)
}
  0x50   :  { %s9557_s8 = scalar_lea.vmem %s135_s20, 64  ;;  %p9562_p8 = scmp.lt.s32.totalorder %s135_s20, %s135_s20 }
  0x51   :  { %p9558_p7 = scmp.ne.s32.totalorder %s135_s20, %s9557_s8  ;;  %p9563_p9 = scmp.lt.s32.totalorder %s9557_s8, %s9557_s8 }
  0x53   :  { %p9564_p10 = por %p9563_p9, %p9562_p8 }
  0x55   :  { %p9565_p11 = pnand %p9564_p10, %p9558_p7 }
  0x57   :  { %9568 = shalt.err (!%p9565_p11)
}
  0x58   :  { %137 = dma.hbm_to_vmem [thread:$0]  %s10067_s10, 64, %s135_s20, [#allocation18]  }
  0x59   :  { %s9569_s2 = scalar_lea.hbm %s10058_s1, 49152 }
  0x5a   :  { %p9570_p12 = scmp.ne.s32.totalorder %s10058_s1, %s9569_s2  ;;  %p9573_p13 = scmp.lt.u32.totalorder %s9569_s2, %s10058_s1 }
  0x5c   :  { %p9575_p0 = pnand %p9573_p13, %p9570_p12 }
  0x5e   :  { %9578 = shalt.err (!%p9575_p0)
}
  0x5f   :  { %s9579_s17 = scalar_lea.vmem %s9847_s22, 49152  ;;  %p9584_p2 = scmp.lt.s32.totalorder %s9847_s22, %s9847_s22 }
  0x60   :  { %p9580_p1 = scmp.ne.s32.totalorder %s9847_s22, %s9579_s17  ;;  %p9585_p3 = scmp.lt.s32.totalorder %s9579_s17, %s9579_s17 }
  0x62   :  { %p9586_p4 = por %p9585_p3, %p9584_p2 }
  0x64   :  { %p9587_p5 = pnand %p9586_p4, %p9580_p1 }
  0x66   :  { %9590 = shalt.err (!%p9587_p5)
}
  0x67   :  { %s9719_s10 = smov 256   ;;  %s9720_s19 = smov 16  }
  0x68   :  { %39 = dma.hbm_to_vmem [thread:$0]  %s10058_s1, 49152, %s9847_s22, [#allocation4], %s9719_s10, %s9719_s10, %s9720_s19  }
  0x69   :  { %s9721_s23 = smov [#allocation7]   ;;  %s9722_s25 = smov [#allocation10]  }
  0x6a   :  { %s55_s24 = sshll.u32 %s9721_s23, 4  ;;  %s77_s4 = sshll.u32 %s9722_s25, 4  ;;  %s56_s24 = int_to_ptr.vmem [resolvable:$true] %s55_s24  ;;  %s9881_s4 = int_to_ptr.vmem [resolvable:$true] %s77_s4 }
  0x6b   :  { %s9591_s27 = scalar_lea.hbm %s10060_s3, 16384 }
  0x6c   :  { %p9592_p6 = scmp.ne.s32.totalorder %s10060_s3, %s9591_s27  ;;  %p9595_p7 = scmp.lt.u32.totalorder %s9591_s27, %s10060_s3 }
  0x6e   :  { %p9597_p8 = pnand %p9595_p7, %p9592_p6 }
  0x70   :  { %9600 = shalt.err (!%p9597_p8)
}
  0x71   :  { %s9601_s1 = scalar_lea.vmem %s56_s24, 16384  ;;  %p9606_p10 = scmp.lt.s32.totalorder %s56_s24, %s56_s24 }
  0x72   :  { %p9602_p9 = scmp.ne.s32.totalorder %s56_s24, %s9601_s1  ;;  %p9607_p11 = scmp.lt.s32.totalorder %s9601_s1, %s9601_s1 }
  0x74   :  { %p9608_p12 = por %p9607_p11, %p9606_p10 }
  0x76   :  { %p9609_p13 = pnand %p9608_p12, %p9602_p9 }
  0x78   :  { %9612 = shalt.err (!%p9609_p13)
}
  0x79   :  { %61 = dma.hbm_to_vmem [thread:$0]  %s10060_s3, 16384, %s56_s24, [#allocation6], %s9719_s10, %s9719_s10, %s9720_s19  }
  0x7a   :  { %s9613_s16 = scalar_lea.hbm %s10062_s5, 16384 }
  0x7b   :  { %p9614_p0 = scmp.ne.s32.totalorder %s10062_s5, %s9613_s16  ;;  %p9617_p1 = scmp.lt.u32.totalorder %s9613_s16, %s10062_s5 }
  0x7d   :  { %p9619_p2 = pnand %p9617_p1, %p9614_p0 }
  0x7f   :  { %9622 = shalt.err (!%p9619_p2)
}
  0x80   :  { %s9623_s21 = scalar_lea.vmem %s9881_s4, 16384  ;;  %p9628_p4 = scmp.lt.s32.totalorder %s9881_s4, %s9881_s4 }
  0x81   :  { %p9624_p3 = scmp.ne.s32.totalorder %s9881_s4, %s9623_s21  ;;  %p9629_p5 = scmp.lt.s32.totalorder %s9623_s21, %s9623_s21 }
  0x83   :  { %p9630_p6 = por %p9629_p5, %p9628_p4 }
  0x85   :  { %p9631_p7 = pnand %p9630_p6, %p9624_p3 }
  0x87   :  { %9634 = shalt.err (!%p9631_p7)
}
  0x88   :  { %83 = dma.hbm_to_vmem [thread:$0]  %s10062_s5, 16384, %s9881_s4, [#allocation9], %s9719_s10, %s9719_s10, %s9720_s19  }
  0x89   :  { %s9723_s24 = smov [#allocation13]   ;;  %s9724_s30 = smov [#allocation16]  }
  0x8a   :  { %s99_s25 = sshll.u32 %s9723_s24, 4  ;;  %s121_s26 = sshll.u32 %s9724_s30, 4  ;;  %s100_s25 = int_to_ptr.vmem [resolvable:$true] %s99_s25  ;;  %s9918_s26 = int_to_ptr.vmem [resolvable:$true] %s121_s26 }
  0x8b   :  { %s9635_s12 = scalar_lea.hbm %s10064_s7, 16384 }
  0x8c   :  { %p9636_p8 = scmp.ne.s32.totalorder %s10064_s7, %s9635_s12  ;;  %p9639_p9 = scmp.lt.u32.totalorder %s9635_s12, %s10064_s7 }
  0x8e   :  { %p9641_p10 = pnand %p9639_p9, %p9636_p8 }
  0x90   :  { %9644 = shalt.err (!%p9641_p10)
}
  0x91   :  { %s9645_s5 = scalar_lea.vmem %s100_s25, 16384  ;;  %p9650_p12 = scmp.lt.s32.totalorder %s100_s25, %s100_s25 }
  0x92   :  { %p9646_p11 = scmp.ne.s32.totalorder %s100_s25, %s9645_s5  ;;  %p9651_p13 = scmp.lt.s32.totalorder %s9645_s5, %s9645_s5 }
  0x94   :  { %p9652_p0 = por %p9651_p13, %p9650_p12 }
  0x96   :  { %p9653_p1 = pnand %p9652_p0, %p9646_p11 }
  0x98   :  { %9656 = shalt.err (!%p9653_p1)
}
  0x99   :  { %105 = dma.hbm_to_vmem [thread:$0]  %s10064_s7, 16384, %s100_s25, [#allocation12], %s9719_s10, %s9719_s10, %s9720_s19  }
  0x9a   :  { %s9657_s16 = scalar_lea.hbm %s10066_s9, 16384 }
  0x9b   :  { %p9658_p2 = scmp.ne.s32.totalorder %s10066_s9, %s9657_s16  ;;  %p9661_p3 = scmp.lt.u32.totalorder %s9657_s16, %s10066_s9 }
  0x9d   :  { %p9663_p4 = pnand %p9661_p3, %p9658_p2 }
  0x9f   :  { %9666 = shalt.err (!%p9663_p4)
}
  0xa0   :  { %s9667_s21 = scalar_lea.vmem %s9918_s26, 16384  ;;  %p9672_p6 = scmp.lt.s32.totalorder %s9918_s26, %s9918_s26 }
  0xa1   :  { %p9668_p5 = scmp.ne.s32.totalorder %s9918_s26, %s9667_s21  ;;  %p9673_p7 = scmp.lt.s32.totalorder %s9667_s21, %s9667_s21 }
  0xa3   :  { %p9674_p8 = por %p9673_p7, %p9672_p6 }
  0xa5   :  { %p9675_p9 = pnand %p9674_p8, %p9668_p5 }
  0xa7   :  { %9678 = shalt.err (!%p9675_p9)
}
  0xa8   :  { %127 = dma.hbm_to_vmem [thread:$0]  %s10066_s9, 16384, %s9918_s26, [#allocation15], %s9719_s10, %s9719_s10, %s9720_s19  }
  0xa9   :  { %s9725_s23 = smov [#allocation19]   ;;  %s9679_s27 = scalar_lea.hbm %s10068_s11, 64 }
  0xaa   :  { %s144_s24 = sshll.u32 %s9725_s23, 4  ;;  %p9680_p10 = scmp.ne.s32.totalorder %s10068_s11, %s9679_s27  ;;  %s145_s24 = int_to_ptr.vmem [resolvable:$true] %s144_s24 }
  0xab   :  { %p9683_p11 = scmp.lt.u32.totalorder %s9679_s27, %s10068_s11 }
  0xad   :  { %p9685_p12 = pnand %p9683_p11, %p9680_p10 }
  0xaf   :  { %9688 = shalt.err (!%p9685_p12)
}
  0xb0   :  { %s9689_s1 = scalar_lea.vmem %s145_s24, 64  ;;  %p9694_p0 = scmp.lt.s32.totalorder %s145_s24, %s145_s24 }
  0xb1   :  { %p9690_p13 = scmp.ne.s32.totalorder %s145_s24, %s9689_s1  ;;  %p9695_p1 = scmp.lt.s32.totalorder %s9689_s1, %s9689_s1 }
  0xb3   :  { %p9696_p2 = por %p9695_p1, %p9694_p0 }
  0xb5   :  { %p9697_p3 = pnand %p9696_p2, %p9690_p13 }
  0xb7   :  { %9700 = shalt.err (!%p9697_p3)
}
  0xb8   :  { %147 = dma.hbm_to_vmem [thread:$0]  %s10068_s11, 64, %s145_s24, [#allocation18]  }
  0xb9   :  { %9701 = dma.done.wait [#allocation4], 49152  }
  0xba   :  { %9702 = vsyncadd [#allocation4], 4294918144 }
  0xbb   :  { %9703 = dma.done.wait [#allocation6], 16448  }
  0xbc   :  { %9704 = vsyncadd [#allocation6], 4294950848 }
  0xbd   :  { %9705 = dma.done.wait [#allocation9], 16448  }
  0xbe   :  { %9706 = vsyncadd [#allocation9], 4294950848 }
  0xbf   :  { %9707 = dma.done.wait [#allocation12], 16448  }
  0xc0   :  { %9708 = vsyncadd [#allocation12], 4294950848 }
  0xc1   :  { %9709 = dma.done.wait [#allocation15], 16448  }
  0xc2   :  { %9710 = vsyncadd [#allocation15], 4294950848 }
  0xc3   :  { %9711 = dma.done.wait [#allocation18], 128  }
  0xc4   :  { %9712 = vsyncadd [#allocation18], 4294967168  ;;  %v8097_v1 = vld [vmem:[#allocation3 + $0x4] ss:$16 sps:$4 sm:$0xff]   ;;  %v8099_v2 = vld [vmem:[#allocation3 + $0xc] ss:$16 sps:$4 sm:$0xff]  }
  0xc5   :  { %2581 = vmatprep.subr.bf16.mxu0 %v8097_v1  ;;  %v8101_v3 = vld [vmem:[#allocation3] ss:$16 sps:$4 sm:$0xff]   ;;  %v8102_v4 = vld [vmem:[#allocation3 + $0x8] ss:$16 sps:$4 sm:$0xff]   ;;  %2839 = vmatprep.subr.bf16.mxu1 %v8099_v2  ;;  %v8103_v5 = vld [vmem:[#allocation3 + $0x24] ss:$16 sps:$4 sm:$0xff]  }
  0xc6   :  { %2582 = vmatpush1.bf16.msra.mxu0 %v8101_v3  ;;  %2840 = vmatpush1.bf16.msra.mxu1 %v8102_v4  ;;  %v8105_v6 = vld [vmem:[#allocation3 + $0x2c] ss:$16 sps:$4 sm:$0xff]   ;;  %v8107_v7 = vld [vmem:[#allocation3 + $0x20] ss:$16 sps:$4 sm:$0xff]   ;;  %v8108_v8 = vld [vmem:[#allocation3 + $0x28] ss:$16 sps:$4 sm:$0xff]  }
  0xc7   :  { %2583 = vmatprep.subr.bf16.mxu0 %v8103_v5  ;;  %2841 = vmatprep.subr.bf16.mxu1 %v8105_v6  ;;  %v8109_v9 = vld [vmem:[#allocation3 + $0x44] ss:$16 sps:$4 sm:$0xff]   ;;  %v8111_v10 = vld [vmem:[#allocation3 + $0x4c] ss:$16 sps:$4 sm:$0xff]   ;;  %v8113_v11 = vld [vmem:[#allocation3 + $0x40] ss:$16 sps:$4 sm:$0xff]  }
  0xc8   :  { %v8114_v12 = vld [vmem:[#allocation3 + $0x48] ss:$16 sps:$4 sm:$0xff]   ;;  %v8115_v13 = vld [vmem:[#allocation3 + $0x64] ss:$16 sps:$4 sm:$0xff]   ;;  %v8117_v14 = vld [vmem:[#allocation3 + $0x6c] ss:$16 sps:$4 sm:$0xff]  }
  0xc9   :  { %v8119_v15 = vld [vmem:[#allocation3 + $0x60] ss:$16 sps:$4 sm:$0xff]   ;;  %v8120_v16 = vld [vmem:[#allocation3 + $0x68] ss:$16 sps:$4 sm:$0xff]   ;;  %v8121_v17 = vld [vmem:[#allocation3 + $0x84] ss:$16 sps:$4 sm:$0xff]  }
  0xca   :  { %2584 = vmatpush1.bf16.msra.mxu0 %v8107_v7  ;;  %2842 = vmatpush1.bf16.msra.mxu1 %v8108_v8  ;;  %v8123_v18 = vld [vmem:[#allocation3 + $0x8c] ss:$16 sps:$4 sm:$0xff]   ;;  %v8125_v19 = vld [vmem:[#allocation3 + $0x80] ss:$16 sps:$4 sm:$0xff]   ;;  %v8126_v20 = vld [vmem:[#allocation3 + $0x88] ss:$16 sps:$4 sm:$0xff]  }
  0xcb   :  { %2585 = vmatprep.subr.bf16.mxu0 %v8109_v9  ;;  %2843 = vmatprep.subr.bf16.mxu1 %v8111_v10  ;;  %v8127_v21 = vld [vmem:[#allocation3 + $0xa4] ss:$16 sps:$4 sm:$0xff]   ;;  %v8129_v22 = vld [vmem:[#allocation3 + $0xac] ss:$16 sps:$4 sm:$0xff]   ;;  %v8131_v23 = vld [vmem:[#allocation3 + $0xa0] ss:$16 sps:$4 sm:$0xff]  }
  0xcc   :  { %v8132_v24 = vld [vmem:[#allocation3 + $0xa8] ss:$16 sps:$4 sm:$0xff]   ;;  %v8133_v25 = vld [vmem:[#allocation3 + $0xc4] ss:$16 sps:$4 sm:$0xff]   ;;  %v8135_v26 = vld [vmem:[#allocation3 + $0xcc] ss:$16 sps:$4 sm:$0xff]  }
  0xcd   :  { %v8137_v27 = vld [vmem:[#allocation3 + $0xc0] ss:$16 sps:$4 sm:$0xff]   ;;  %v8138_v28 = vld [vmem:[#allocation3 + $0xc8] ss:$16 sps:$4 sm:$0xff]   ;;  %v8139_v29 = vld [vmem:[#allocation3 + $0xe4] ss:$16 sps:$4 sm:$0xff]  }
  0xce   :  { %2586 = vmatpush1.bf16.msra.mxu0 %v8113_v11  ;;  %2844 = vmatpush1.bf16.msra.mxu1 %v8114_v12  ;;  %v8141_v30 = vld [vmem:[#allocation3 + $0xec] ss:$16 sps:$4 sm:$0xff]   ;;  %v8143_v31 = vld [vmem:[#allocation3 + $0xe0] ss:$16 sps:$4 sm:$0xff]   ;;  %v8144_v32 = vld [vmem:[#allocation3 + $0xe8] ss:$16 sps:$4 sm:$0xff]  }
  0xcf   :  { %2587 = vmatprep.subr.bf16.mxu0 %v8115_v13  ;;  %2845 = vmatprep.subr.bf16.mxu1 %v8117_v14  ;;  %v8145_v33 = vld [vmem:[#allocation3 + $0x104] ss:$16 sps:$4 sm:$0xff]   ;;  %v8147_v34 = vld [vmem:[#allocation3 + $0x10c] ss:$16 sps:$4 sm:$0xff]   ;;  %v8149_v35 = vld [vmem:[#allocation3 + $0x100] ss:$16 sps:$4 sm:$0xff]  }
  0xd0   :  { %v8150_v36 = vld [vmem:[#allocation3 + $0x108] ss:$16 sps:$4 sm:$0xff]   ;;  %v8151_v37 = vld [vmem:[#allocation3 + $0x124] ss:$16 sps:$4 sm:$0xff]   ;;  %v8153_v38 = vld [vmem:[#allocation3 + $0x12c] ss:$16 sps:$4 sm:$0xff]  }
  0xd1   :  { %v8155_v39 = vld [vmem:[#allocation3 + $0x120] ss:$16 sps:$4 sm:$0xff]   ;;  %v8156_v40 = vld [vmem:[#allocation3 + $0x128] ss:$16 sps:$4 sm:$0xff]   ;;  %v8157_v41 = vld [vmem:[#allocation3 + $0x144] ss:$16 sps:$4 sm:$0xff]  }
  0xd2   :  { %2588 = vmatpush1.bf16.msra.mxu0 %v8119_v15  ;;  %2846 = vmatpush1.bf16.msra.mxu1 %v8120_v16  ;;  %v8159_v42 = vld [vmem:[#allocation3 + $0x14c] ss:$16 sps:$4 sm:$0xff]   ;;  %v8161_v43 = vld [vmem:[#allocation3 + $0x140] ss:$16 sps:$4 sm:$0xff]   ;;  %v8162_v44 = vld [vmem:[#allocation3 + $0x148] ss:$16 sps:$4 sm:$0xff]  }
  0xd3   :  { %2589 = vmatprep.subr.bf16.mxu0 %v8121_v17  ;;  %2847 = vmatprep.subr.bf16.mxu1 %v8123_v18  ;;  %v8163_v45 = vld [vmem:[#allocation3 + $0x164] ss:$16 sps:$4 sm:$0xff]   ;;  %v8165_v46 = vld [vmem:[#allocation3 + $0x16c] ss:$16 sps:$4 sm:$0xff]   ;;  %v8167_v47 = vld [vmem:[#allocation3 + $0x160] ss:$16 sps:$4 sm:$0xff]  }
  0xd4   :  { %v8168_v48 = vld [vmem:[#allocation3 + $0x168] ss:$16 sps:$4 sm:$0xff]   ;;  %v8195_v49 = vld [vmem:[%s10057_s0 + $0x4] ss:$48 sps:$4 sm:$0xff]   ;;  %v8171_v51 = vld [vmem:[#allocation3 + $0x18c] ss:$16 sps:$4 sm:$0xff]  }
  0xd5   :  { %v8169_v50 = vld [vmem:[#allocation3 + $0x184] ss:$16 sps:$4 sm:$0xff]   ;;  %2613 = vmatprep.mubr.bf16.mxu0 %v8195_v49  ;;  %2871 = vmatprep.mubr.bf16.mxu1 %v8195_v49  ;;  %v8173_v52 = vld [vmem:[#allocation3 + $0x180] ss:$16 sps:$4 sm:$0xff]   ;;  %v8174_v53 = vld [vmem:[#allocation3 + $0x188] ss:$16 sps:$4 sm:$0xff]  }
  0xd6   :  { %2590 = vmatpush1.bf16.msra.mxu0 %v8125_v19  ;;  %2848 = vmatpush1.bf16.msra.mxu1 %v8126_v20  ;;  %v8175_v54 = vld [vmem:[#allocation3 + $0x1a4] ss:$16 sps:$4 sm:$0xff]   ;;  %v8177_v55 = vld [vmem:[#allocation3 + $0x1ac] ss:$16 sps:$4 sm:$0xff]   ;;  %v8179_v56 = vld [vmem:[#allocation3 + $0x1a0] ss:$16 sps:$4 sm:$0xff]  }
  0xd7   :  { %2591 = vmatprep.subr.bf16.mxu0 %v8127_v21  ;;  %2849 = vmatprep.subr.bf16.mxu1 %v8129_v22  ;;  %v8180_v57 = vld [vmem:[#allocation3 + $0x1a8] ss:$16 sps:$4 sm:$0xff]   ;;  %v8181_v58 = vld [vmem:[#allocation3 + $0x1c4] ss:$16 sps:$4 sm:$0xff]   ;;  %v8183_v59 = vld [vmem:[#allocation3 + $0x1cc] ss:$16 sps:$4 sm:$0xff]  }
  0xd8   :  { %v8185_v60 = vld [vmem:[#allocation3 + $0x1c0] ss:$16 sps:$4 sm:$0xff]   ;;  %v8186_v61 = vld [vmem:[#allocation3 + $0x1c8] ss:$16 sps:$4 sm:$0xff]   ;;  %v8187_v62 = vld [vmem:[#allocation3 + $0x1e4] ss:$16 sps:$4 sm:$0xff]  }
  0xd9   :  { %v8189_v63 = vld [vmem:[#allocation3 + $0x1ec] ss:$16 sps:$4 sm:$0xff]   ;;  %v8191_v0 = vld [vmem:[#allocation3 + $0x1e0] ss:$16 sps:$4 sm:$0xff]   ;;  %v8192_v1 = vld [vmem:[#allocation3 + $0x1e8] ss:$16 sps:$4 sm:$0xff]  }
  0xda   :  { %2592 = vmatpush1.bf16.msra.mxu0 %v8131_v23  ;;  %2850 = vmatpush1.bf16.msra.mxu1 %v8132_v24  ;;  %v8198_v2 = vld [vmem:[#allocation3 + $0x204] ss:$16 sps:$4 sm:$0xff]   ;;  %v8201_v3 = vld [vmem:[#allocation3 + $0x20c] ss:$16 sps:$4 sm:$0xff]   ;;  %v8196_v5 = vld [vmem:[#allocation3 + $0x200] ss:$16 sps:$4 sm:$0xff]  }
  0xdb   :  { %2593 = vmatprep.subr.bf16.mxu0 %v8133_v25  ;;  %2851 = vmatprep.subr.bf16.mxu1 %v8135_v26  ;;  %v8193_v4 = vld [vmem:[%s10057_s0] ss:$48 sps:$4 sm:$0xff]   ;;  %v8199_v6 = vld [vmem:[#allocation3 + $0x208] ss:$16 sps:$4 sm:$0xff]   ;;  %v8204_v7 = vld [vmem:[#allocation3 + $0x224] ss:$16 sps:$4 sm:$0xff]  }
  0xdc   :  { %v8207_v8 = vld [vmem:[#allocation3 + $0x22c] ss:$16 sps:$4 sm:$0xff]   ;;  %v8202_v9 = vld [vmem:[#allocation3 + $0x220] ss:$16 sps:$4 sm:$0xff]   ;;  %v8205_v10 = vld [vmem:[#allocation3 + $0x228] ss:$16 sps:$4 sm:$0xff]  }
  0xdd   :  { %v8210_v11 = vld [vmem:[#allocation3 + $0x244] ss:$16 sps:$4 sm:$0xff]   ;;  %v8213_v12 = vld [vmem:[#allocation3 + $0x24c] ss:$16 sps:$4 sm:$0xff]   ;;  %v8208_v13 = vld [vmem:[#allocation3 + $0x240] ss:$16 sps:$4 sm:$0xff]  }
  0xde   :  { %2594 = vmatpush1.bf16.msra.mxu0 %v8137_v27  ;;  %2852 = vmatpush1.bf16.msra.mxu1 %v8138_v28  ;;  %v8211_v14 = vld [vmem:[#allocation3 + $0x248] ss:$16 sps:$4 sm:$0xff]   ;;  %v8216_v15 = vld [vmem:[#allocation3 + $0x264] ss:$16 sps:$4 sm:$0xff]   ;;  %v8219_v16 = vld [vmem:[#allocation3 + $0x26c] ss:$16 sps:$4 sm:$0xff]  }
  0xdf   :  { %2595 = vmatprep.subr.bf16.mxu0 %v8139_v29  ;;  %2853 = vmatprep.subr.bf16.mxu1 %v8141_v30  ;;  %v8214_v17 = vld [vmem:[#allocation3 + $0x260] ss:$16 sps:$4 sm:$0xff]   ;;  %v8217_v18 = vld [vmem:[#allocation3 + $0x268] ss:$16 sps:$4 sm:$0xff]   ;;  %v8222_v19 = vld [vmem:[#allocation3 + $0x284] ss:$16 sps:$4 sm:$0xff]  }
  0xe0   :  { %v8225_v20 = vld [vmem:[#allocation3 + $0x28c] ss:$16 sps:$4 sm:$0xff]   ;;  %v8220_v21 = vld [vmem:[#allocation3 + $0x280] ss:$16 sps:$4 sm:$0xff]   ;;  %v8223_v22 = vld [vmem:[#allocation3 + $0x288] ss:$16 sps:$4 sm:$0xff]  }
  0xe1   :  { %v8228_v23 = vld [vmem:[#allocation3 + $0x2a4] ss:$16 sps:$4 sm:$0xff]   ;;  %v8231_v24 = vld [vmem:[#allocation3 + $0x2ac] ss:$16 sps:$4 sm:$0xff]   ;;  %v8226_v25 = vld [vmem:[#allocation3 + $0x2a0] ss:$16 sps:$4 sm:$0xff]  }
  0xe2   :  { %2596 = vmatpush1.bf16.msra.mxu0 %v8143_v31  ;;  %2854 = vmatpush1.bf16.msra.mxu1 %v8144_v32  ;;  %v8229_v26 = vld [vmem:[#allocation3 + $0x2a8] ss:$16 sps:$4 sm:$0xff]   ;;  %v8234_v27 = vld [vmem:[#allocation3 + $0x2c4] ss:$16 sps:$4 sm:$0xff]   ;;  %v8237_v28 = vld [vmem:[#allocation3 + $0x2cc] ss:$16 sps:$4 sm:$0xff]  }
  0xe3   :  { %2597 = vmatprep.subr.bf16.mxu0 %v8145_v33  ;;  %2855 = vmatprep.subr.bf16.mxu1 %v8147_v34  ;;  %v8232_v29 = vld [vmem:[#allocation3 + $0x2c0] ss:$16 sps:$4 sm:$0xff]   ;;  %v8235_v30 = vld [vmem:[#allocation3 + $0x2c8] ss:$16 sps:$4 sm:$0xff]   ;;  %v8240_v32 = vld [vmem:[#allocation3 + $0x2e4] ss:$16 sps:$4 sm:$0xff]  }
  0xe4   :  { %v8294_v31 = vld [vmem:[%s10057_s0 + $0xc] ss:$48 sps:$4 sm:$0xff]   ;;  %v8238_v34 = vld [vmem:[#allocation3 + $0x2e0] ss:$16 sps:$4 sm:$0xff]   ;;  %vm7050_vm0 = vcmask 7168  }
  0xe5   :  { %v8243_v33 = vld [vmem:[#allocation3 + $0x2ec] ss:$16 sps:$4 sm:$0xff]  }
  0xe6   :  { %2598 = vmatpush1.bf16.msra.mxu0 %v8149_v35  ;;  %2856 = vmatpush1.bf16.msra.mxu1 %v8150_v36  ;;  %v8241_v35 = vld [vmem:[#allocation3 + $0x2e8] ss:$16 sps:$4 sm:$0xff]   ;;  %v8246_v36 = vld [vmem:[#allocation3 + $0x304] ss:$16 sps:$4 sm:$0xff]   ;;  %v8267_v49 = vld [vmem:[#allocation3 + $0x36c] ss:$16 sps:$4 sm:$0xff]  }
  0xe7   :  { %2599 = vmatprep.subr.bf16.mxu0 %v8151_v37  ;;  %2857 = vmatprep.subr.bf16.mxu1 %v8153_v38  ;;  %v8249_v37 = vld [vmem:[#allocation3 + $0x30c] ss:$16 sps:$4 sm:$0xff]   ;;  %v8244_v38 = vld [vmem:[#allocation3 + $0x300] ss:$16 sps:$4 sm:$0xff]  }
  0xea   :  { %2600 = vmatpush1.bf16.msra.mxu0 %v8155_v39  ;;  %2858 = vmatpush1.bf16.msra.mxu1 %v8156_v40  ;;  %v8247_v39 = vld [vmem:[#allocation3 + $0x308] ss:$16 sps:$4 sm:$0xff]   ;;  %v8252_v40 = vld [vmem:[#allocation3 + $0x324] ss:$16 sps:$4 sm:$0xff]  }
  0xeb   :  { %2601 = vmatprep.subr.bf16.mxu0 %v8157_v41  ;;  %2859 = vmatprep.subr.bf16.mxu1 %v8159_v42  ;;  %v8255_v41 = vld [vmem:[#allocation3 + $0x32c] ss:$16 sps:$4 sm:$0xff]   ;;  %v8250_v42 = vld [vmem:[#allocation3 + $0x320] ss:$16 sps:$4 sm:$0xff]  }
  0xee   :  { %2602 = vmatpush1.bf16.msra.mxu0 %v8161_v43  ;;  %2860 = vmatpush1.bf16.msra.mxu1 %v8162_v44  ;;  %v8253_v43 = vld [vmem:[#allocation3 + $0x328] ss:$16 sps:$4 sm:$0xff]   ;;  %v8258_v44 = vld [vmem:[#allocation3 + $0x344] ss:$16 sps:$4 sm:$0xff]  }
  0xef   :  { %2603 = vmatprep.subr.bf16.mxu0 %v8163_v45  ;;  %2861 = vmatprep.subr.bf16.mxu1 %v8165_v46  ;;  %v8261_v45 = vld [vmem:[#allocation3 + $0x34c] ss:$16 sps:$4 sm:$0xff]   ;;  %v8256_v46 = vld [vmem:[#allocation3 + $0x340] ss:$16 sps:$4 sm:$0xff]  }
  0xf2   :  { %2604 = vmatpush1.bf16.msra.mxu0 %v8167_v47  ;;  %2862 = vmatpush1.bf16.msra.mxu1 %v8168_v48  ;;  %v8259_v47 = vld [vmem:[#allocation3 + $0x348] ss:$16 sps:$4 sm:$0xff]   ;;  %v8264_v48 = vld [vmem:[#allocation3 + $0x364] ss:$16 sps:$4 sm:$0xff]  }
  0xf3   :  { %2605 = vmatprep.subr.bf16.mxu0 %v8169_v50  ;;  %2863 = vmatprep.subr.bf16.mxu1 %v8171_v51  ;;  %v8262_v50 = vld [vmem:[#allocation3 + $0x360] ss:$16 sps:$4 sm:$0xff]   ;;  %v8265_v51 = vld [vmem:[#allocation3 + $0x368] ss:$16 sps:$4 sm:$0xff]  }
  0xf6   :  { %2606 = vmatpush1.bf16.msra.mxu0 %v8173_v52  ;;  %2864 = vmatpush1.bf16.msra.mxu1 %v8174_v53  ;;  %v8270_v52 = vld [vmem:[#allocation3 + $0x384] ss:$16 sps:$4 sm:$0xff]   ;;  %v8273_v53 = vld [vmem:[#allocation3 + $0x38c] ss:$16 sps:$4 sm:$0xff]  }
  0xf7   :  { %2607 = vmatprep.subr.bf16.mxu0 %v8175_v54  ;;  %2865 = vmatprep.subr.bf16.mxu1 %v8177_v55  ;;  %v8268_v54 = vld [vmem:[#allocation3 + $0x380] ss:$16 sps:$4 sm:$0xff]   ;;  %v8271_v55 = vld [vmem:[#allocation3 + $0x388] ss:$16 sps:$4 sm:$0xff]  }
  0xfa   :  { %2608 = vmatpush1.bf16.msra.mxu0 %v8179_v56  ;;  %2866 = vmatpush1.bf16.msra.mxu1 %v8180_v57  ;;  %v8276_v56 = vld [vmem:[#allocation3 + $0x3a4] ss:$16 sps:$4 sm:$0xff]   ;;  %v8279_v57 = vld [vmem:[#allocation3 + $0x3ac] ss:$16 sps:$4 sm:$0xff]  }
  0xfb   :  { %2609 = vmatprep.subr.bf16.mxu0 %v8181_v58  ;;  %2867 = vmatprep.subr.bf16.mxu1 %v8183_v59  ;;  %v8274_v58 = vld [vmem:[#allocation3 + $0x3a0] ss:$16 sps:$4 sm:$0xff]   ;;  %v8277_v59 = vld [vmem:[#allocation3 + $0x3a8] ss:$16 sps:$4 sm:$0xff]  }
  0xfe   :  { %2610 = vmatpush1.bf16.msra.mxu0 %v8185_v60  ;;  %2868 = vmatpush1.bf16.msra.mxu1 %v8186_v61  ;;  %v8282_v60 = vld [vmem:[#allocation3 + $0x3c4] ss:$16 sps:$4 sm:$0xff]   ;;  %v8285_v61 = vld [vmem:[#allocation3 + $0x3cc] ss:$16 sps:$4 sm:$0xff]  }
  0xff   :  { %2611 = vmatprep.subr.bf16.mxu0 %v8187_v62  ;;  %2869 = vmatprep.subr.bf16.mxu1 %v8189_v63  ;;  %v8280_v62 = vld [vmem:[#allocation3 + $0x3c0] ss:$16 sps:$4 sm:$0xff]   ;;  %v8283_v63 = vld [vmem:[#allocation3 + $0x3c8] ss:$16 sps:$4 sm:$0xff]  }
 0x102   :  { %2612 = vmatpush1.bf16.msra.mxu0 %v8191_v0  ;;  %2870 = vmatpush1.bf16.msra.mxu1 %v8192_v1  ;;  %v8288_v0 = vld [vmem:[#allocation3 + $0x3e4] ss:$16 sps:$4 sm:$0xff]   ;;  %v8291_v1 = vld [vmem:[#allocation3 + $0x3ec] ss:$16 sps:$4 sm:$0xff]  }
 0x103   :  { %2624 = vmatprep.subr.bf16.mxu0 %v8198_v2  ;;  %2882 = vmatprep.subr.bf16.mxu1 %v8201_v3  ;;  %v8286_v2 = vld [vmem:[#allocation3 + $0x3e0] ss:$16 sps:$4 sm:$0xff]   ;;  %v8289_v3 = vld [vmem:[#allocation3 + $0x3e8] ss:$16 sps:$4 sm:$0xff]  }
 0x105   :  { %2614 = vmatmul.mubr.bf16.vlgmr.msra.gmra.mrb[0].mxu0 %v8193_v4  ;;  %2872 = vmatmul.mubr.bf16.vlgmr.msra.gmra.mrb[0].mxu1 %v8193_v4  ;;  %v8297_v4 = vld [vmem:[#allocation3 + $0x404] ss:$16 sps:$4 sm:$0xff]  }
 0x106   :  { %2625 = vmatpush1.bf16.msra.mxu0 %v8196_v5  ;;  %2883 = vmatpush1.bf16.msra.mxu1 %v8199_v6  ;;  %v8300_v5 = vld [vmem:[#allocation3 + $0x40c] ss:$16 sps:$4 sm:$0xff]   ;;  %v8292_v6 = vld [vmem:[%s10057_s0 + $0x8] ss:$48 sps:$4 sm:$0xff]  }
 0x107   :  { %2626 = vmatprep.subr.bf16.mxu0 %v8204_v7  ;;  %2884 = vmatprep.subr.bf16.mxu1 %v8207_v8  ;;  %v8295_v7 = vld [vmem:[#allocation3 + $0x400] ss:$16 sps:$4 sm:$0xff]   ;;  %v8298_v8 = vld [vmem:[#allocation3 + $0x408] ss:$16 sps:$4 sm:$0xff]  }
 0x108   :  { %2656 = vmatprep.mubr.bf16.mxu0 %v8294_v31  ;;  %2914 = vmatprep.mubr.bf16.mxu1 %v8294_v31  ;;  %v8336_v31 = vld [vmem:[#allocation3 + $0x4cc] ss:$16 sps:$4 sm:$0xff]  }
 0x10a   :  { %2627 = vmatpush1.bf16.msra.mxu0 %v8202_v9  ;;  %2885 = vmatpush1.bf16.msra.mxu1 %v8205_v10  ;;  %v8303_v9 = vld [vmem:[#allocation3 + $0x424] ss:$16 sps:$4 sm:$0xff]   ;;  %v8306_v10 = vld [vmem:[#allocation3 + $0x42c] ss:$16 sps:$4 sm:$0xff]  }
 0x10b   :  { %2628 = vmatprep.subr.bf16.mxu0 %v8210_v11  ;;  %2886 = vmatprep.subr.bf16.mxu1 %v8213_v12  ;;  %v8301_v11 = vld [vmem:[#allocation3 + $0x420] ss:$16 sps:$4 sm:$0xff]   ;;  %v8304_v12 = vld [vmem:[#allocation3 + $0x428] ss:$16 sps:$4 sm:$0xff]  }
 0x10e   :  { %2629 = vmatpush1.bf16.msra.mxu0 %v8208_v13  ;;  %2887 = vmatpush1.bf16.msra.mxu1 %v8211_v14  ;;  %v8393_v13 = vld [vmem:[%s10057_s0 + $0x14] ss:$48 sps:$4 sm:$0xff]  }
 0x10f   :  { %2630 = vmatprep.subr.bf16.mxu0 %v8216_v15  ;;  %2888 = vmatprep.subr.bf16.mxu1 %v8219_v16  ;;  %v8309_v14 = vld [vmem:[#allocation3 + $0x444] ss:$16 sps:$4 sm:$0xff]   ;;  %v8312_v15 = vld [vmem:[#allocation3 + $0x44c] ss:$16 sps:$4 sm:$0xff]   ;;  %v8307_v16 = vld [vmem:[#allocation3 + $0x440] ss:$16 sps:$4 sm:$0xff]  }
 0x112   :  { %2631 = vmatpush1.bf16.msra.mxu0 %v8214_v17  ;;  %2889 = vmatpush1.bf16.msra.mxu1 %v8217_v18  ;;  %v8310_v17 = vld [vmem:[#allocation3 + $0x448] ss:$16 sps:$4 sm:$0xff]   ;;  %v8315_v18 = vld [vmem:[#allocation3 + $0x464] ss:$16 sps:$4 sm:$0xff]  }
 0x113   :  { %2632 = vmatprep.subr.bf16.mxu0 %v8222_v19  ;;  %2890 = vmatprep.subr.bf16.mxu1 %v8225_v20  ;;  %v8318_v19 = vld [vmem:[#allocation3 + $0x46c] ss:$16 sps:$4 sm:$0xff]   ;;  %v8313_v20 = vld [vmem:[#allocation3 + $0x460] ss:$16 sps:$4 sm:$0xff]  }
 0x116   :  { %2633 = vmatpush1.bf16.msra.mxu0 %v8220_v21  ;;  %2891 = vmatpush1.bf16.msra.mxu1 %v8223_v22  ;;  %v8316_v21 = vld [vmem:[#allocation3 + $0x468] ss:$16 sps:$4 sm:$0xff]   ;;  %v8321_v22 = vld [vmem:[#allocation3 + $0x484] ss:$16 sps:$4 sm:$0xff]  }
 0x117   :  { %2634 = vmatprep.subr.bf16.mxu0 %v8228_v23  ;;  %2892 = vmatprep.subr.bf16.mxu1 %v8231_v24  ;;  %v8324_v23 = vld [vmem:[#allocation3 + $0x48c] ss:$16 sps:$4 sm:$0xff]   ;;  %v8319_v24 = vld [vmem:[#allocation3 + $0x480] ss:$16 sps:$4 sm:$0xff]  }
 0x11a   :  { %2635 = vmatpush1.bf16.msra.mxu0 %v8226_v25  ;;  %2893 = vmatpush1.bf16.msra.mxu1 %v8229_v26  ;;  %v8322_v25 = vld [vmem:[#allocation3 + $0x488] ss:$16 sps:$4 sm:$0xff]   ;;  %v8327_v26 = vld [vmem:[#allocation3 + $0x4a4] ss:$16 sps:$4 sm:$0xff]  }
 0x11b   :  { %2636 = vmatprep.subr.bf16.mxu0 %v8234_v27  ;;  %2894 = vmatprep.subr.bf16.mxu1 %v8237_v28  ;;  %v8330_v27 = vld [vmem:[#allocation3 + $0x4ac] ss:$16 sps:$4 sm:$0xff]   ;;  %v8325_v28 = vld [vmem:[#allocation3 + $0x4a0] ss:$16 sps:$4 sm:$0xff]  }
 0x11e   :  { %2637 = vmatpush1.bf16.msra.mxu0 %v8232_v29  ;;  %2895 = vmatpush1.bf16.msra.mxu1 %v8235_v30  ;;  %v8328_v29 = vld [vmem:[#allocation3 + $0x4a8] ss:$16 sps:$4 sm:$0xff]   ;;  %v8333_v30 = vld [vmem:[#allocation3 + $0x4c4] ss:$16 sps:$4 sm:$0xff]  }
 0x11f   :  { %2638 = vmatprep.subr.bf16.mxu0 %v8240_v32  ;;  %2896 = vmatprep.subr.bf16.mxu1 %v8243_v33  ;;  %v8331_v32 = vld [vmem:[#allocation3 + $0x4c0] ss:$16 sps:$4 sm:$0xff]   ;;  %v8334_v33 = vld [vmem:[#allocation3 + $0x4c8] ss:$16 sps:$4 sm:$0xff]  }
 0x122   :  { %2639 = vmatpush1.bf16.msra.mxu0 %v8238_v34  ;;  %2897 = vmatpush1.bf16.msra.mxu1 %v8241_v35  ;;  %v8339_v34 = vld [vmem:[#allocation3 + $0x4e4] ss:$16 sps:$4 sm:$0xff]   ;;  %v8342_v35 = vld [vmem:[#allocation3 + $0x4ec] ss:$16 sps:$4 sm:$0xff]  }
 0x123   :  { %2640 = vmatprep.subr.bf16.mxu0 %v8246_v36  ;;  %2898 = vmatprep.subr.bf16.mxu1 %v8249_v37  ;;  %v8337_v36 = vld [vmem:[#allocation3 + $0x4e0] ss:$16 sps:$4 sm:$0xff]   ;;  %v8340_v37 = vld [vmem:[#allocation3 + $0x4e8] ss:$16 sps:$4 sm:$0xff]  }
 0x126   :  { %2641 = vmatpush1.bf16.msra.mxu0 %v8244_v38  ;;  %2899 = vmatpush1.bf16.msra.mxu1 %v8247_v39  ;;  %v8345_v38 = vld [vmem:[#allocation3 + $0x504] ss:$16 sps:$4 sm:$0xff]   ;;  %v8348_v39 = vld [vmem:[#allocation3 + $0x50c] ss:$16 sps:$4 sm:$0xff]  }
 0x127   :  { %2642 = vmatprep.subr.bf16.mxu0 %v8252_v40  ;;  %2900 = vmatprep.subr.bf16.mxu1 %v8255_v41  ;;  %v8343_v40 = vld [vmem:[#allocation3 + $0x500] ss:$16 sps:$4 sm:$0xff]   ;;  %v8346_v41 = vld [vmem:[#allocation3 + $0x508] ss:$16 sps:$4 sm:$0xff]  }
 0x12a   :  { %2643 = vmatpush1.bf16.msra.mxu0 %v8250_v42  ;;  %2901 = vmatpush1.bf16.msra.mxu1 %v8253_v43  ;;  %v8351_v42 = vld [vmem:[#allocation3 + $0x524] ss:$16 sps:$4 sm:$0xff]   ;;  %v8354_v43 = vld [vmem:[#allocation3 + $0x52c] ss:$16 sps:$4 sm:$0xff]  }
 0x12b   :  { %2644 = vmatprep.subr.bf16.mxu0 %v8258_v44  ;;  %2902 = vmatprep.subr.bf16.mxu1 %v8261_v45  ;;  %v8349_v44 = vld [vmem:[#allocation3 + $0x520] ss:$16 sps:$4 sm:$0xff]   ;;  %v8352_v45 = vld [vmem:[#allocation3 + $0x528] ss:$16 sps:$4 sm:$0xff]  }
 0x12e   :  { %2645 = vmatpush1.bf16.msra.mxu0 %v8256_v46  ;;  %2903 = vmatpush1.bf16.msra.mxu1 %v8259_v47  ;;  %v8357_v46 = vld [vmem:[#allocation3 + $0x544] ss:$16 sps:$4 sm:$0xff]   ;;  %v8360_v47 = vld [vmem:[#allocation3 + $0x54c] ss:$16 sps:$4 sm:$0xff]  }
 0x12f   :  { %2646 = vmatprep.subr.bf16.mxu0 %v8264_v48  ;;  %2904 = vmatprep.subr.bf16.mxu1 %v8267_v49  ;;  %v8355_v48 = vld [vmem:[#allocation3 + $0x540] ss:$16 sps:$4 sm:$0xff]   ;;  %v8358_v49 = vld [vmem:[#allocation3 + $0x548] ss:$16 sps:$4 sm:$0xff]  }
 0x132   :  { %2647 = vmatpush1.bf16.msra.mxu0 %v8262_v50  ;;  %2905 = vmatpush1.bf16.msra.mxu1 %v8265_v51  ;;  %v8363_v50 = vld [vmem:[#allocation3 + $0x564] ss:$16 sps:$4 sm:$0xff]   ;;  %v8366_v51 = vld [vmem:[#allocation3 + $0x56c] ss:$16 sps:$4 sm:$0xff]  }
 0x133   :  { %2648 = vmatprep.subr.bf16.mxu0 %v8270_v52  ;;  %2906 = vmatprep.subr.bf16.mxu1 %v8273_v53  ;;  %v8361_v52 = vld [vmem:[#allocation3 + $0x560] ss:$16 sps:$4 sm:$0xff]   ;;  %v8364_v53 = vld [vmem:[#allocation3 + $0x568] ss:$16 sps:$4 sm:$0xff]  }
 0x136   :  { %2649 = vmatpush1.bf16.msra.mxu0 %v8268_v54  ;;  %2907 = vmatpush1.bf16.msra.mxu1 %v8271_v55  ;;  %v8369_v54 = vld [vmem:[#allocation3 + $0x584] ss:$16 sps:$4 sm:$0xff]   ;;  %v8372_v55 = vld [vmem:[#allocation3 + $0x58c] ss:$16 sps:$4 sm:$0xff]  }
 0x137   :  { %2650 = vmatprep.subr.bf16.mxu0 %v8276_v56  ;;  %2908 = vmatprep.subr.bf16.mxu1 %v8279_v57  ;;  %v8367_v56 = vld [vmem:[#allocation3 + $0x580] ss:$16 sps:$4 sm:$0xff]   ;;  %v8370_v57 = vld [vmem:[#allocation3 + $0x588] ss:$16 sps:$4 sm:$0xff]  }
 0x13a   :  { %2651 = vmatpush1.bf16.msra.mxu0 %v8274_v58  ;;  %2909 = vmatpush1.bf16.msra.mxu1 %v8277_v59  ;;  %v8375_v58 = vld [vmem:[#allocation3 + $0x5a4] ss:$16 sps:$4 sm:$0xff]   ;;  %v8378_v59 = vld [vmem:[#allocation3 + $0x5ac] ss:$16 sps:$4 sm:$0xff]  }
 0x13b   :  { %2652 = vmatprep.subr.bf16.mxu0 %v8282_v60  ;;  %2910 = vmatprep.subr.bf16.mxu1 %v8285_v61  ;;  %v8373_v60 = vld [vmem:[#allocation3 + $0x5a0] ss:$16 sps:$4 sm:$0xff]   ;;  %v8376_v61 = vld [vmem:[#allocation3 + $0x5a8] ss:$16 sps:$4 sm:$0xff]  }
 0x13e   :  { %2653 = vmatpush1.bf16.msra.mxu0 %v8280_v62  ;;  %2911 = vmatpush1.bf16.msra.mxu1 %v8283_v63  ;;  %v8381_v62 = vld [vmem:[#allocation3 + $0x5c4] ss:$16 sps:$4 sm:$0xff]   ;;  %v8384_v63 = vld [vmem:[#allocation3 + $0x5cc] ss:$16 sps:$4 sm:$0xff]  }
 0x13f   :  { %2654 = vmatprep.subr.bf16.mxu0 %v8288_v0  ;;  %2912 = vmatprep.subr.bf16.mxu1 %v8291_v1  ;;  %v8379_v0 = vld [vmem:[#allocation3 + $0x5c0] ss:$16 sps:$4 sm:$0xff]   ;;  %v8382_v1 = vld [vmem:[#allocation3 + $0x5c8] ss:$16 sps:$4 sm:$0xff]  }
 0x142   :  { %2655 = vmatpush1.bf16.msra.mxu0 %v8286_v2  ;;  %2913 = vmatpush1.bf16.msra.mxu1 %v8289_v3  ;;  %v8387_v2 = vld [vmem:[#allocation3 + $0x5e4] ss:$16 sps:$4 sm:$0xff]   ;;  %v8390_v3 = vld [vmem:[#allocation3 + $0x5ec] ss:$16 sps:$4 sm:$0xff]  }
 0x143   :  { %2667 = vmatprep.subr.bf16.mxu0 %v8297_v4  ;;  %2925 = vmatprep.subr.bf16.mxu1 %v8300_v5  ;;  %v8385_v4 = vld [vmem:[#allocation3 + $0x5e0] ss:$16 sps:$4 sm:$0xff]   ;;  %v8388_v5 = vld [vmem:[#allocation3 + $0x5e8] ss:$16 sps:$4 sm:$0xff]  }
 0x145   :  { %2657 = vmatmul.mubr.bf16.vlgmr.msra.gmra.mrb[0].mxu0 %v8292_v6  ;;  %2915 = vmatmul.mubr.bf16.vlgmr.msra.gmra.mrb[0].mxu1 %v8292_v6  ;;  %v8396_v6 = vld [vmem:[#allocation3 + $0x604] ss:$16 sps:$4 sm:$0xff]  }
 0x146   :  { %2668 = vmatpush1.bf16.msra.mxu0 %v8295_v7  ;;  %2926 = vmatpush1.bf16.msra.mxu1 %v8298_v8  ;;  %v8399_v7 = vld [vmem:[#allocation3 + $0x60c] ss:$16 sps:$4 sm:$0xff]  }
 0x147   :  { %2669 = vmatprep.subr.bf16.mxu0 %v8303_v9  ;;  %2927 = vmatprep.subr.bf16.mxu1 %v8306_v10  ;;  %v8391_v8 = vld [vmem:[%s10057_s0 + $0x10] ss:$48 sps:$4 sm:$0xff]   ;;  %v8397_v10 = vld [vmem:[#allocation3 + $0x608] ss:$16 sps:$4 sm:$0xff]  }
 0x148   :  { %2699 = vmatprep.mubr.bf16.mxu0 %v8393_v13  ;;  %2957 = vmatprep.mubr.bf16.mxu1 %v8393_v13  ;;  %v8394_v9 = vld [vmem:[#allocation3 + $0x600] ss:$16 sps:$4 sm:$0xff]   ;;  %v8492_v13 = vld [vmem:[%s10057_s0 + $0x1c] ss:$48 sps:$4 sm:$0xff]  }
 0x14a   :  { %2670 = vmatpush1.bf16.msra.mxu0 %v8301_v11  ;;  %2928 = vmatpush1.bf16.msra.mxu1 %v8304_v12  ;;  %v8402_v11 = vld [vmem:[#allocation3 + $0x624] ss:$16 sps:$4 sm:$0xff]   ;;  %v8405_v12 = vld [vmem:[#allocation3 + $0x62c] ss:$16 sps:$4 sm:$0xff]  }
 0x14b   :  { %2671 = vmatprep.subr.bf16.mxu0 %v8309_v14  ;;  %2929 = vmatprep.subr.bf16.mxu1 %v8312_v15  ;;  %v8400_v14 = vld [vmem:[#allocation3 + $0x620] ss:$16 sps:$4 sm:$0xff]   ;;  %v8403_v15 = vld [vmem:[#allocation3 + $0x628] ss:$16 sps:$4 sm:$0xff]  }
 0x14e   :  { %2672 = vmatpush1.bf16.msra.mxu0 %v8307_v16  ;;  %2930 = vmatpush1.bf16.msra.mxu1 %v8310_v17  ;;  %v8408_v16 = vld [vmem:[#allocation3 + $0x644] ss:$16 sps:$4 sm:$0xff]   ;;  %v8411_v17 = vld [vmem:[#allocation3 + $0x64c] ss:$16 sps:$4 sm:$0xff]  }
 0x14f   :  { %2673 = vmatprep.subr.bf16.mxu0 %v8315_v18  ;;  %2931 = vmatprep.subr.bf16.mxu1 %v8318_v19  ;;  %v8406_v18 = vld [vmem:[#allocation3 + $0x640] ss:$16 sps:$4 sm:$0xff]   ;;  %v8409_v19 = vld [vmem:[#allocation3 + $0x648] ss:$16 sps:$4 sm:$0xff]  }
 0x152   :  { %2674 = vmatpush1.bf16.msra.mxu0 %v8313_v20  ;;  %2932 = vmatpush1.bf16.msra.mxu1 %v8316_v21  ;;  %v8414_v20 = vld [vmem:[#allocation3 + $0x664] ss:$16 sps:$4 sm:$0xff]   ;;  %v8417_v21 = vld [vmem:[#allocation3 + $0x66c] ss:$16 sps:$4 sm:$0xff]  }
 0x153   :  { %2675 = vmatprep.subr.bf16.mxu0 %v8321_v22  ;;  %2933 = vmatprep.subr.bf16.mxu1 %v8324_v23  ;;  %v8412_v22 = vld [vmem:[#allocation3 + $0x660] ss:$16 sps:$4 sm:$0xff]   ;;  %v8415_v23 = vld [vmem:[#allocation3 + $0x668] ss:$16 sps:$4 sm:$0xff]  }
 0x156   :  { %2676 = vmatpush1.bf16.msra.mxu0 %v8319_v24  ;;  %2934 = vmatpush1.bf16.msra.mxu1 %v8322_v25  ;;  %v8420_v24 = vld [vmem:[#allocation3 + $0x684] ss:$16 sps:$4 sm:$0xff]   ;;  %v8423_v25 = vld [vmem:[#allocation3 + $0x68c] ss:$16 sps:$4 sm:$0xff]  }
 0x157   :  { %2677 = vmatprep.subr.bf16.mxu0 %v8327_v26  ;;  %2935 = vmatprep.subr.bf16.mxu1 %v8330_v27  ;;  %v8418_v26 = vld [vmem:[#allocation3 + $0x680] ss:$16 sps:$4 sm:$0xff]   ;;  %v8421_v27 = vld [vmem:[#allocation3 + $0x688] ss:$16 sps:$4 sm:$0xff]  }
 0x15a   :  { %2678 = vmatpush1.bf16.msra.mxu0 %v8325_v28  ;;  %2936 = vmatpush1.bf16.msra.mxu1 %v8328_v29  ;;  %v8426_v28 = vld [vmem:[#allocation3 + $0x6a4] ss:$16 sps:$4 sm:$0xff]   ;;  %v8429_v29 = vld [vmem:[#allocation3 + $0x6ac] ss:$16 sps:$4 sm:$0xff]  }
 0x15b   :  { %2679 = vmatprep.subr.bf16.mxu0 %v8333_v30  ;;  %2937 = vmatprep.subr.bf16.mxu1 %v8336_v31  ;;  %v8424_v30 = vld [vmem:[#allocation3 + $0x6a0] ss:$16 sps:$4 sm:$0xff]   ;;  %v8427_v31 = vld [vmem:[#allocation3 + $0x6a8] ss:$16 sps:$4 sm:$0xff]  }
 0x15e   :  { %2680 = vmatpush1.bf16.msra.mxu0 %v8331_v32  ;;  %2938 = vmatpush1.bf16.msra.mxu1 %v8334_v33  ;;  %v8432_v32 = vld [vmem:[#allocation3 + $0x6c4] ss:$16 sps:$4 sm:$0xff]   ;;  %v8435_v33 = vld [vmem:[#allocation3 + $0x6cc] ss:$16 sps:$4 sm:$0xff]  }
 0x15f   :  { %2681 = vmatprep.subr.bf16.mxu0 %v8339_v34  ;;  %2939 = vmatprep.subr.bf16.mxu1 %v8342_v35  ;;  %v8430_v34 = vld [vmem:[#allocation3 + $0x6c0] ss:$16 sps:$4 sm:$0xff]   ;;  %v8433_v35 = vld [vmem:[#allocation3 + $0x6c8] ss:$16 sps:$4 sm:$0xff]  }
 0x162   :  { %2682 = vmatpush1.bf16.msra.mxu0 %v8337_v36  ;;  %2940 = vmatpush1.bf16.msra.mxu1 %v8340_v37  ;;  %v8438_v36 = vld [vmem:[#allocation3 + $0x6e4] ss:$16 sps:$4 sm:$0xff]   ;;  %v8441_v37 = vld [vmem:[#allocation3 + $0x6ec] ss:$16 sps:$4 sm:$0xff]  }
 0x163   :  { %2683 = vmatprep.subr.bf16.mxu0 %v8345_v38  ;;  %2941 = vmatprep.subr.bf16.mxu1 %v8348_v39  ;;  %v8436_v38 = vld [vmem:[#allocation3 + $0x6e0] ss:$16 sps:$4 sm:$0xff]   ;;  %v8439_v39 = vld [vmem:[#allocation3 + $0x6e8] ss:$16 sps:$4 sm:$0xff]  }
 0x166   :  { %2684 = vmatpush1.bf16.msra.mxu0 %v8343_v40  ;;  %2942 = vmatpush1.bf16.msra.mxu1 %v8346_v41  ;;  %v8444_v40 = vld [vmem:[#allocation3 + $0x704] ss:$16 sps:$4 sm:$0xff]   ;;  %v8447_v41 = vld [vmem:[#allocation3 + $0x70c] ss:$16 sps:$4 sm:$0xff]  }
 0x167   :  { %2685 = vmatprep.subr.bf16.mxu0 %v8351_v42  ;;  %2943 = vmatprep.subr.bf16.mxu1 %v8354_v43  ;;  %v8442_v42 = vld [vmem:[#allocation3 + $0x700] ss:$16 sps:$4 sm:$0xff]   ;;  %v8445_v43 = vld [vmem:[#allocation3 + $0x708] ss:$16 sps:$4 sm:$0xff]  }
 0x16a   :  { %2686 = vmatpush1.bf16.msra.mxu0 %v8349_v44  ;;  %2944 = vmatpush1.bf16.msra.mxu1 %v8352_v45  ;;  %v8450_v44 = vld [vmem:[#allocation3 + $0x724] ss:$16 sps:$4 sm:$0xff]   ;;  %v8453_v45 = vld [vmem:[#allocation3 + $0x72c] ss:$16 sps:$4 sm:$0xff]  }
 0x16b   :  { %2687 = vmatprep.subr.bf16.mxu0 %v8357_v46  ;;  %2945 = vmatprep.subr.bf16.mxu1 %v8360_v47  ;;  %v8448_v46 = vld [vmem:[#allocation3 + $0x720] ss:$16 sps:$4 sm:$0xff]   ;;  %v8451_v47 = vld [vmem:[#allocation3 + $0x728] ss:$16 sps:$4 sm:$0xff]  }
 0x16e   :  { %2688 = vmatpush1.bf16.msra.mxu0 %v8355_v48  ;;  %2946 = vmatpush1.bf16.msra.mxu1 %v8358_v49  ;;  %v8456_v48 = vld [vmem:[#allocation3 + $0x744] ss:$16 sps:$4 sm:$0xff]   ;;  %v8459_v49 = vld [vmem:[#allocation3 + $0x74c] ss:$16 sps:$4 sm:$0xff]  }
 0x16f   :  { %2689 = vmatprep.subr.bf16.mxu0 %v8363_v50  ;;  %2947 = vmatprep.subr.bf16.mxu1 %v8366_v51  ;;  %v8454_v50 = vld [vmem:[#allocation3 + $0x740] ss:$16 sps:$4 sm:$0xff]   ;;  %v8457_v51 = vld [vmem:[#allocation3 + $0x748] ss:$16 sps:$4 sm:$0xff]  }
 0x172   :  { %2690 = vmatpush1.bf16.msra.mxu0 %v8361_v52  ;;  %2948 = vmatpush1.bf16.msra.mxu1 %v8364_v53  ;;  %v8462_v52 = vld [vmem:[#allocation3 + $0x764] ss:$16 sps:$4 sm:$0xff]   ;;  %v8465_v53 = vld [vmem:[#allocation3 + $0x76c] ss:$16 sps:$4 sm:$0xff]  }
 0x173   :  { %2691 = vmatprep.subr.bf16.mxu0 %v8369_v54  ;;  %2949 = vmatprep.subr.bf16.mxu1 %v8372_v55  ;;  %v8460_v54 = vld [vmem:[#allocation3 + $0x760] ss:$16 sps:$4 sm:$0xff]   ;;  %v8463_v55 = vld [vmem:[#allocation3 + $0x768] ss:$16 sps:$4 sm:$0xff]  }
 0x176   :  { %2692 = vmatpush1.bf16.msra.mxu0 %v8367_v56  ;;  %2950 = vmatpush1.bf16.msra.mxu1 %v8370_v57  ;;  %v8468_v56 = vld [vmem:[#allocation3 + $0x784] ss:$16 sps:$4 sm:$0xff]   ;;  %v8471_v57 = vld [vmem:[#allocation3 + $0x78c] ss:$16 sps:$4 sm:$0xff]  }
 0x177   :  { %2693 = vmatprep.subr.bf16.mxu0 %v8375_v58  ;;  %2951 = vmatprep.subr.bf16.mxu1 %v8378_v59  ;;  %v8466_v58 = vld [vmem:[#allocation3 + $0x780] ss:$16 sps:$4 sm:$0xff]   ;;  %v8469_v59 = vld [vmem:[#allocation3 + $0x788] ss:$16 sps:$4 sm:$0xff]  }
 0x17a   :  { %2694 = vmatpush1.bf16.msra.mxu0 %v8373_v60  ;;  %2952 = vmatpush1.bf16.msra.mxu1 %v8376_v61  ;;  %v8474_v60 = vld [vmem:[#allocation3 + $0x7a4] ss:$16 sps:$4 sm:$0xff]   ;;  %v8477_v61 = vld [vmem:[#allocation3 + $0x7ac] ss:$16 sps:$4 sm:$0xff]  }
 0x17b   :  { %2695 = vmatprep.subr.bf16.mxu0 %v8381_v62  ;;  %2953 = vmatprep.subr.bf16.mxu1 %v8384_v63  ;;  %v8472_v62 = vld [vmem:[#allocation3 + $0x7a0] ss:$16 sps:$4 sm:$0xff]   ;;  %v8475_v63 = vld [vmem:[#allocation3 + $0x7a8] ss:$16 sps:$4 sm:$0xff]  }
 0x17e   :  { %2696 = vmatpush1.bf16.msra.mxu0 %v8379_v0  ;;  %2954 = vmatpush1.bf16.msra.mxu1 %v8382_v1  ;;  %v8480_v0 = vld [vmem:[#allocation3 + $0x7c4] ss:$16 sps:$4 sm:$0xff]   ;;  %v8483_v1 = vld [vmem:[#allocation3 + $0x7cc] ss:$16 sps:$4 sm:$0xff]  }
 0x17f   :  { %2697 = vmatprep.subr.bf16.mxu0 %v8387_v2  ;;  %2955 = vmatprep.subr.bf16.mxu1 %v8390_v3  ;;  %v8478_v2 = vld [vmem:[#allocation3 + $0x7c0] ss:$16 sps:$4 sm:$0xff]   ;;  %v8481_v3 = vld [vmem:[#allocation3 + $0x7c8] ss:$16 sps:$4 sm:$0xff]  }
 0x182   :  { %2698 = vmatpush1.bf16.msra.mxu0 %v8385_v4  ;;  %2956 = vmatpush1.bf16.msra.mxu1 %v8388_v5  ;;  %v8486_v4 = vld [vmem:[#allocation3 + $0x7e4] ss:$16 sps:$4 sm:$0xff]   ;;  %v8489_v5 = vld [vmem:[#allocation3 + $0x7ec] ss:$16 sps:$4 sm:$0xff]  }
 0x183   :  { %2710 = vmatprep.subr.bf16.mxu0 %v8396_v6  ;;  %2968 = vmatprep.subr.bf16.mxu1 %v8399_v7  ;;  %v8484_v6 = vld [vmem:[#allocation3 + $0x7e0] ss:$16 sps:$4 sm:$0xff]   ;;  %v8487_v7 = vld [vmem:[#allocation3 + $0x7e8] ss:$16 sps:$4 sm:$0xff]  }
 0x185   :  { %2700 = vmatmul.mubr.bf16.vlgmr.msra.gmra.mrb[0].mxu0 %v8391_v8  ;;  %2958 = vmatmul.mubr.bf16.vlgmr.msra.gmra.mrb[0].mxu1 %v8391_v8  ;;  %v8495_v8 = vld [vmem:[#allocation3 + $0x804] ss:$16 sps:$4 sm:$0xff]  }
 0x186   :  { %2711 = vmatpush1.bf16.msra.mxu0 %v8394_v9  ;;  %2969 = vmatpush1.bf16.msra.mxu1 %v8397_v10  ;;  %v8498_v9 = vld [vmem:[#allocation3 + $0x80c] ss:$16 sps:$4 sm:$0xff]   ;;  %v8490_v10 = vld [vmem:[%s10057_s0 + $0x18] ss:$48 sps:$4 sm:$0xff]  }
 0x187   :  { %2712 = vmatprep.subr.bf16.mxu0 %v8402_v11  ;;  %2970 = vmatprep.subr.bf16.mxu1 %v8405_v12  ;;  %v8493_v11 = vld [vmem:[#allocation3 + $0x800] ss:$16 sps:$4 sm:$0xff]   ;;  %v8496_v12 = vld [vmem:[#allocation3 + $0x808] ss:$16 sps:$4 sm:$0xff]  }
 0x188   :  { %2742 = vmatprep.mubr.bf16.mxu0 %v8492_v13  ;;  %3000 = vmatprep.mubr.bf16.mxu1 %v8492_v13  ;;  %v8501_v13 = vld [vmem:[#allocation3 + $0x824] ss:$16 sps:$4 sm:$0xff]  }
 0x18a   :  { %2713 = vmatpush1.bf16.msra.mxu0 %v8400_v14  ;;  %2971 = vmatpush1.bf16.msra.mxu1 %v8403_v15  ;;  %v8504_v14 = vld [vmem:[#allocation3 + $0x82c] ss:$16 sps:$4 sm:$0xff]   ;;  %v8591_v15 = vld [vmem:[%s10057_s0 + $0x24] ss:$48 sps:$4 sm:$0xff]  }
 0x18b   :  { %2714 = vmatprep.subr.bf16.mxu0 %v8408_v16  ;;  %2972 = vmatprep.subr.bf16.mxu1 %v8411_v17  ;;  %v8499_v16 = vld [vmem:[#allocation3 + $0x820] ss:$16 sps:$4 sm:$0xff]   ;;  %v8502_v17 = vld [vmem:[#allocation3 + $0x828] ss:$16 sps:$4 sm:$0xff]  }
 0x18e   :  { %2715 = vmatpush1.bf16.msra.mxu0 %v8406_v18  ;;  %2973 = vmatpush1.bf16.msra.mxu1 %v8409_v19  ;;  %v8507_v18 = vld [vmem:[#allocation3 + $0x844] ss:$16 sps:$4 sm:$0xff]   ;;  %v8510_v19 = vld [vmem:[#allocation3 + $0x84c] ss:$16 sps:$4 sm:$0xff]  }
 0x18f   :  { %2716 = vmatprep.subr.bf16.mxu0 %v8414_v20  ;;  %2974 = vmatprep.subr.bf16.mxu1 %v8417_v21  ;;  %v8505_v20 = vld [vmem:[#allocation3 + $0x840] ss:$16 sps:$4 sm:$0xff]   ;;  %v8508_v21 = vld [vmem:[#allocation3 + $0x848] ss:$16 sps:$4 sm:$0xff]  }
 0x192   :  { %2717 = vmatpush1.bf16.msra.mxu0 %v8412_v22  ;;  %2975 = vmatpush1.bf16.msra.mxu1 %v8415_v23  ;;  %v8513_v22 = vld [vmem:[#allocation3 + $0x864] ss:$16 sps:$4 sm:$0xff]   ;;  %v8516_v23 = vld [vmem:[#allocation3 + $0x86c] ss:$16 sps:$4 sm:$0xff]  }
 0x193   :  { %2718 = vmatprep.subr.bf16.mxu0 %v8420_v24  ;;  %2976 = vmatprep.subr.bf16.mxu1 %v8423_v25  ;;  %v8511_v24 = vld [vmem:[#allocation3 + $0x860] ss:$16 sps:$4 sm:$0xff]   ;;  %v8514_v25 = vld [vmem:[#allocation3 + $0x868] ss:$16 sps:$4 sm:$0xff]  }
 0x196   :  { %2719 = vmatpush1.bf16.msra.mxu0 %v8418_v26  ;;  %2977 = vmatpush1.bf16.msra.mxu1 %v8421_v27  ;;  %v8519_v26 = vld [vmem:[#allocation3 + $0x884] ss:$16 sps:$4 sm:$0xff]   ;;  %v8522_v27 = vld [vmem:[#allocation3 + $0x88c] ss:$16 sps:$4 sm:$0xff]  }
 0x197   :  { %2720 = vmatprep.subr.bf16.mxu0 %v8426_v28  ;;  %2978 = vmatprep.subr.bf16.mxu1 %v8429_v29  ;;  %v8517_v28 = vld [vmem:[#allocation3 + $0x880] ss:$16 sps:$4 sm:$0xff]   ;;  %v8520_v29 = vld [vmem:[#allocation3 + $0x888] ss:$16 sps:$4 sm:$0xff]  }
 0x19a   :  { %2721 = vmatpush1.bf16.msra.mxu0 %v8424_v30  ;;  %2979 = vmatpush1.bf16.msra.mxu1 %v8427_v31  ;;  %v8525_v30 = vld [vmem:[#allocation3 + $0x8a4] ss:$16 sps:$4 sm:$0xff]   ;;  %v8528_v31 = vld [vmem:[#allocation3 + $0x8ac] ss:$16 sps:$4 sm:$0xff]  }
 0x19b   :  { %2722 = vmatprep.subr.bf16.mxu0 %v8432_v32  ;;  %2980 = vmatprep.subr.bf16.mxu1 %v8435_v33  ;;  %v8523_v32 = vld [vmem:[#allocation3 + $0x8a0] ss:$16 sps:$4 sm:$0xff]   ;;  %v8526_v33 = vld [vmem:[#allocation3 + $0x8a8] ss:$16 sps:$4 sm:$0xff]  }
 0x19e   :  { %2723 = vmatpush1.bf16.msra.mxu0 %v8430_v34  ;;  %2981 = vmatpush1.bf16.msra.mxu1 %v8433_v35  ;;  %v8531_v34 = vld [vmem:[#allocation3 + $0x8c4] ss:$16 sps:$4 sm:$0xff]   ;;  %v8534_v35 = vld [vmem:[#allocation3 + $0x8cc] ss:$16 sps:$4 sm:$0xff]  }
 0x19f   :  { %2724 = vmatprep.subr.bf16.mxu0 %v8438_v36  ;;  %2982 = vmatprep.subr.bf16.mxu1 %v8441_v37  ;;  %v8529_v36 = vld [vmem:[#allocation3 + $0x8c0] ss:$16 sps:$4 sm:$0xff]   ;;  %v8532_v37 = vld [vmem:[#allocation3 + $0x8c8] ss:$16 sps:$4 sm:$0xff]  }
 0x1a2   :  { %2725 = vmatpush1.bf16.msra.mxu0 %v8436_v38  ;;  %2983 = vmatpush1.bf16.msra.mxu1 %v8439_v39  ;;  %v8537_v38 = vld [vmem:[#allocation3 + $0x8e4] ss:$16 sps:$4 sm:$0xff]   ;;  %v8540_v39 = vld [vmem:[#allocation3 + $0x8ec] ss:$16 sps:$4 sm:$0xff]  }
 0x1a3   :  { %2726 = vmatprep.subr.bf16.mxu0 %v8444_v40  ;;  %2984 = vmatprep.subr.bf16.mxu1 %v8447_v41  ;;  %v8535_v40 = vld [vmem:[#allocation3 + $0x8e0] ss:$16 sps:$4 sm:$0xff]   ;;  %v8538_v41 = vld [vmem:[#allocation3 + $0x8e8] ss:$16 sps:$4 sm:$0xff]  }
 0x1a6   :  { %2727 = vmatpush1.bf16.msra.mxu0 %v8442_v42  ;;  %2985 = vmatpush1.bf16.msra.mxu1 %v8445_v43  ;;  %v8543_v42 = vld [vmem:[#allocation3 + $0x904] ss:$16 sps:$4 sm:$0xff]   ;;  %v8546_v43 = vld [vmem:[#allocation3 + $0x90c] ss:$16 sps:$4 sm:$0xff]  }
 0x1a7   :  { %2728 = vmatprep.subr.bf16.mxu0 %v8450_v44  ;;  %2986 = vmatprep.subr.bf16.mxu1 %v8453_v45  ;;  %v8541_v44 = vld [vmem:[#allocation3 + $0x900] ss:$16 sps:$4 sm:$0xff]   ;;  %v8544_v45 = vld [vmem:[#allocation3 + $0x908] ss:$16 sps:$4 sm:$0xff]  }
 0x1aa   :  { %2729 = vmatpush1.bf16.msra.mxu0 %v8448_v46  ;;  %2987 = vmatpush1.bf16.msra.mxu1 %v8451_v47  ;;  %v8549_v46 = vld [vmem:[#allocation3 + $0x924] ss:$16 sps:$4 sm:$0xff]   ;;  %v8552_v47 = vld [vmem:[#allocation3 + $0x92c] ss:$16 sps:$4 sm:$0xff]  }
 0x1ab   :  { %2730 = vmatprep.subr.bf16.mxu0 %v8456_v48  ;;  %2988 = vmatprep.subr.bf16.mxu1 %v8459_v49  ;;  %v8547_v48 = vld [vmem:[#allocation3 + $0x920] ss:$16 sps:$4 sm:$0xff]   ;;  %v8550_v49 = vld [vmem:[#allocation3 + $0x928] ss:$16 sps:$4 sm:$0xff]  }
 0x1ae   :  { %2731 = vmatpush1.bf16.msra.mxu0 %v8454_v50  ;;  %2989 = vmatpush1.bf16.msra.mxu1 %v8457_v51  ;;  %v8555_v50 = vld [vmem:[#allocation3 + $0x944] ss:$16 sps:$4 sm:$0xff]   ;;  %v8558_v51 = vld [vmem:[#allocation3 + $0x94c] ss:$16 sps:$4 sm:$0xff]  }
 0x1af   :  { %2732 = vmatprep.subr.bf16.mxu0 %v8462_v52  ;;  %2990 = vmatprep.subr.bf16.mxu1 %v8465_v53  ;;  %v8553_v52 = vld [vmem:[#allocation3 + $0x940] ss:$16 sps:$4 sm:$0xff]   ;;  %v8556_v53 = vld [vmem:[#allocation3 + $0x948] ss:$16 sps:$4 sm:$0xff]  }
 0x1b2   :  { %2733 = vmatpush1.bf16.msra.mxu0 %v8460_v54  ;;  %2991 = vmatpush1.bf16.msra.mxu1 %v8463_v55  ;;  %v8561_v54 = vld [vmem:[#allocation3 + $0x964] ss:$16 sps:$4 sm:$0xff]   ;;  %v8564_v55 = vld [vmem:[#allocation3 + $0x96c] ss:$16 sps:$4 sm:$0xff]  }
 0x1b3   :  { %2734 = vmatprep.subr.bf16.mxu0 %v8468_v56  ;;  %2992 = vmatprep.subr.bf16.mxu1 %v8471_v57  ;;  %v8559_v56 = vld [vmem:[#allocation3 + $0x960] ss:$16 sps:$4 sm:$0xff]   ;;  %v8562_v57 = vld [vmem:[#allocation3 + $0x968] ss:$16 sps:$4 sm:$0xff]  }
 0x1b6   :  { %2735 = vmatpush1.bf16.msra.mxu0 %v8466_v58  ;;  %2993 = vmatpush1.bf16.msra.mxu1 %v8469_v59  ;;  %v8567_v58 = vld [vmem:[#allocation3 + $0x984] ss:$16 sps:$4 sm:$0xff]   ;;  %v8570_v59 = vld [vmem:[#allocation3 + $0x98c] ss:$16 sps:$4 sm:$0xff]  }
 0x1b7   :  { %2736 = vmatprep.subr.bf16.mxu0 %v8474_v60  ;;  %2994 = vmatprep.subr.bf16.mxu1 %v8477_v61  ;;  %v8565_v60 = vld [vmem:[#allocation3 + $0x980] ss:$16 sps:$4 sm:$0xff]   ;;  %v8568_v61 = vld [vmem:[#allocation3 + $0x988] ss:$16 sps:$4 sm:$0xff]  }
 0x1ba   :  { %2737 = vmatpush1.bf16.msra.mxu0 %v8472_v62  ;;  %2995 = vmatpush1.bf16.msra.mxu1 %v8475_v63  ;;  %v8573_v62 = vld [vmem:[#allocation3 + $0x9a4] ss:$16 sps:$4 sm:$0xff]   ;;  %v8576_v63 = vld [vmem:[#allocation3 + $0x9ac] ss:$16 sps:$4 sm:$0xff]  }
 0x1bb   :  { %2738 = vmatprep.subr.bf16.mxu0 %v8480_v0  ;;  %2996 = vmatprep.subr.bf16.mxu1 %v8483_v1  ;;  %v8571_v0 = vld [vmem:[#allocation3 + $0x9a0] ss:$16 sps:$4 sm:$0xff]   ;;  %v8574_v1 = vld [vmem:[#allocation3 + $0x9a8] ss:$16 sps:$4 sm:$0xff]  }
 0x1be   :  { %2739 = vmatpush1.bf16.msra.mxu0 %v8478_v2  ;;  %2997 = vmatpush1.bf16.msra.mxu1 %v8481_v3  ;;  %v8579_v2 = vld [vmem:[#allocation3 + $0x9c4] ss:$16 sps:$4 sm:$0xff]   ;;  %v8582_v3 = vld [vmem:[#allocation3 + $0x9cc] ss:$16 sps:$4 sm:$0xff]  }
 0x1bf   :  { %2740 = vmatprep.subr.bf16.mxu0 %v8486_v4  ;;  %2998 = vmatprep.subr.bf16.mxu1 %v8489_v5  ;;  %v8577_v4 = vld [vmem:[#allocation3 + $0x9c0] ss:$16 sps:$4 sm:$0xff]   ;;  %v8580_v5 = vld [vmem:[#allocation3 + $0x9c8] ss:$16 sps:$4 sm:$0xff]  }
 0x1c2   :  { %2741 = vmatpush1.bf16.msra.mxu0 %v8484_v6  ;;  %2999 = vmatpush1.bf16.msra.mxu1 %v8487_v7  ;;  %v8585_v6 = vld [vmem:[#allocation3 + $0x9e4] ss:$16 sps:$4 sm:$0xff]   ;;  %v8588_v7 = vld [vmem:[#allocation3 + $0x9ec] ss:$16 sps:$4 sm:$0xff]  }
 0x1c3   :  { %2753 = vmatprep.subr.bf16.mxu0 %v8495_v8  ;;  %3011 = vmatprep.subr.bf16.mxu1 %v8498_v9  ;;  %v8583_v8 = vld [vmem:[#allocation3 + $0x9e0] ss:$16 sps:$4 sm:$0xff]   ;;  %v8586_v9 = vld [vmem:[#allocation3 + $0x9e8] ss:$16 sps:$4 sm:$0xff]  }
 0x1c5   :  { %2743 = vmatmul.mubr.bf16.vlgmr.msra.gmra.mrb[0].mxu0 %v8490_v10  ;;  %3001 = vmatmul.mubr.bf16.vlgmr.msra.gmra.mrb[0].mxu1 %v8490_v10  ;;  %v8594_v10 = vld [vmem:[#allocation3 + $0xa04] ss:$16 sps:$4 sm:$0xff]  }
 0x1c6   :  { %2754 = vmatpush1.bf16.msra.mxu0 %v8493_v11  ;;  %3012 = vmatpush1.bf16.msra.mxu1 %v8496_v12  ;;  %v8597_v11 = vld [vmem:[#allocation3 + $0xa0c] ss:$16 sps:$4 sm:$0xff]  }
 0x1c7   :  { %2755 = vmatprep.subr.bf16.mxu0 %v8501_v13  ;;  %3013 = vmatprep.subr.bf16.mxu1 %v8504_v14  ;;  %v8589_v12 = vld [vmem:[%s10057_s0 + $0x20] ss:$48 sps:$4 sm:$0xff]   ;;  %v8595_v14 = vld [vmem:[#allocation3 + $0xa08] ss:$16 sps:$4 sm:$0xff]  }
 0x1c8   :  { %2785 = vmatprep.mubr.bf16.mxu0 %v8591_v15  ;;  %3043 = vmatprep.mubr.bf16.mxu1 %v8591_v15  ;;  %v8592_v13 = vld [vmem:[#allocation3 + $0xa00] ss:$16 sps:$4 sm:$0xff]   ;;  %v8600_v15 = vld [vmem:[#allocation3 + $0xa24] ss:$16 sps:$4 sm:$0xff]  }
 0x1ca   :  { %2756 = vmatpush1.bf16.msra.mxu0 %v8499_v16  ;;  %3014 = vmatpush1.bf16.msra.mxu1 %v8502_v17  ;;  %v8603_v16 = vld [vmem:[#allocation3 + $0xa2c] ss:$16 sps:$4 sm:$0xff]  }
 0x1cb   :  { %2757 = vmatprep.subr.bf16.mxu0 %v8507_v18  ;;  %3015 = vmatprep.subr.bf16.mxu1 %v8510_v19  ;;  %v8690_v17 = vld [vmem:[%s10057_s0 + $0x2c] ss:$48 sps:$4 sm:$0xff]   ;;  %v8598_v18 = vld [vmem:[#allocation3 + $0xa20] ss:$16 sps:$4 sm:$0xff]  }
 0x1cc   :  { %v8601_v19 = vld [vmem:[#allocation3 + $0xa28] ss:$16 sps:$4 sm:$0xff]  }
 0x1ce   :  { %2758 = vmatpush1.bf16.msra.mxu0 %v8505_v20  ;;  %3016 = vmatpush1.bf16.msra.mxu1 %v8508_v21  ;;  %v8606_v20 = vld [vmem:[#allocation3 + $0xa44] ss:$16 sps:$4 sm:$0xff]   ;;  %v8609_v21 = vld [vmem:[#allocation3 + $0xa4c] ss:$16 sps:$4 sm:$0xff]  }
 0x1cf   :  { %2759 = vmatprep.subr.bf16.mxu0 %v8513_v22  ;;  %3017 = vmatprep.subr.bf16.mxu1 %v8516_v23  ;;  %v8604_v22 = vld [vmem:[#allocation3 + $0xa40] ss:$16 sps:$4 sm:$0xff]   ;;  %v8607_v23 = vld [vmem:[#allocation3 + $0xa48] ss:$16 sps:$4 sm:$0xff]  }
 0x1d2   :  { %2760 = vmatpush1.bf16.msra.mxu0 %v8511_v24  ;;  %3018 = vmatpush1.bf16.msra.mxu1 %v8514_v25  ;;  %v8612_v24 = vld [vmem:[#allocation3 + $0xa64] ss:$16 sps:$4 sm:$0xff]   ;;  %v8615_v25 = vld [vmem:[#allocation3 + $0xa6c] ss:$16 sps:$4 sm:$0xff]  }
 0x1d3   :  { %2761 = vmatprep.subr.bf16.mxu0 %v8519_v26  ;;  %3019 = vmatprep.subr.bf16.mxu1 %v8522_v27  ;;  %v8610_v26 = vld [vmem:[#allocation3 + $0xa60] ss:$16 sps:$4 sm:$0xff]   ;;  %v8613_v27 = vld [vmem:[#allocation3 + $0xa68] ss:$16 sps:$4 sm:$0xff]  }
 0x1d6   :  { %2762 = vmatpush1.bf16.msra.mxu0 %v8517_v28  ;;  %3020 = vmatpush1.bf16.msra.mxu1 %v8520_v29  ;;  %v8618_v28 = vld [vmem:[#allocation3 + $0xa84] ss:$16 sps:$4 sm:$0xff]   ;;  %v8621_v29 = vld [vmem:[#allocation3 + $0xa8c] ss:$16 sps:$4 sm:$0xff]  }
 0x1d7   :  { %2763 = vmatprep.subr.bf16.mxu0 %v8525_v30  ;;  %3021 = vmatprep.subr.bf16.mxu1 %v8528_v31  ;;  %v8616_v30 = vld [vmem:[#allocation3 + $0xa80] ss:$16 sps:$4 sm:$0xff]   ;;  %v8619_v31 = vld [vmem:[#allocation3 + $0xa88] ss:$16 sps:$4 sm:$0xff]  }
 0x1da   :  { %2764 = vmatpush1.bf16.msra.mxu0 %v8523_v32  ;;  %3022 = vmatpush1.bf16.msra.mxu1 %v8526_v33  ;;  %v8624_v32 = vld [vmem:[#allocation3 + $0xaa4] ss:$16 sps:$4 sm:$0xff]   ;;  %v8627_v33 = vld [vmem:[#allocation3 + $0xaac] ss:$16 sps:$4 sm:$0xff]  }
 0x1db   :  { %2765 = vmatprep.subr.bf16.mxu0 %v8531_v34  ;;  %3023 = vmatprep.subr.bf16.mxu1 %v8534_v35  ;;  %v8622_v34 = vld [vmem:[#allocation3 + $0xaa0] ss:$16 sps:$4 sm:$0xff]   ;;  %v8625_v35 = vld [vmem:[#allocation3 + $0xaa8] ss:$16 sps:$4 sm:$0xff]  }
 0x1de   :  { %2766 = vmatpush1.bf16.msra.mxu0 %v8529_v36  ;;  %3024 = vmatpush1.bf16.msra.mxu1 %v8532_v37  ;;  %v8630_v36 = vld [vmem:[#allocation3 + $0xac4] ss:$16 sps:$4 sm:$0xff]   ;;  %v8633_v37 = vld [vmem:[#allocation3 + $0xacc] ss:$16 sps:$4 sm:$0xff]  }
 0x1df   :  { %2767 = vmatprep.subr.bf16.mxu0 %v8537_v38  ;;  %3025 = vmatprep.subr.bf16.mxu1 %v8540_v39  ;;  %v8628_v38 = vld [vmem:[#allocation3 + $0xac0] ss:$16 sps:$4 sm:$0xff]   ;;  %v8631_v39 = vld [vmem:[#allocation3 + $0xac8] ss:$16 sps:$4 sm:$0xff]  }
 0x1e2   :  { %2768 = vmatpush1.bf16.msra.mxu0 %v8535_v40  ;;  %3026 = vmatpush1.bf16.msra.mxu1 %v8538_v41  ;;  %v8636_v40 = vld [vmem:[#allocation3 + $0xae4] ss:$16 sps:$4 sm:$0xff]   ;;  %v8639_v41 = vld [vmem:[#allocation3 + $0xaec] ss:$16 sps:$4 sm:$0xff]  }
 0x1e3   :  { %2769 = vmatprep.subr.bf16.mxu0 %v8543_v42  ;;  %3027 = vmatprep.subr.bf16.mxu1 %v8546_v43  ;;  %v8634_v42 = vld [vmem:[#allocation3 + $0xae0] ss:$16 sps:$4 sm:$0xff]   ;;  %v8637_v43 = vld [vmem:[#allocation3 + $0xae8] ss:$16 sps:$4 sm:$0xff]  }
 0x1e6   :  { %2770 = vmatpush1.bf16.msra.mxu0 %v8541_v44  ;;  %3028 = vmatpush1.bf16.msra.mxu1 %v8544_v45  ;;  %v8642_v44 = vld [vmem:[#allocation3 + $0xb04] ss:$16 sps:$4 sm:$0xff]   ;;  %v8645_v45 = vld [vmem:[#allocation3 + $0xb0c] ss:$16 sps:$4 sm:$0xff]  }
 0x1e7   :  { %2771 = vmatprep.subr.bf16.mxu0 %v8549_v46  ;;  %3029 = vmatprep.subr.bf16.mxu1 %v8552_v47  ;;  %v8640_v46 = vld [vmem:[#allocation3 + $0xb00] ss:$16 sps:$4 sm:$0xff]   ;;  %v8643_v47 = vld [vmem:[#allocation3 + $0xb08] ss:$16 sps:$4 sm:$0xff]  }
 0x1ea   :  { %2772 = vmatpush1.bf16.msra.mxu0 %v8547_v48  ;;  %3030 = vmatpush1.bf16.msra.mxu1 %v8550_v49  ;;  %v8648_v48 = vld [vmem:[#allocation3 + $0xb24] ss:$16 sps:$4 sm:$0xff]   ;;  %v8651_v49 = vld [vmem:[#allocation3 + $0xb2c] ss:$16 sps:$4 sm:$0xff]  }
 0x1eb   :  { %2773 = vmatprep.subr.bf16.mxu0 %v8555_v50  ;;  %3031 = vmatprep.subr.bf16.mxu1 %v8558_v51  ;;  %v8646_v50 = vld [vmem:[#allocation3 + $0xb20] ss:$16 sps:$4 sm:$0xff]   ;;  %v8649_v51 = vld [vmem:[#allocation3 + $0xb28] ss:$16 sps:$4 sm:$0xff]  }
 0x1ee   :  { %2774 = vmatpush1.bf16.msra.mxu0 %v8553_v52  ;;  %3032 = vmatpush1.bf16.msra.mxu1 %v8556_v53  ;;  %v8654_v52 = vld [vmem:[#allocation3 + $0xb44] ss:$16 sps:$4 sm:$0xff]   ;;  %v8657_v53 = vld [vmem:[#allocation3 + $0xb4c] ss:$16 sps:$4 sm:$0xff]  }
 0x1ef   :  { %2775 = vmatprep.subr.bf16.mxu0 %v8561_v54  ;;  %3033 = vmatprep.subr.bf16.mxu1 %v8564_v55  ;;  %v8652_v54 = vld [vmem:[#allocation3 + $0xb40] ss:$16 sps:$4 sm:$0xff]   ;;  %v8655_v55 = vld [vmem:[#allocation3 + $0xb48] ss:$16 sps:$4 sm:$0xff]  }
 0x1f2   :  { %2776 = vmatpush1.bf16.msra.mxu0 %v8559_v56  ;;  %3034 = vmatpush1.bf16.msra.mxu1 %v8562_v57  ;;  %v8660_v56 = vld [vmem:[#allocation3 + $0xb64] ss:$16 sps:$4 sm:$0xff]   ;;  %v8663_v57 = vld [vmem:[#allocation3 + $0xb6c] ss:$16 sps:$4 sm:$0xff]  }
 0x1f3   :  { %2777 = vmatprep.subr.bf16.mxu0 %v8567_v58  ;;  %3035 = vmatprep.subr.bf16.mxu1 %v8570_v59  ;;  %v8658_v58 = vld [vmem:[#allocation3 + $0xb60] ss:$16 sps:$4 sm:$0xff]   ;;  %v8661_v59 = vld [vmem:[#allocation3 + $0xb68] ss:$16 sps:$4 sm:$0xff]  }
 0x1f6   :  { %2778 = vmatpush1.bf16.msra.mxu0 %v8565_v60  ;;  %3036 = vmatpush1.bf16.msra.mxu1 %v8568_v61  ;;  %v8666_v60 = vld [vmem:[#allocation3 + $0xb84] ss:$16 sps:$4 sm:$0xff]   ;;  %v8669_v61 = vld [vmem:[#allocation3 + $0xb8c] ss:$16 sps:$4 sm:$0xff]  }
 0x1f7   :  { %2779 = vmatprep.subr.bf16.mxu0 %v8573_v62  ;;  %3037 = vmatprep.subr.bf16.mxu1 %v8576_v63  ;;  %v8664_v62 = vld [vmem:[#allocation3 + $0xb80] ss:$16 sps:$4 sm:$0xff]   ;;  %v8667_v63 = vld [vmem:[#allocation3 + $0xb88] ss:$16 sps:$4 sm:$0xff]  }
 0x1fa   :  { %2780 = vmatpush1.bf16.msra.mxu0 %v8571_v0  ;;  %3038 = vmatpush1.bf16.msra.mxu1 %v8574_v1  ;;  %v8672_v0 = vld [vmem:[#allocation3 + $0xba4] ss:$16 sps:$4 sm:$0xff]   ;;  %v8675_v1 = vld [vmem:[#allocation3 + $0xbac] ss:$16 sps:$4 sm:$0xff]  }
 0x1fb   :  { %2781 = vmatprep.subr.bf16.mxu0 %v8579_v2  ;;  %3039 = vmatprep.subr.bf16.mxu1 %v8582_v3  ;;  %v8670_v2 = vld [vmem:[#allocation3 + $0xba0] ss:$16 sps:$4 sm:$0xff]   ;;  %v8673_v3 = vld [vmem:[#allocation3 + $0xba8] ss:$16 sps:$4 sm:$0xff]  }
 0x1fe   :  { %2782 = vmatpush1.bf16.msra.mxu0 %v8577_v4  ;;  %3040 = vmatpush1.bf16.msra.mxu1 %v8580_v5  ;;  %v8678_v4 = vld [vmem:[#allocation3 + $0xbc4] ss:$16 sps:$4 sm:$0xff]   ;;  %v8681_v5 = vld [vmem:[#allocation3 + $0xbcc] ss:$16 sps:$4 sm:$0xff]  }
 0x1ff   :  { %2783 = vmatprep.subr.bf16.mxu0 %v8585_v6  ;;  %3041 = vmatprep.subr.bf16.mxu1 %v8588_v7  ;;  %v8676_v6 = vld [vmem:[#allocation3 + $0xbc0] ss:$16 sps:$4 sm:$0xff]   ;;  %v8679_v7 = vld [vmem:[#allocation3 + $0xbc8] ss:$16 sps:$4 sm:$0xff]  }
 0x202   :  { %2784 = vmatpush1.bf16.msra.mxu0 %v8583_v8  ;;  %3042 = vmatpush1.bf16.msra.mxu1 %v8586_v9  ;;  %v8684_v8 = vld [vmem:[#allocation3 + $0xbe4] ss:$16 sps:$4 sm:$0xff]   ;;  %v8687_v9 = vld [vmem:[#allocation3 + $0xbec] ss:$16 sps:$4 sm:$0xff]  }
 0x203   :  { %2796 = vmatprep.subr.bf16.mxu0 %v8594_v10  ;;  %3054 = vmatprep.subr.bf16.mxu1 %v8597_v11  ;;  %v8682_v10 = vld [vmem:[#allocation3 + $0xbe0] ss:$16 sps:$4 sm:$0xff]   ;;  %v8685_v11 = vld [vmem:[#allocation3 + $0xbe8] ss:$16 sps:$4 sm:$0xff]  }
 0x205   :  { %2786 = vmatmul.mubr.bf16.vlgmr.msra.gmra.mrb[0].mxu0 %v8589_v12  ;;  %3044 = vmatmul.mubr.bf16.vlgmr.msra.gmra.mrb[0].mxu1 %v8589_v12  ;;  %v8693_v12 = vld [vmem:[#allocation7 + $0x4] ss:$16 sps:$4 sm:$0xff]  }
 0x206   :  { %2797 = vmatpush1.bf16.msra.mxu0 %v8592_v13  ;;  %3055 = vmatpush1.bf16.msra.mxu1 %v8595_v14  ;;  %v8696_v13 = vld [vmem:[#allocation7 + $0xc] ss:$16 sps:$4 sm:$0xff]   ;;  %v8688_v14 = vld [vmem:[%s10057_s0 + $0x28] ss:$48 sps:$4 sm:$0xff]  }
 0x207   :  { %2798 = vmatprep.subr.bf16.mxu0 %v8600_v15  ;;  %3056 = vmatprep.subr.bf16.mxu1 %v8603_v16  ;;  %v8691_v15 = vld [vmem:[#allocation7] ss:$16 sps:$4 sm:$0xff]   ;;  %v8694_v16 = vld [vmem:[#allocation7 + $0x8] ss:$16 sps:$4 sm:$0xff]  }
 0x208   :  { %2828 = vmatprep.mubr.bf16.mxu0 %v8690_v17  ;;  %3086 = vmatprep.mubr.bf16.mxu1 %v8690_v17  ;;  %v8699_v17 = vld [vmem:[#allocation7 + $0x24] ss:$16 sps:$4 sm:$0xff]  }
 0x20a   :  { %2799 = vmatpush1.bf16.msra.mxu0 %v8598_v18  ;;  %3057 = vmatpush1.bf16.msra.mxu1 %v8601_v19  ;;  %v8702_v18 = vld [vmem:[#allocation7 + $0x2c] ss:$16 sps:$4 sm:$0xff]   ;;  %v8697_v19 = vld [vmem:[#allocation7 + $0x20] ss:$16 sps:$4 sm:$0xff]  }
 0x20b   :  { %2800 = vmatprep.subr.bf16.mxu0 %v8606_v20  ;;  %3058 = vmatprep.subr.bf16.mxu1 %v8609_v21  ;;  %v8700_v20 = vld [vmem:[#allocation7 + $0x28] ss:$16 sps:$4 sm:$0xff]   ;;  %v8705_v21 = vld [vmem:[#allocation7 + $0x44] ss:$16 sps:$4 sm:$0xff]  }
 0x20e   :  { %2801 = vmatpush1.bf16.msra.mxu0 %v8604_v22  ;;  %3059 = vmatpush1.bf16.msra.mxu1 %v8607_v23  ;;  %v8708_v22 = vld [vmem:[#allocation7 + $0x4c] ss:$16 sps:$4 sm:$0xff]   ;;  %v8703_v23 = vld [vmem:[#allocation7 + $0x40] ss:$16 sps:$4 sm:$0xff]  }
 0x20f   :  { %2802 = vmatprep.subr.bf16.mxu0 %v8612_v24  ;;  %3060 = vmatprep.subr.bf16.mxu1 %v8615_v25  ;;  %v8706_v24 = vld [vmem:[#allocation7 + $0x48] ss:$16 sps:$4 sm:$0xff]   ;;  %v8711_v25 = vld [vmem:[#allocation7 + $0x64] ss:$16 sps:$4 sm:$0xff]  }
 0x212   :  { %2803 = vmatpush1.bf16.msra.mxu0 %v8610_v26  ;;  %3061 = vmatpush1.bf16.msra.mxu1 %v8613_v27  ;;  %v8714_v26 = vld [vmem:[#allocation7 + $0x6c] ss:$16 sps:$4 sm:$0xff]   ;;  %v8709_v27 = vld [vmem:[#allocation7 + $0x60] ss:$16 sps:$4 sm:$0xff]  }
 0x213   :  { %2804 = vmatprep.subr.bf16.mxu0 %v8618_v28  ;;  %3062 = vmatprep.subr.bf16.mxu1 %v8621_v29  ;;  %v8712_v28 = vld [vmem:[#allocation7 + $0x68] ss:$16 sps:$4 sm:$0xff]   ;;  %v8717_v29 = vld [vmem:[#allocation7 + $0x84] ss:$16 sps:$4 sm:$0xff]  }
 0x216   :  { %2805 = vmatpush1.bf16.msra.mxu0 %v8616_v30  ;;  %3063 = vmatpush1.bf16.msra.mxu1 %v8619_v31  ;;  %v8720_v30 = vld [vmem:[#allocation7 + $0x8c] ss:$16 sps:$4 sm:$0xff]   ;;  %v8715_v31 = vld [vmem:[#allocation7 + $0x80] ss:$16 sps:$4 sm:$0xff]  }
 0x217   :  { %2806 = vmatprep.subr.bf16.mxu0 %v8624_v32  ;;  %3064 = vmatprep.subr.bf16.mxu1 %v8627_v33  ;;  %v8718_v32 = vld [vmem:[#allocation7 + $0x88] ss:$16 sps:$4 sm:$0xff]   ;;  %v8723_v33 = vld [vmem:[#allocation7 + $0xa4] ss:$16 sps:$4 sm:$0xff]  }
 0x21a   :  { %2807 = vmatpush1.bf16.msra.mxu0 %v8622_v34  ;;  %3065 = vmatpush1.bf16.msra.mxu1 %v8625_v35  ;;  %v8726_v34 = vld [vmem:[#allocation7 + $0xac] ss:$16 sps:$4 sm:$0xff]   ;;  %v8721_v35 = vld [vmem:[#allocation7 + $0xa0] ss:$16 sps:$4 sm:$0xff]  }
 0x21b   :  { %2808 = vmatprep.subr.bf16.mxu0 %v8630_v36  ;;  %3066 = vmatprep.subr.bf16.mxu1 %v8633_v37  ;;  %v8724_v36 = vld [vmem:[#allocation7 + $0xa8] ss:$16 sps:$4 sm:$0xff]   ;;  %v8729_v37 = vld [vmem:[#allocation7 + $0xc4] ss:$16 sps:$4 sm:$0xff]  }
 0x21e   :  { %2809 = vmatpush1.bf16.msra.mxu0 %v8628_v38  ;;  %3067 = vmatpush1.bf16.msra.mxu1 %v8631_v39  ;;  %v8732_v38 = vld [vmem:[#allocation7 + $0xcc] ss:$16 sps:$4 sm:$0xff]   ;;  %v8727_v39 = vld [vmem:[#allocation7 + $0xc0] ss:$16 sps:$4 sm:$0xff]  }
 0x21f   :  { %2810 = vmatprep.subr.bf16.mxu0 %v8636_v40  ;;  %3068 = vmatprep.subr.bf16.mxu1 %v8639_v41  ;;  %v8730_v40 = vld [vmem:[#allocation7 + $0xc8] ss:$16 sps:$4 sm:$0xff]   ;;  %v8735_v41 = vld [vmem:[#allocation7 + $0xe4] ss:$16 sps:$4 sm:$0xff]  }
 0x222   :  { %2811 = vmatpush1.bf16.msra.mxu0 %v8634_v42  ;;  %3069 = vmatpush1.bf16.msra.mxu1 %v8637_v43  ;;  %v8738_v42 = vld [vmem:[#allocation7 + $0xec] ss:$16 sps:$4 sm:$0xff]   ;;  %v8733_v43 = vld [vmem:[#allocation7 + $0xe0] ss:$16 sps:$4 sm:$0xff]  }
 0x223   :  { %2812 = vmatprep.subr.bf16.mxu0 %v8642_v44  ;;  %3070 = vmatprep.subr.bf16.mxu1 %v8645_v45  ;;  %v8736_v44 = vld [vmem:[#allocation7 + $0xe8] ss:$16 sps:$4 sm:$0xff]   ;;  %v8741_v45 = vld [vmem:[#allocation7 + $0x104] ss:$16 sps:$4 sm:$0xff]  }
 0x226   :  { %2813 = vmatpush1.bf16.msra.mxu0 %v8640_v46  ;;  %3071 = vmatpush1.bf16.msra.mxu1 %v8643_v47  ;;  %v8744_v46 = vld [vmem:[#allocation7 + $0x10c] ss:$16 sps:$4 sm:$0xff]   ;;  %v8739_v47 = vld [vmem:[#allocation7 + $0x100] ss:$16 sps:$4 sm:$0xff]  }
 0x227   :  { %2814 = vmatprep.subr.bf16.mxu0 %v8648_v48  ;;  %3072 = vmatprep.subr.bf16.mxu1 %v8651_v49  ;;  %v8742_v48 = vld [vmem:[#allocation7 + $0x108] ss:$16 sps:$4 sm:$0xff]   ;;  %v8747_v49 = vld [vmem:[#allocation7 + $0x124] ss:$16 sps:$4 sm:$0xff]  }
 0x22a   :  { %2815 = vmatpush1.bf16.msra.mxu0 %v8646_v50  ;;  %3073 = vmatpush1.bf16.msra.mxu1 %v8649_v51  ;;  %v8750_v50 = vld [vmem:[#allocation7 + $0x12c] ss:$16 sps:$4 sm:$0xff]   ;;  %v8745_v51 = vld [vmem:[#allocation7 + $0x120] ss:$16 sps:$4 sm:$0xff]  }
 0x22b   :  { %2816 = vmatprep.subr.bf16.mxu0 %v8654_v52  ;;  %3074 = vmatprep.subr.bf16.mxu1 %v8657_v53  ;;  %v8748_v52 = vld [vmem:[#allocation7 + $0x128] ss:$16 sps:$4 sm:$0xff]   ;;  %v8753_v53 = vld [vmem:[#allocation7 + $0x144] ss:$16 sps:$4 sm:$0xff]  }
 0x22e   :  { %2817 = vmatpush1.bf16.msra.mxu0 %v8652_v54  ;;  %3075 = vmatpush1.bf16.msra.mxu1 %v8655_v55  ;;  %v8756_v54 = vld [vmem:[#allocation7 + $0x14c] ss:$16 sps:$4 sm:$0xff]   ;;  %v8751_v55 = vld [vmem:[#allocation7 + $0x140] ss:$16 sps:$4 sm:$0xff]  }
 0x22f   :  { %2818 = vmatprep.subr.bf16.mxu0 %v8660_v56  ;;  %3076 = vmatprep.subr.bf16.mxu1 %v8663_v57  ;;  %v8754_v56 = vld [vmem:[#allocation7 + $0x148] ss:$16 sps:$4 sm:$0xff]   ;;  %v8759_v57 = vld [vmem:[#allocation7 + $0x164] ss:$16 sps:$4 sm:$0xff]  }
 0x232   :  { %2819 = vmatpush1.bf16.msra.mxu0 %v8658_v58  ;;  %3077 = vmatpush1.bf16.msra.mxu1 %v8661_v59  ;;  %v8762_v58 = vld [vmem:[#allocation7 + $0x16c] ss:$16 sps:$4 sm:$0xff]   ;;  %v8757_v59 = vld [vmem:[#allocation7 + $0x160] ss:$16 sps:$4 sm:$0xff]  }
 0x233   :  { %2820 = vmatprep.subr.bf16.mxu0 %v8666_v60  ;;  %3078 = vmatprep.subr.bf16.mxu1 %v8669_v61  ;;  %v8760_v60 = vld [vmem:[#allocation7 + $0x168] ss:$16 sps:$4 sm:$0xff]   ;;  %v8765_v61 = vld [vmem:[#allocation7 + $0x184] ss:$16 sps:$4 sm:$0xff]  }
 0x236   :  { %2821 = vmatpush1.bf16.msra.mxu0 %v8664_v62  ;;  %3079 = vmatpush1.bf16.msra.mxu1 %v8667_v63  ;;  %v8768_v62 = vld [vmem:[#allocation7 + $0x18c] ss:$16 sps:$4 sm:$0xff]   ;;  %v8763_v63 = vld [vmem:[#allocation7 + $0x180] ss:$16 sps:$4 sm:$0xff]  }
 0x237   :  { %2822 = vmatprep.subr.bf16.mxu0 %v8672_v0  ;;  %3080 = vmatprep.subr.bf16.mxu1 %v8675_v1  ;;  %v8766_v0 = vld [vmem:[#allocation7 + $0x188] ss:$16 sps:$4 sm:$0xff]   ;;  %v8771_v1 = vld [vmem:[#allocation7 + $0x1a4] ss:$16 sps:$4 sm:$0xff]  }
 0x23a   :  { %2823 = vmatpush1.bf16.msra.mxu0 %v8670_v2  ;;  %3081 = vmatpush1.bf16.msra.mxu1 %v8673_v3  ;;  %v8774_v2 = vld [vmem:[#allocation7 + $0x1ac] ss:$16 sps:$4 sm:$0xff]   ;;  %v8769_v3 = vld [vmem:[#allocation7 + $0x1a0] ss:$16 sps:$4 sm:$0xff]  }
 0x23b   :  { %2824 = vmatprep.subr.bf16.mxu0 %v8678_v4  ;;  %3082 = vmatprep.subr.bf16.mxu1 %v8681_v5  ;;  %v8772_v4 = vld [vmem:[#allocation7 + $0x1a8] ss:$16 sps:$4 sm:$0xff]   ;;  %v8777_v5 = vld [vmem:[#allocation7 + $0x1c4] ss:$16 sps:$4 sm:$0xff]  }
 0x23e   :  { %2825 = vmatpush1.bf16.msra.mxu0 %v8676_v6  ;;  %3083 = vmatpush1.bf16.msra.mxu1 %v8679_v7  ;;  %v8780_v6 = vld [vmem:[#allocation7 + $0x1cc] ss:$16 sps:$4 sm:$0xff]   ;;  %v8775_v7 = vld [vmem:[#allocation7 + $0x1c0] ss:$16 sps:$4 sm:$0xff]  }
 0x23f   :  { %2826 = vmatprep.subr.bf16.mxu0 %v8684_v8  ;;  %3084 = vmatprep.subr.bf16.mxu1 %v8687_v9  ;;  %v8778_v8 = vld [vmem:[#allocation7 + $0x1c8] ss:$16 sps:$4 sm:$0xff]   ;;  %v8783_v9 = vld [vmem:[#allocation7 + $0x1e4] ss:$16 sps:$4 sm:$0xff]  }
 0x242   :  { %2827 = vmatpush1.bf16.msra.mxu0 %v8682_v10  ;;  %3085 = vmatpush1.bf16.msra.mxu1 %v8685_v11  ;;  %v8786_v10 = vld [vmem:[#allocation7 + $0x1ec] ss:$16 sps:$4 sm:$0xff]   ;;  %v8781_v11 = vld [vmem:[#allocation7 + $0x1e0] ss:$16 sps:$4 sm:$0xff]  }
 0x243   :  { %3899 = vmatprep.subr.bf16.mxu0 %v8693_v12  ;;  %3985 = vmatprep.subr.bf16.mxu1 %v8696_v13  ;;  %v8784_v12 = vld [vmem:[#allocation7 + $0x1e8] ss:$16 sps:$4 sm:$0xff]   ;;  %v8789_v13 = vld [vmem:[#allocation7 + $0x204] ss:$16 sps:$4 sm:$0xff]  }
 0x245   :  { %2829 = vmatmul.mubr.bf16.vlgmr.msra.gmra.mrb[0].mxu0 %v8688_v14  ;;  %3087 = vmatmul.mubr.bf16.vlgmr.msra.gmra.mrb[0].mxu1 %v8688_v14  ;;  %v8792_v14 = vld [vmem:[#allocation7 + $0x20c] ss:$16 sps:$4 sm:$0xff]  }
 0x246   :  { %3900 = vmatpush1.bf16.msra.mxu0 %v8691_v15  ;;  %3986 = vmatpush1.bf16.msra.mxu1 %v8694_v16  ;;  %v581_v15 = vlaneseq }
 0x247   :  { %3901 = vmatprep.subr.bf16.mxu0 %v8699_v17  ;;  %3987 = vmatprep.subr.bf16.mxu1 %v8702_v18 }
 0x248   :  { %v582_v16 = vshrl.u32 %v581_v15, 7  ;;  %v8826_v15 = vld [vmem:[#allocation7 + $0x2c8] ss:$16 sps:$4 sm:$0xff]  }
 0x24a   :  { %3902 = vmatpush1.bf16.msra.mxu0 %v8697_v19  ;;  %3988 = vmatpush1.bf16.msra.mxu1 %v8700_v20  ;;  %v10003_v17 = vsub.s32 0, %v582_v16  ;;  %v10005_v18 = vsub.s32 2, %v582_v16  ;;  %v579_v19 = vld [vmem:[#allocation5] sm:$0xf]  ;;  %v10007_v20 = vsub.s32 1, %v582_v16 }
 0x24b   :  { %3903 = vmatprep.subr.bf16.mxu0 %v8705_v21  ;;  %3989 = vmatprep.subr.bf16.mxu1 %v8708_v22  ;;  %v10009_v21 = vsub.s32 3, %v582_v16  ;;  %v8831_v16 = vld [vmem:[#allocation7 + $0x2e4] ss:$16 sps:$4 sm:$0xff]  }
 0x24c   :  { %v584_v22 = vrot.slane %v579_v19, %v10003_v17 }
 0x24e   :  { %3904 = vmatpush1.bf16.msra.mxu0 %v8703_v23  ;;  %3990 = vmatpush1.bf16.msra.mxu1 %v8706_v24  ;;  %v592_v23 = vrot.slane %v579_v19, %v10005_v18  ;;  %v588_v24 = vrot.slane %v579_v19, %v10007_v20 }
 0x24f   :  { %3905 = vmatprep.subr.bf16.mxu0 %v8711_v25  ;;  %3991 = vmatprep.subr.bf16.mxu1 %v8714_v26  ;;  %v596_v25 = vrot.slane %v579_v19, %v10009_v21  ;;  %v8834_v19 = vld [vmem:[#allocation7 + $0x2ec] ss:$16 sps:$4 sm:$0xff]  }
 0x252   :  { %3906 = vmatpush1.bf16.msra.mxu0 %v8709_v27  ;;  %3992 = vmatpush1.bf16.msra.mxu1 %v8712_v28 }
 0x253   :  { %3907 = vmatprep.subr.bf16.mxu0 %v8717_v29  ;;  %3993 = vmatprep.subr.bf16.mxu1 %v8720_v30 }
 0x256   :  { %3908 = vmatpush1.bf16.msra.mxu0 %v8715_v31  ;;  %3994 = vmatpush1.bf16.msra.mxu1 %v8718_v32 }
 0x257   :  { %3909 = vmatprep.subr.bf16.mxu0 %v8723_v33  ;;  %3995 = vmatprep.subr.bf16.mxu1 %v8726_v34 }
 0x25a   :  { %3910 = vmatpush1.bf16.msra.mxu0 %v8721_v35  ;;  %3996 = vmatpush1.bf16.msra.mxu1 %v8724_v36 }
 0x25b   :  { %3911 = vmatprep.subr.bf16.mxu0 %v8729_v37  ;;  %3997 = vmatprep.subr.bf16.mxu1 %v8732_v38 }
 0x25e   :  { %3912 = vmatpush1.bf16.msra.mxu0 %v8727_v39  ;;  %3998 = vmatpush1.bf16.msra.mxu1 %v8730_v40 }
 0x25f   :  { %3913 = vmatprep.subr.bf16.mxu0 %v8735_v41  ;;  %3999 = vmatprep.subr.bf16.mxu1 %v8738_v42 }
 0x262   :  { %3914 = vmatpush1.bf16.msra.mxu0 %v8733_v43  ;;  %4000 = vmatpush1.bf16.msra.mxu1 %v8736_v44 }
 0x263   :  { %3915 = vmatprep.subr.bf16.mxu0 %v8741_v45  ;;  %4001 = vmatprep.subr.bf16.mxu1 %v8744_v46 }
 0x266   :  { %3916 = vmatpush1.bf16.msra.mxu0 %v8739_v47  ;;  %4002 = vmatpush1.bf16.msra.mxu1 %v8742_v48 }
 0x267   :  { %3917 = vmatprep.subr.bf16.mxu0 %v8747_v49  ;;  %4003 = vmatprep.subr.bf16.mxu1 %v8750_v50 }
 0x26a   :  { %3918 = vmatpush1.bf16.msra.mxu0 %v8745_v51  ;;  %4004 = vmatpush1.bf16.msra.mxu1 %v8748_v52 }
 0x26b   :  { %3919 = vmatprep.subr.bf16.mxu0 %v8753_v53  ;;  %4005 = vmatprep.subr.bf16.mxu1 %v8756_v54  ;;  %v8787_v54 = vld [vmem:[#allocation7 + $0x200] ss:$16 sps:$4 sm:$0xff]  }
 0x26e   :  { %3920 = vmatpush1.bf16.msra.mxu0 %v8751_v55  ;;  %4006 = vmatpush1.bf16.msra.mxu1 %v8754_v56  ;;  %v8790_v55 = vld [vmem:[#allocation7 + $0x208] ss:$16 sps:$4 sm:$0xff]   ;;  %v8795_v56 = vld [vmem:[#allocation7 + $0x224] ss:$16 sps:$4 sm:$0xff]  }
 0x26f   :  { %3921 = vmatprep.subr.bf16.mxu0 %v8759_v57  ;;  %4007 = vmatprep.subr.bf16.mxu1 %v8762_v58  ;;  %v8798_v57 = vld [vmem:[#allocation7 + $0x22c] ss:$16 sps:$4 sm:$0xff]   ;;  %v8793_v58 = vld [vmem:[#allocation7 + $0x220] ss:$16 sps:$4 sm:$0xff]  }
 0x272   :  { %3922 = vmatpush1.bf16.msra.mxu0 %v8757_v59  ;;  %4008 = vmatpush1.bf16.msra.mxu1 %v8760_v60  ;;  %v8796_v59 = vld [vmem:[#allocation7 + $0x228] ss:$16 sps:$4 sm:$0xff]   ;;  %v8801_v60 = vld [vmem:[#allocation7 + $0x244] ss:$16 sps:$4 sm:$0xff]  }
 0x273   :  { %3923 = vmatprep.subr.bf16.mxu0 %v8765_v61  ;;  %4009 = vmatprep.subr.bf16.mxu1 %v8768_v62  ;;  %v8804_v61 = vld [vmem:[#allocation7 + $0x24c] ss:$16 sps:$4 sm:$0xff]   ;;  %v8799_v62 = vld [vmem:[#allocation7 + $0x240] ss:$16 sps:$4 sm:$0xff]  }
 0x276   :  { %3924 = vmatpush1.bf16.msra.mxu0 %v8763_v63  ;;  %4010 = vmatpush1.bf16.msra.mxu1 %v8766_v0  ;;  %v8802_v63 = vld [vmem:[#allocation7 + $0x248] ss:$16 sps:$4 sm:$0xff]   ;;  %v8807_v0 = vld [vmem:[#allocation7 + $0x264] ss:$16 sps:$4 sm:$0xff]  }
 0x277   :  { %3925 = vmatprep.subr.bf16.mxu0 %v8771_v1  ;;  %4011 = vmatprep.subr.bf16.mxu1 %v8774_v2  ;;  %v8810_v1 = vld [vmem:[#allocation7 + $0x26c] ss:$16 sps:$4 sm:$0xff]   ;;  %v8805_v2 = vld [vmem:[#allocation7 + $0x260] ss:$16 sps:$4 sm:$0xff]  }
 0x27a   :  { %3926 = vmatpush1.bf16.msra.mxu0 %v8769_v3  ;;  %4012 = vmatpush1.bf16.msra.mxu1 %v8772_v4  ;;  %v8808_v3 = vld [vmem:[#allocation7 + $0x268] ss:$16 sps:$4 sm:$0xff]   ;;  %v8813_v4 = vld [vmem:[#allocation7 + $0x284] ss:$16 sps:$4 sm:$0xff]  }
 0x27b   :  { %3927 = vmatprep.subr.bf16.mxu0 %v8777_v5  ;;  %4013 = vmatprep.subr.bf16.mxu1 %v8780_v6  ;;  %v8816_v5 = vld [vmem:[#allocation7 + $0x28c] ss:$16 sps:$4 sm:$0xff]   ;;  %v8811_v6 = vld [vmem:[#allocation7 + $0x280] ss:$16 sps:$4 sm:$0xff]  }
 0x27e   :  { %3928 = vmatpush1.bf16.msra.mxu0 %v8775_v7  ;;  %4014 = vmatpush1.bf16.msra.mxu1 %v8778_v8  ;;  %v8814_v7 = vld [vmem:[#allocation7 + $0x288] ss:$16 sps:$4 sm:$0xff]   ;;  %v8819_v8 = vld [vmem:[#allocation7 + $0x2a4] ss:$16 sps:$4 sm:$0xff]  }
 0x27f   :  { %3929 = vmatprep.subr.bf16.mxu0 %v8783_v9  ;;  %4015 = vmatprep.subr.bf16.mxu1 %v8786_v10  ;;  %v8822_v9 = vld [vmem:[#allocation7 + $0x2ac] ss:$16 sps:$4 sm:$0xff]   ;;  %v8817_v10 = vld [vmem:[#allocation7 + $0x2a0] ss:$16 sps:$4 sm:$0xff]  }
 0x282   :  { %3930 = vmatpush1.bf16.msra.mxu0 %v8781_v11  ;;  %4016 = vmatpush1.bf16.msra.mxu1 %v8784_v12  ;;  %v8820_v11 = vld [vmem:[#allocation7 + $0x2a8] ss:$16 sps:$4 sm:$0xff]   ;;  %v8825_v12 = vld [vmem:[#allocation7 + $0x2c4] ss:$16 sps:$4 sm:$0xff]  }
 0x283   :  { %3942 = vmatprep.subr.bf16.mxu0 %v8789_v13  ;;  %4028 = vmatprep.subr.bf16.mxu1 %v8792_v14  ;;  %v8828_v13 = vld [vmem:[#allocation7 + $0x2cc] ss:$16 sps:$4 sm:$0xff]   ;;  %v8823_v14 = vld [vmem:[#allocation7 + $0x2c0] ss:$16 sps:$4 sm:$0xff]  }
 0x318   :  { %v2830_v26 = vpop.f32.mrb[0].mxu0  ;;  %v3088_v27 = vpop.f32.mrb[0].mxu1 }
 0x319   :  { %v7972_v28 = vadd.f32 %v2830_v26, %v584_v22  ;;  %v7976_v29 = vadd.f32 %v3088_v27, %v592_v23  ;;  %v2832_v30 = vpop.f32.mrb[1].mxu0  ;;  %v3090_v31 = vpop.f32.mrb[1].mxu1  ;;  %v8835_v26 = vld [vmem:[#allocation7 + $0x300] ss:$16 sps:$4 sm:$0xff]   ;;  %v8838_v27 = vld [vmem:[#allocation7 + $0x308] ss:$16 sps:$4 sm:$0xff]  }
 0x31a   :  { %v7973_v32 = vadd.f32 %v2832_v30, %v588_v24  ;;  %v7977_v33 = vadd.f32 %v3090_v31, %v596_v25  ;;  %v2834_v34 = vpop.f32.mrb[2].mxu0  ;;  %v3092_v35 = vpop.f32.mrb[2].mxu1  ;;  %v8841_v30 = vld [vmem:[#allocation7 + $0x320] ss:$16 sps:$4 sm:$0xff]   ;;  %v8844_v31 = vld [vmem:[#allocation7 + $0x328] ss:$16 sps:$4 sm:$0xff]  }
 0x31b   :  { %v7974_v36 = vadd.f32 %v2834_v34, %v584_v22  ;;  %v7978_v37 = vadd.f32 %v3092_v35, %v592_v23  ;;  %v2836_v38 = vpop.f32.mrb[3].mxu0  ;;  %v3094_v39 = vpop.f32.mrb[3].mxu1  ;;  %v3097_v42 = vmax.f32 %v7972_v28, 0.0  ;;  %v3099_v43 = vmax.f32 %v7976_v29, 0.0  ;;  %v8829_v22 = vld [vmem:[#allocation7 + $0x2e0] ss:$16 sps:$4 sm:$0xff]  }
 0x31c   :  { %v7975_v40 = vadd.f32 %v2836_v38, %v588_v24  ;;  %v7979_v41 = vadd.f32 %v3094_v39, %v596_v25  ;;  %v3098_v46 = vmax.f32 %v7973_v32, 0.0  ;;  %v3100_v47 = vmax.f32 %v7977_v33, 0.0  ;;  %v8832_v23 = vld [vmem:[#allocation7 + $0x2e8] ss:$16 sps:$4 sm:$0xff]   ;;  %v8837_v24 = vld [vmem:[#allocation7 + $0x304] ss:$16 sps:$4 sm:$0xff]  }
 0x31d   :  { %v3101_v44 = vmax.f32 %v7974_v36, 0.0  ;;  %v3103_v45 = vmax.f32 %v7978_v37, 0.0  ;;  %v8840_v25 = vld [vmem:[#allocation7 + $0x30c] ss:$16 sps:$4 sm:$0xff]   ;;  %v8843_v28 = vld [vmem:[#allocation7 + $0x324] ss:$16 sps:$4 sm:$0xff]  }
 0x31e   :  { %v3102_v48 = vmax.f32 %v7975_v40, 0.0  ;;  %v3104_v49 = vmax.f32 %v7979_v41, 0.0  ;;  %v8846_v29 = vld [vmem:[#allocation7 + $0x32c] ss:$16 sps:$4 sm:$0xff]   ;;  %v8849_v32 = vld [vmem:[#allocation7 + $0x344] ss:$16 sps:$4 sm:$0xff]  }
 0x31f   :  { %v3105_v50 = vpack.c.bf16 %v3101_v44, %v3097_v42  ;;  %v10015_v51 = vpack.c.bf16 %v3103_v45, %v3099_v43  ;;  %v8852_v33 = vld [vmem:[#allocation7 + $0x34c] ss:$16 sps:$4 sm:$0xff]   ;;  %v8847_v34 = vld [vmem:[#allocation7 + $0x340] ss:$16 sps:$4 sm:$0xff]   ;;  %v8850_v35 = vld [vmem:[#allocation7 + $0x348] ss:$16 sps:$4 sm:$0xff]  }
 0x320   :  { %v3106_v52 = vpack.c.bf16 %v3102_v48, %v3098_v46  ;;  %v3108_v53 = vpack.c.bf16 %v3104_v49, %v3100_v47  ;;  %v8855_v36 = vld [vmem:[#allocation7 + $0x364] ss:$16 sps:$4 sm:$0xff]   ;;  %v8858_v37 = vld [vmem:[#allocation7 + $0x36c] ss:$16 sps:$4 sm:$0xff]   ;;  %v8853_v38 = vld [vmem:[#allocation7 + $0x360] ss:$16 sps:$4 sm:$0xff]  }
 0x321   :  { %v8856_v39 = vld [vmem:[#allocation7 + $0x368] ss:$16 sps:$4 sm:$0xff]   ;;  %v8861_v40 = vld [vmem:[#allocation7 + $0x384] ss:$16 sps:$4 sm:$0xff]   ;;  %v8864_v41 = vld [vmem:[#allocation7 + $0x38c] ss:$16 sps:$4 sm:$0xff]  }
 0x322   :  { %3931 = vmatprep.mubr.bf16.mxu0 %v3106_v52  ;;  %4017 = vmatprep.mubr.bf16.mxu1 %v3106_v52  ;;  %v8859_v42 = vld [vmem:[#allocation7 + $0x380] ss:$16 sps:$4 sm:$0xff]   ;;  %v8862_v43 = vld [vmem:[#allocation7 + $0x388] ss:$16 sps:$4 sm:$0xff]   ;;  %v8867_v44 = vld [vmem:[#allocation7 + $0x3a4] ss:$16 sps:$4 sm:$0xff]  }
 0x323   :  { %3932 = vmatmul.mubr.bf16.vlgmr.msra.gmra.mrb[4].mxu0 %v3105_v50  ;;  %4018 = vmatmul.mubr.bf16.vlgmr.msra.gmra.mrb[4].mxu1 %v3105_v50  ;;  %v8870_v45 = vld [vmem:[#allocation7 + $0x3ac] ss:$16 sps:$4 sm:$0xff]   ;;  %v8865_v46 = vld [vmem:[#allocation7 + $0x3a0] ss:$16 sps:$4 sm:$0xff]   ;;  %v8868_v47 = vld [vmem:[#allocation7 + $0x3a8] ss:$16 sps:$4 sm:$0xff]  }
 0x324   :  { %3943 = vmatpush1.bf16.msra.mxu0 %v8787_v54  ;;  %4029 = vmatpush1.bf16.msra.mxu1 %v8790_v55  ;;  %v8873_v48 = vld [vmem:[#allocation7 + $0x3c4] ss:$16 sps:$4 sm:$0xff]   ;;  %v8876_v49 = vld [vmem:[#allocation7 + $0x3cc] ss:$16 sps:$4 sm:$0xff]   ;;  %v8871_v50 = vld [vmem:[#allocation7 + $0x3c0] ss:$16 sps:$4 sm:$0xff]  }
 0x325   :  { %3974 = vmatprep.mubr.bf16.mxu0 %v3108_v53  ;;  %4060 = vmatprep.mubr.bf16.mxu1 %v3108_v53  ;;  %v8874_v52 = vld [vmem:[#allocation7 + $0x3c8] ss:$16 sps:$4 sm:$0xff]   ;;  %v8879_v53 = vld [vmem:[#allocation7 + $0x3e4] ss:$16 sps:$4 sm:$0xff]   ;;  %v8882_v54 = vld [vmem:[#allocation7 + $0x3ec] ss:$16 sps:$4 sm:$0xff]  }
 0x326   :  { %3944 = vmatprep.subr.bf16.mxu0 %v8795_v56  ;;  %4030 = vmatprep.subr.bf16.mxu1 %v8798_v57  ;;  %v8877_v55 = vld [vmem:[#allocation7 + $0x3e0] ss:$16 sps:$4 sm:$0xff]   ;;  %v8880_v56 = vld [vmem:[#allocation7 + $0x3e8] ss:$16 sps:$4 sm:$0xff]  }
 0x327   :  { %v8885_v57 = vld [vmem:[#allocation10 + $0x4] ss:$16 sps:$4 sm:$0xff]  }
 0x328   :  { %3945 = vmatpush1.bf16.msra.mxu0 %v8793_v58  ;;  %4031 = vmatpush1.bf16.msra.mxu1 %v8796_v59  ;;  %v8888_v58 = vld [vmem:[#allocation10 + $0xc] ss:$16 sps:$4 sm:$0xff]   ;;  %v8883_v59 = vld [vmem:[#allocation10] ss:$16 sps:$4 sm:$0xff]  }
 0x329   :  { %3946 = vmatprep.subr.bf16.mxu0 %v8801_v60  ;;  %4032 = vmatprep.subr.bf16.mxu1 %v8804_v61  ;;  %v8886_v60 = vld [vmem:[#allocation10 + $0x8] ss:$16 sps:$4 sm:$0xff]   ;;  %v8891_v61 = vld [vmem:[#allocation10 + $0x24] ss:$16 sps:$4 sm:$0xff]  }
 0x32c   :  { %3947 = vmatpush1.bf16.msra.mxu0 %v8799_v62  ;;  %4033 = vmatpush1.bf16.msra.mxu1 %v8802_v63  ;;  %v8894_v62 = vld [vmem:[#allocation10 + $0x2c] ss:$16 sps:$4 sm:$0xff]   ;;  %v8889_v63 = vld [vmem:[#allocation10 + $0x20] ss:$16 sps:$4 sm:$0xff]  }
 0x32d   :  { %3948 = vmatprep.subr.bf16.mxu0 %v8807_v0  ;;  %4034 = vmatprep.subr.bf16.mxu1 %v8810_v1  ;;  %v8892_v0 = vld [vmem:[#allocation10 + $0x28] ss:$16 sps:$4 sm:$0xff]   ;;  %v8897_v1 = vld [vmem:[#allocation10 + $0x44] ss:$16 sps:$4 sm:$0xff]  }
 0x330   :  { %3949 = vmatpush1.bf16.msra.mxu0 %v8805_v2  ;;  %4035 = vmatpush1.bf16.msra.mxu1 %v8808_v3  ;;  %v8900_v2 = vld [vmem:[#allocation10 + $0x4c] ss:$16 sps:$4 sm:$0xff]   ;;  %v8895_v3 = vld [vmem:[#allocation10 + $0x40] ss:$16 sps:$4 sm:$0xff]  }
 0x331   :  { %3950 = vmatprep.subr.bf16.mxu0 %v8813_v4  ;;  %4036 = vmatprep.subr.bf16.mxu1 %v8816_v5  ;;  %v8898_v4 = vld [vmem:[#allocation10 + $0x48] ss:$16 sps:$4 sm:$0xff]   ;;  %v8903_v5 = vld [vmem:[#allocation10 + $0x64] ss:$16 sps:$4 sm:$0xff]  }
 0x334   :  { %3951 = vmatpush1.bf16.msra.mxu0 %v8811_v6  ;;  %4037 = vmatpush1.bf16.msra.mxu1 %v8814_v7  ;;  %v8906_v6 = vld [vmem:[#allocation10 + $0x6c] ss:$16 sps:$4 sm:$0xff]   ;;  %v8901_v7 = vld [vmem:[#allocation10 + $0x60] ss:$16 sps:$4 sm:$0xff]  }
 0x335   :  { %3952 = vmatprep.subr.bf16.mxu0 %v8819_v8  ;;  %4038 = vmatprep.subr.bf16.mxu1 %v8822_v9  ;;  %v8909_v8 = vld [vmem:[#allocation10 + $0x84] ss:$16 sps:$4 sm:$0xff]   ;;  %v8912_v9 = vld [vmem:[#allocation10 + $0x8c] ss:$16 sps:$4 sm:$0xff]  }
 0x338   :  { %3953 = vmatpush1.bf16.msra.mxu0 %v8817_v10  ;;  %4039 = vmatpush1.bf16.msra.mxu1 %v8820_v11  ;;  %v8907_v10 = vld [vmem:[#allocation10 + $0x80] ss:$16 sps:$4 sm:$0xff]   ;;  %v8910_v11 = vld [vmem:[#allocation10 + $0x88] ss:$16 sps:$4 sm:$0xff]  }
 0x339   :  { %3954 = vmatprep.subr.bf16.mxu0 %v8825_v12  ;;  %4040 = vmatprep.subr.bf16.mxu1 %v8828_v13  ;;  %v8915_v12 = vld [vmem:[#allocation10 + $0xa4] ss:$16 sps:$4 sm:$0xff]   ;;  %v8918_v13 = vld [vmem:[#allocation10 + $0xac] ss:$16 sps:$4 sm:$0xff]  }
 0x33c   :  { %3955 = vmatpush1.bf16.msra.mxu0 %v8823_v14  ;;  %4041 = vmatpush1.bf16.msra.mxu1 %v8826_v15  ;;  %v8913_v14 = vld [vmem:[#allocation10 + $0xa0] ss:$16 sps:$4 sm:$0xff]   ;;  %v8916_v15 = vld [vmem:[#allocation10 + $0xa8] ss:$16 sps:$4 sm:$0xff]  }
 0x33d   :  { %3956 = vmatprep.subr.bf16.mxu0 %v8831_v16  ;;  %4042 = vmatprep.subr.bf16.mxu1 %v8834_v19  ;;  %v8921_v16 = vld [vmem:[#allocation10 + $0xc4] ss:$16 sps:$4 sm:$0xff]   ;;  %v8924_v19 = vld [vmem:[#allocation10 + $0xcc] ss:$16 sps:$4 sm:$0xff]  }
 0x340   :  { %3957 = vmatpush1.bf16.msra.mxu0 %v8829_v22  ;;  %4043 = vmatpush1.bf16.msra.mxu1 %v8832_v23  ;;  %v8919_v22 = vld [vmem:[#allocation10 + $0xc0] ss:$16 sps:$4 sm:$0xff]   ;;  %v8922_v23 = vld [vmem:[#allocation10 + $0xc8] ss:$16 sps:$4 sm:$0xff]  }
 0x341   :  { %3958 = vmatprep.subr.bf16.mxu0 %v8837_v24  ;;  %4044 = vmatprep.subr.bf16.mxu1 %v8840_v25  ;;  %v8927_v24 = vld [vmem:[#allocation10 + $0xe4] ss:$16 sps:$4 sm:$0xff]   ;;  %v8930_v25 = vld [vmem:[#allocation10 + $0xec] ss:$16 sps:$4 sm:$0xff]  }
 0x344   :  { %3959 = vmatpush1.bf16.msra.mxu0 %v8835_v26  ;;  %4045 = vmatpush1.bf16.msra.mxu1 %v8838_v27  ;;  %v8925_v26 = vld [vmem:[#allocation10 + $0xe0] ss:$16 sps:$4 sm:$0xff]   ;;  %v8928_v27 = vld [vmem:[#allocation10 + $0xe8] ss:$16 sps:$4 sm:$0xff]  }
 0x345   :  { %3960 = vmatprep.subr.bf16.mxu0 %v8843_v28  ;;  %4046 = vmatprep.subr.bf16.mxu1 %v8846_v29  ;;  %v8933_v28 = vld [vmem:[#allocation10 + $0x104] ss:$16 sps:$4 sm:$0xff]   ;;  %v8936_v29 = vld [vmem:[#allocation10 + $0x10c] ss:$16 sps:$4 sm:$0xff]  }
 0x348   :  { %3961 = vmatpush1.bf16.msra.mxu0 %v8841_v30  ;;  %4047 = vmatpush1.bf16.msra.mxu1 %v8844_v31  ;;  %v8931_v30 = vld [vmem:[#allocation10 + $0x100] ss:$16 sps:$4 sm:$0xff]   ;;  %v8934_v31 = vld [vmem:[#allocation10 + $0x108] ss:$16 sps:$4 sm:$0xff]  }
 0x349   :  { %3962 = vmatprep.subr.bf16.mxu0 %v8849_v32  ;;  %4048 = vmatprep.subr.bf16.mxu1 %v8852_v33  ;;  %v8939_v32 = vld [vmem:[#allocation10 + $0x124] ss:$16 sps:$4 sm:$0xff]   ;;  %v8942_v33 = vld [vmem:[#allocation10 + $0x12c] ss:$16 sps:$4 sm:$0xff]  }
 0x34c   :  { %3963 = vmatpush1.bf16.msra.mxu0 %v8847_v34  ;;  %4049 = vmatpush1.bf16.msra.mxu1 %v8850_v35  ;;  %v8937_v34 = vld [vmem:[#allocation10 + $0x120] ss:$16 sps:$4 sm:$0xff]   ;;  %v8940_v35 = vld [vmem:[#allocation10 + $0x128] ss:$16 sps:$4 sm:$0xff]  }
 0x34d   :  { %3964 = vmatprep.subr.bf16.mxu0 %v8855_v36  ;;  %4050 = vmatprep.subr.bf16.mxu1 %v8858_v37  ;;  %v8945_v36 = vld [vmem:[#allocation10 + $0x144] ss:$16 sps:$4 sm:$0xff]   ;;  %v8948_v37 = vld [vmem:[#allocation10 + $0x14c] ss:$16 sps:$4 sm:$0xff]  }
 0x350   :  { %3965 = vmatpush1.bf16.msra.mxu0 %v8853_v38  ;;  %4051 = vmatpush1.bf16.msra.mxu1 %v8856_v39  ;;  %v8943_v38 = vld [vmem:[#allocation10 + $0x140] ss:$16 sps:$4 sm:$0xff]   ;;  %v8946_v39 = vld [vmem:[#allocation10 + $0x148] ss:$16 sps:$4 sm:$0xff]  }
 0x351   :  { %3966 = vmatprep.subr.bf16.mxu0 %v8861_v40  ;;  %4052 = vmatprep.subr.bf16.mxu1 %v8864_v41  ;;  %v8951_v40 = vld [vmem:[#allocation10 + $0x164] ss:$16 sps:$4 sm:$0xff]   ;;  %v8954_v41 = vld [vmem:[#allocation10 + $0x16c] ss:$16 sps:$4 sm:$0xff]  }
 0x354   :  { %3967 = vmatpush1.bf16.msra.mxu0 %v8859_v42  ;;  %4053 = vmatpush1.bf16.msra.mxu1 %v8862_v43  ;;  %v8949_v42 = vld [vmem:[#allocation10 + $0x160] ss:$16 sps:$4 sm:$0xff]   ;;  %v8952_v43 = vld [vmem:[#allocation10 + $0x168] ss:$16 sps:$4 sm:$0xff]  }
 0x355   :  { %3968 = vmatprep.subr.bf16.mxu0 %v8867_v44  ;;  %4054 = vmatprep.subr.bf16.mxu1 %v8870_v45  ;;  %v8957_v44 = vld [vmem:[#allocation10 + $0x184] ss:$16 sps:$4 sm:$0xff]   ;;  %v8960_v45 = vld [vmem:[#allocation10 + $0x18c] ss:$16 sps:$4 sm:$0xff]  }
 0x358   :  { %3969 = vmatpush1.bf16.msra.mxu0 %v8865_v46  ;;  %4055 = vmatpush1.bf16.msra.mxu1 %v8868_v47  ;;  %v8955_v46 = vld [vmem:[#allocation10 + $0x180] ss:$16 sps:$4 sm:$0xff]   ;;  %v8958_v47 = vld [vmem:[#allocation10 + $0x188] ss:$16 sps:$4 sm:$0xff]  }
 0x359   :  { %3970 = vmatprep.subr.bf16.mxu0 %v8873_v48  ;;  %4056 = vmatprep.subr.bf16.mxu1 %v8876_v49  ;;  %v8963_v48 = vld [vmem:[#allocation10 + $0x1a4] ss:$16 sps:$4 sm:$0xff]   ;;  %v8966_v49 = vld [vmem:[#allocation10 + $0x1ac] ss:$16 sps:$4 sm:$0xff]  }
 0x35c   :  { %3971 = vmatpush1.bf16.msra.mxu0 %v8871_v50  ;;  %4057 = vmatpush1.bf16.msra.mxu1 %v8874_v52  ;;  %v8961_v50 = vld [vmem:[#allocation10 + $0x1a0] ss:$16 sps:$4 sm:$0xff]   ;;  %v8964_v52 = vld [vmem:[#allocation10 + $0x1a8] ss:$16 sps:$4 sm:$0xff]  }
 0x35d   :  { %3972 = vmatprep.subr.bf16.mxu0 %v8879_v53  ;;  %4058 = vmatprep.subr.bf16.mxu1 %v8882_v54  ;;  %v8969_v53 = vld [vmem:[#allocation10 + $0x1c4] ss:$16 sps:$4 sm:$0xff]   ;;  %v8972_v54 = vld [vmem:[#allocation10 + $0x1cc] ss:$16 sps:$4 sm:$0xff]  }
 0x360   :  { %3973 = vmatpush1.bf16.msra.mxu0 %v8877_v55  ;;  %4059 = vmatpush1.bf16.msra.mxu1 %v8880_v56  ;;  %v8967_v55 = vld [vmem:[#allocation10 + $0x1c0] ss:$16 sps:$4 sm:$0xff]   ;;  %v8970_v56 = vld [vmem:[#allocation10 + $0x1c8] ss:$16 sps:$4 sm:$0xff]  }
 0x361   :  { %4873 = vmatprep.subr.bf16.mxu0 %v8885_v57  ;;  %4959 = vmatprep.subr.bf16.mxu1 %v8888_v58  ;;  %v8975_v57 = vld [vmem:[#allocation10 + $0x1e4] ss:$16 sps:$4 sm:$0xff]   ;;  %v8978_v58 = vld [vmem:[#allocation10 + $0x1ec] ss:$16 sps:$4 sm:$0xff]  }
 0x363   :  { %3975 = vmatmul.mubr.bf16.vlgmr.msra.gmra.mrb[4].mxu0 %v10015_v51  ;;  %4061 = vmatmul.mubr.bf16.vlgmr.msra.gmra.mrb[4].mxu1 %v10015_v51  ;;  %v8904_v51 = vld [vmem:[#allocation10 + $0x68] ss:$16 sps:$4 sm:$0xff]  }
 0x364   :  { %4874 = vmatpush1.bf16.msra.mxu0 %v8883_v59  ;;  %4960 = vmatpush1.bf16.msra.mxu1 %v8886_v60  ;;  %v8973_v59 = vld [vmem:[#allocation10 + $0x1e0] ss:$16 sps:$4 sm:$0xff]   ;;  %v8976_v60 = vld [vmem:[#allocation10 + $0x1e8] ss:$16 sps:$4 sm:$0xff]  }
 0x365   :  { %4875 = vmatprep.subr.bf16.mxu0 %v8891_v61  ;;  %4961 = vmatprep.subr.bf16.mxu1 %v8894_v62  ;;  %v8981_v61 = vld [vmem:[#allocation10 + $0x204] ss:$16 sps:$4 sm:$0xff]   ;;  %v8984_v62 = vld [vmem:[#allocation10 + $0x20c] ss:$16 sps:$4 sm:$0xff]  }
 0x368   :  { %4876 = vmatpush1.bf16.msra.mxu0 %v8889_v63  ;;  %4962 = vmatpush1.bf16.msra.mxu1 %v8892_v0  ;;  %v3237_v63 = vld [vmem:[#allocation8] sm:$0xf] }
 0x369   :  { %4877 = vmatprep.subr.bf16.mxu0 %v8897_v1  ;;  %4963 = vmatprep.subr.bf16.mxu1 %v8900_v2  ;;  %v3242_v0 = vrot.slane %v3237_v63, %v10003_v17  ;;  %v3250_v1 = vrot.slane %v3237_v63, %v10005_v18  ;;  %v3246_v2 = vrot.slane %v3237_v63, %v10007_v20 }
 0x36c   :  { %4878 = vmatpush1.bf16.msra.mxu0 %v8895_v3  ;;  %4964 = vmatpush1.bf16.msra.mxu1 %v8898_v4  ;;  %v3254_v3 = vrot.slane %v3237_v63, %v10009_v21  ;;  %v9026_v63 = vld [vmem:[#allocation10 + $0x2ec] ss:$16 sps:$4 sm:$0xff]  }
 0x36d   :  { %4879 = vmatprep.subr.bf16.mxu0 %v8903_v5  ;;  %4965 = vmatprep.subr.bf16.mxu1 %v8906_v6 }
 0x370   :  { %4880 = vmatpush1.bf16.msra.mxu0 %v8901_v7  ;;  %4966 = vmatpush1.bf16.msra.mxu1 %v8904_v51 }
 0x371   :  { %4881 = vmatprep.subr.bf16.mxu0 %v8909_v8  ;;  %4967 = vmatprep.subr.bf16.mxu1 %v8912_v9 }
 0x374   :  { %4882 = vmatpush1.bf16.msra.mxu0 %v8907_v10  ;;  %4968 = vmatpush1.bf16.msra.mxu1 %v8910_v11 }
 0x375   :  { %4883 = vmatprep.subr.bf16.mxu0 %v8915_v12  ;;  %4969 = vmatprep.subr.bf16.mxu1 %v8918_v13 }
 0x378   :  { %4884 = vmatpush1.bf16.msra.mxu0 %v8913_v14  ;;  %4970 = vmatpush1.bf16.msra.mxu1 %v8916_v15 }
 0x379   :  { %4885 = vmatprep.subr.bf16.mxu0 %v8921_v16  ;;  %4971 = vmatprep.subr.bf16.mxu1 %v8924_v19 }
 0x37c   :  { %4886 = vmatpush1.bf16.msra.mxu0 %v8919_v22  ;;  %4972 = vmatpush1.bf16.msra.mxu1 %v8922_v23 }
 0x37d   :  { %4887 = vmatprep.subr.bf16.mxu0 %v8927_v24  ;;  %4973 = vmatprep.subr.bf16.mxu1 %v8930_v25 }
 0x380   :  { %4888 = vmatpush1.bf16.msra.mxu0 %v8925_v26  ;;  %4974 = vmatpush1.bf16.msra.mxu1 %v8928_v27 }
 0x381   :  { %4889 = vmatprep.subr.bf16.mxu0 %v8933_v28  ;;  %4975 = vmatprep.subr.bf16.mxu1 %v8936_v29 }
 0x384   :  { %4890 = vmatpush1.bf16.msra.mxu0 %v8931_v30  ;;  %4976 = vmatpush1.bf16.msra.mxu1 %v8934_v31 }
 0x385   :  { %4891 = vmatprep.subr.bf16.mxu0 %v8939_v32  ;;  %4977 = vmatprep.subr.bf16.mxu1 %v8942_v33 }
 0x388   :  { %4892 = vmatpush1.bf16.msra.mxu0 %v8937_v34  ;;  %4978 = vmatpush1.bf16.msra.mxu1 %v8940_v35  ;;  %v8979_v35 = vld [vmem:[#allocation10 + $0x200] ss:$16 sps:$4 sm:$0xff]  }
 0x389   :  { %4893 = vmatprep.subr.bf16.mxu0 %v8945_v36  ;;  %4979 = vmatprep.subr.bf16.mxu1 %v8948_v37  ;;  %v8982_v36 = vld [vmem:[#allocation10 + $0x208] ss:$16 sps:$4 sm:$0xff]   ;;  %v8987_v37 = vld [vmem:[#allocation10 + $0x224] ss:$16 sps:$4 sm:$0xff]  }
 0x38c   :  { %4894 = vmatpush1.bf16.msra.mxu0 %v8943_v38  ;;  %4980 = vmatpush1.bf16.msra.mxu1 %v8946_v39  ;;  %v8990_v38 = vld [vmem:[#allocation10 + $0x22c] ss:$16 sps:$4 sm:$0xff]   ;;  %v8985_v39 = vld [vmem:[#allocation10 + $0x220] ss:$16 sps:$4 sm:$0xff]  }
 0x38d   :  { %4895 = vmatprep.subr.bf16.mxu0 %v8951_v40  ;;  %4981 = vmatprep.subr.bf16.mxu1 %v8954_v41  ;;  %v8988_v40 = vld [vmem:[#allocation10 + $0x228] ss:$16 sps:$4 sm:$0xff]   ;;  %v8993_v41 = vld [vmem:[#allocation10 + $0x244] ss:$16 sps:$4 sm:$0xff]  }
 0x390   :  { %4896 = vmatpush1.bf16.msra.mxu0 %v8949_v42  ;;  %4982 = vmatpush1.bf16.msra.mxu1 %v8952_v43  ;;  %v8996_v42 = vld [vmem:[#allocation10 + $0x24c] ss:$16 sps:$4 sm:$0xff]   ;;  %v8991_v43 = vld [vmem:[#allocation10 + $0x240] ss:$16 sps:$4 sm:$0xff]  }
 0x391   :  { %4897 = vmatprep.subr.bf16.mxu0 %v8957_v44  ;;  %4983 = vmatprep.subr.bf16.mxu1 %v8960_v45  ;;  %v8994_v44 = vld [vmem:[#allocation10 + $0x248] ss:$16 sps:$4 sm:$0xff]   ;;  %v8999_v45 = vld [vmem:[#allocation10 + $0x264] ss:$16 sps:$4 sm:$0xff]  }
 0x394   :  { %4898 = vmatpush1.bf16.msra.mxu0 %v8955_v46  ;;  %4984 = vmatpush1.bf16.msra.mxu1 %v8958_v47  ;;  %v9002_v46 = vld [vmem:[#allocation10 + $0x26c] ss:$16 sps:$4 sm:$0xff]   ;;  %v8997_v47 = vld [vmem:[#allocation10 + $0x260] ss:$16 sps:$4 sm:$0xff]  }
 0x395   :  { %4899 = vmatprep.subr.bf16.mxu0 %v8963_v48  ;;  %4985 = vmatprep.subr.bf16.mxu1 %v8966_v49  ;;  %v9000_v48 = vld [vmem:[#allocation10 + $0x268] ss:$16 sps:$4 sm:$0xff]   ;;  %v9005_v49 = vld [vmem:[#allocation10 + $0x284] ss:$16 sps:$4 sm:$0xff]  }
 0x398   :  { %4900 = vmatpush1.bf16.msra.mxu0 %v8961_v50  ;;  %4986 = vmatpush1.bf16.msra.mxu1 %v8964_v52  ;;  %v9008_v50 = vld [vmem:[#allocation10 + $0x28c] ss:$16 sps:$4 sm:$0xff]   ;;  %v9003_v52 = vld [vmem:[#allocation10 + $0x280] ss:$16 sps:$4 sm:$0xff]  }
 0x399   :  { %4901 = vmatprep.subr.bf16.mxu0 %v8969_v53  ;;  %4987 = vmatprep.subr.bf16.mxu1 %v8972_v54  ;;  %v9006_v53 = vld [vmem:[#allocation10 + $0x288] ss:$16 sps:$4 sm:$0xff]   ;;  %v9011_v54 = vld [vmem:[#allocation10 + $0x2a4] ss:$16 sps:$4 sm:$0xff]  }
 0x39c   :  { %4902 = vmatpush1.bf16.msra.mxu0 %v8967_v55  ;;  %4988 = vmatpush1.bf16.msra.mxu1 %v8970_v56  ;;  %v9014_v55 = vld [vmem:[#allocation10 + $0x2ac] ss:$16 sps:$4 sm:$0xff]   ;;  %v9009_v56 = vld [vmem:[#allocation10 + $0x2a0] ss:$16 sps:$4 sm:$0xff]  }
 0x39d   :  { %4903 = vmatprep.subr.bf16.mxu0 %v8975_v57  ;;  %4989 = vmatprep.subr.bf16.mxu1 %v8978_v58  ;;  %v9012_v57 = vld [vmem:[#allocation10 + $0x2a8] ss:$16 sps:$4 sm:$0xff]   ;;  %v9017_v58 = vld [vmem:[#allocation10 + $0x2c4] ss:$16 sps:$4 sm:$0xff]  }
 0x3a0   :  { %4904 = vmatpush1.bf16.msra.mxu0 %v8973_v59  ;;  %4990 = vmatpush1.bf16.msra.mxu1 %v8976_v60  ;;  %v9020_v59 = vld [vmem:[#allocation10 + $0x2cc] ss:$16 sps:$4 sm:$0xff]   ;;  %v9015_v60 = vld [vmem:[#allocation10 + $0x2c0] ss:$16 sps:$4 sm:$0xff]  }
 0x3a1   :  { %4916 = vmatprep.subr.bf16.mxu0 %v8981_v61  ;;  %5002 = vmatprep.subr.bf16.mxu1 %v8984_v62  ;;  %v9018_v61 = vld [vmem:[#allocation10 + $0x2c8] ss:$16 sps:$4 sm:$0xff]   ;;  %v9023_v62 = vld [vmem:[#allocation10 + $0x2e4] ss:$16 sps:$4 sm:$0xff]  }
 0x436   :  { %v3976_v4 = vpop.f32.mrb[4].mxu0  ;;  %v4062_v5 = vpop.f32.mrb[4].mxu1 }
 0x437   :  { %v7980_v6 = vadd.f32 %v3976_v4, %v3242_v0  ;;  %v7984_v7 = vadd.f32 %v4062_v5, %v3250_v1  ;;  %v3978_v51 = vpop.f32.mrb[5].mxu0  ;;  %v4064_v8 = vpop.f32.mrb[5].mxu1  ;;  %v9027_v4 = vld [vmem:[#allocation10 + $0x300] ss:$16 sps:$4 sm:$0xff]   ;;  %v9030_v5 = vld [vmem:[#allocation10 + $0x308] ss:$16 sps:$4 sm:$0xff]  }
 0x438   :  { %v7981_v9 = vadd.f32 %v3978_v51, %v3246_v2  ;;  %v7985_v10 = vadd.f32 %v4064_v8, %v3254_v3  ;;  %v3980_v11 = vpop.f32.mrb[6].mxu0  ;;  %v4066_v12 = vpop.f32.mrb[6].mxu1  ;;  %v9033_v51 = vld [vmem:[#allocation10 + $0x320] ss:$16 sps:$4 sm:$0xff]   ;;  %v9036_v8 = vld [vmem:[#allocation10 + $0x328] ss:$16 sps:$4 sm:$0xff]  }
 0x439   :  { %v7982_v13 = vadd.f32 %v3980_v11, %v3242_v0  ;;  %v7986_v14 = vadd.f32 %v4066_v12, %v3250_v1  ;;  %v3982_v15 = vpop.f32.mrb[7].mxu0  ;;  %v4068_v16 = vpop.f32.mrb[7].mxu1  ;;  %v4071_v23 = vmax.f32 %v7980_v6, 0.0  ;;  %v4073_v24 = vmax.f32 %v7984_v7, 0.0  ;;  %v9021_v0 = vld [vmem:[#allocation10 + $0x2e0] ss:$16 sps:$4 sm:$0xff]  }
 0x43a   :  { %v7983_v19 = vadd.f32 %v3982_v15, %v3246_v2  ;;  %v7987_v22 = vadd.f32 %v4068_v16, %v3254_v3  ;;  %v4072_v27 = vmax.f32 %v7981_v9, 0.0  ;;  %v4074_v28 = vmax.f32 %v7985_v10, 0.0  ;;  %v9024_v1 = vld [vmem:[#allocation10 + $0x2e8] ss:$16 sps:$4 sm:$0xff]   ;;  %v9029_v2 = vld [vmem:[#allocation10 + $0x304] ss:$16 sps:$4 sm:$0xff]  }
 0x43b   :  { %v4075_v25 = vmax.f32 %v7982_v13, 0.0  ;;  %v4077_v26 = vmax.f32 %v7986_v14, 0.0  ;;  %v9032_v3 = vld [vmem:[#allocation10 + $0x30c] ss:$16 sps:$4 sm:$0xff]   ;;  %v9035_v6 = vld [vmem:[#allocation10 + $0x324] ss:$16 sps:$4 sm:$0xff]  }
 0x43c   :  { %v4076_v29 = vmax.f32 %v7983_v19, 0.0  ;;  %v4078_v30 = vmax.f32 %v7987_v22, 0.0  ;;  %v9038_v7 = vld [vmem:[#allocation10 + $0x32c] ss:$16 sps:$4 sm:$0xff]   ;;  %v9041_v9 = vld [vmem:[#allocation10 + $0x344] ss:$16 sps:$4 sm:$0xff]  }
 0x43d   :  { %v4079_v31 = vpack.c.bf16 %v4075_v25, %v4071_v23  ;;  %v10023_v32 = vpack.c.bf16 %v4077_v26, %v4073_v24  ;;  %v9044_v10 = vld [vmem:[#allocation10 + $0x34c] ss:$16 sps:$4 sm:$0xff]   ;;  %v9039_v11 = vld [vmem:[#allocation10 + $0x340] ss:$16 sps:$4 sm:$0xff]   ;;  %v9042_v12 = vld [vmem:[#allocation10 + $0x348] ss:$16 sps:$4 sm:$0xff]  }
 0x43e   :  { %v4080_v33 = vpack.c.bf16 %v4076_v29, %v4072_v27  ;;  %v4082_v34 = vpack.c.bf16 %v4078_v30, %v4074_v28  ;;  %v9047_v13 = vld [vmem:[#allocation10 + $0x364] ss:$16 sps:$4 sm:$0xff]   ;;  %v9050_v14 = vld [vmem:[#allocation10 + $0x36c] ss:$16 sps:$4 sm:$0xff]   ;;  %v9045_v15 = vld [vmem:[#allocation10 + $0x360] ss:$16 sps:$4 sm:$0xff]  }
 0x43f   :  { %v9048_v16 = vld [vmem:[#allocation10 + $0x368] ss:$16 sps:$4 sm:$0xff]   ;;  %v9053_v19 = vld [vmem:[#allocation10 + $0x384] ss:$16 sps:$4 sm:$0xff]   ;;  %v9056_v22 = vld [vmem:[#allocation10 + $0x38c] ss:$16 sps:$4 sm:$0xff]  }
 0x440   :  { %4905 = vmatprep.mubr.bf16.mxu0 %v4080_v33  ;;  %4991 = vmatprep.mubr.bf16.mxu1 %v4080_v33  ;;  %v9051_v23 = vld [vmem:[#allocation10 + $0x380] ss:$16 sps:$4 sm:$0xff]   ;;  %v9054_v24 = vld [vmem:[#allocation10 + $0x388] ss:$16 sps:$4 sm:$0xff]   ;;  %v9059_v25 = vld [vmem:[#allocation10 + $0x3a4] ss:$16 sps:$4 sm:$0xff]  }
 0x441   :  { %4906 = vmatmul.mubr.bf16.vlgmr.msra.gmra.mrb[8].mxu0 %v4079_v31  ;;  %4992 = vmatmul.mubr.bf16.vlgmr.msra.gmra.mrb[8].mxu1 %v4079_v31  ;;  %v9062_v26 = vld [vmem:[#allocation10 + $0x3ac] ss:$16 sps:$4 sm:$0xff]   ;;  %v9057_v27 = vld [vmem:[#allocation10 + $0x3a0] ss:$16 sps:$4 sm:$0xff]   ;;  %v9060_v28 = vld [vmem:[#allocation10 + $0x3a8] ss:$16 sps:$4 sm:$0xff]  }
 0x442   :  { %4917 = vmatpush1.bf16.msra.mxu0 %v8979_v35  ;;  %5003 = vmatpush1.bf16.msra.mxu1 %v8982_v36  ;;  %v9065_v29 = vld [vmem:[#allocation10 + $0x3c4] ss:$16 sps:$4 sm:$0xff]   ;;  %v9068_v30 = vld [vmem:[#allocation10 + $0x3cc] ss:$16 sps:$4 sm:$0xff]   ;;  %v9063_v31 = vld [vmem:[#allocation10 + $0x3c0] ss:$16 sps:$4 sm:$0xff]  }
 0x443   :  { %4948 = vmatprep.mubr.bf16.mxu0 %v4082_v34  ;;  %5034 = vmatprep.mubr.bf16.mxu1 %v4082_v34  ;;  %v9066_v33 = vld [vmem:[#allocation10 + $0x3c8] ss:$16 sps:$4 sm:$0xff]   ;;  %v9071_v34 = vld [vmem:[#allocation10 + $0x3e4] ss:$16 sps:$4 sm:$0xff]   ;;  %v9074_v35 = vld [vmem:[#allocation10 + $0x3ec] ss:$16 sps:$4 sm:$0xff]  }
 0x444   :  { %4918 = vmatprep.subr.bf16.mxu0 %v8987_v37  ;;  %5004 = vmatprep.subr.bf16.mxu1 %v8990_v38  ;;  %v9069_v36 = vld [vmem:[#allocation10 + $0x3e0] ss:$16 sps:$4 sm:$0xff]   ;;  %v9072_v37 = vld [vmem:[#allocation10 + $0x3e8] ss:$16 sps:$4 sm:$0xff]  }
 0x445   :  { %v9077_v38 = vld [vmem:[#allocation13 + $0x4] ss:$16 sps:$4 sm:$0xff]  }
 0x446   :  { %4919 = vmatpush1.bf16.msra.mxu0 %v8985_v39  ;;  %5005 = vmatpush1.bf16.msra.mxu1 %v8988_v40  ;;  %v9080_v39 = vld [vmem:[#allocation13 + $0xc] ss:$16 sps:$4 sm:$0xff]   ;;  %v9075_v40 = vld [vmem:[#allocation13] ss:$16 sps:$4 sm:$0xff]  }
 0x447   :  { %4920 = vmatprep.subr.bf16.mxu0 %v8993_v41  ;;  %5006 = vmatprep.subr.bf16.mxu1 %v8996_v42  ;;  %v9078_v41 = vld [vmem:[#allocation13 + $0x8] ss:$16 sps:$4 sm:$0xff]   ;;  %v9083_v42 = vld [vmem:[#allocation13 + $0x24] ss:$16 sps:$4 sm:$0xff]  }
 0x44a   :  { %4921 = vmatpush1.bf16.msra.mxu0 %v8991_v43  ;;  %5007 = vmatpush1.bf16.msra.mxu1 %v8994_v44  ;;  %v9086_v43 = vld [vmem:[#allocation13 + $0x2c] ss:$16 sps:$4 sm:$0xff]   ;;  %v9081_v44 = vld [vmem:[#allocation13 + $0x20] ss:$16 sps:$4 sm:$0xff]  }
 0x44b   :  { %4922 = vmatprep.subr.bf16.mxu0 %v8999_v45  ;;  %5008 = vmatprep.subr.bf16.mxu1 %v9002_v46  ;;  %v9084_v45 = vld [vmem:[#allocation13 + $0x28] ss:$16 sps:$4 sm:$0xff]   ;;  %v9089_v46 = vld [vmem:[#allocation13 + $0x44] ss:$16 sps:$4 sm:$0xff]  }
 0x44e   :  { %4923 = vmatpush1.bf16.msra.mxu0 %v8997_v47  ;;  %5009 = vmatpush1.bf16.msra.mxu1 %v9000_v48  ;;  %v9092_v47 = vld [vmem:[#allocation13 + $0x4c] ss:$16 sps:$4 sm:$0xff]   ;;  %v9087_v48 = vld [vmem:[#allocation13 + $0x40] ss:$16 sps:$4 sm:$0xff]  }
 0x44f   :  { %4924 = vmatprep.subr.bf16.mxu0 %v9005_v49  ;;  %5010 = vmatprep.subr.bf16.mxu1 %v9008_v50  ;;  %v9090_v49 = vld [vmem:[#allocation13 + $0x48] ss:$16 sps:$4 sm:$0xff]   ;;  %v9095_v50 = vld [vmem:[#allocation13 + $0x64] ss:$16 sps:$4 sm:$0xff]  }
 0x452   :  { %4925 = vmatpush1.bf16.msra.mxu0 %v9003_v52  ;;  %5011 = vmatpush1.bf16.msra.mxu1 %v9006_v53  ;;  %v9098_v52 = vld [vmem:[#allocation13 + $0x6c] ss:$16 sps:$4 sm:$0xff]   ;;  %v9093_v53 = vld [vmem:[#allocation13 + $0x60] ss:$16 sps:$4 sm:$0xff]  }
 0x453   :  { %4926 = vmatprep.subr.bf16.mxu0 %v9011_v54  ;;  %5012 = vmatprep.subr.bf16.mxu1 %v9014_v55  ;;  %v9101_v54 = vld [vmem:[#allocation13 + $0x84] ss:$16 sps:$4 sm:$0xff]   ;;  %v9104_v55 = vld [vmem:[#allocation13 + $0x8c] ss:$16 sps:$4 sm:$0xff]  }
 0x456   :  { %4927 = vmatpush1.bf16.msra.mxu0 %v9009_v56  ;;  %5013 = vmatpush1.bf16.msra.mxu1 %v9012_v57  ;;  %v9099_v56 = vld [vmem:[#allocation13 + $0x80] ss:$16 sps:$4 sm:$0xff]   ;;  %v9102_v57 = vld [vmem:[#allocation13 + $0x88] ss:$16 sps:$4 sm:$0xff]  }
 0x457   :  { %4928 = vmatprep.subr.bf16.mxu0 %v9017_v58  ;;  %5014 = vmatprep.subr.bf16.mxu1 %v9020_v59  ;;  %v9107_v58 = vld [vmem:[#allocation13 + $0xa4] ss:$16 sps:$4 sm:$0xff]   ;;  %v9110_v59 = vld [vmem:[#allocation13 + $0xac] ss:$16 sps:$4 sm:$0xff]  }
 0x45a   :  { %4929 = vmatpush1.bf16.msra.mxu0 %v9015_v60  ;;  %5015 = vmatpush1.bf16.msra.mxu1 %v9018_v61  ;;  %v9105_v60 = vld [vmem:[#allocation13 + $0xa0] ss:$16 sps:$4 sm:$0xff]   ;;  %v9108_v61 = vld [vmem:[#allocation13 + $0xa8] ss:$16 sps:$4 sm:$0xff]  }
 0x45b   :  { %4930 = vmatprep.subr.bf16.mxu0 %v9023_v62  ;;  %5016 = vmatprep.subr.bf16.mxu1 %v9026_v63  ;;  %v9113_v62 = vld [vmem:[#allocation13 + $0xc4] ss:$16 sps:$4 sm:$0xff]   ;;  %v9116_v63 = vld [vmem:[#allocation13 + $0xcc] ss:$16 sps:$4 sm:$0xff]  }
 0x45e   :  { %4931 = vmatpush1.bf16.msra.mxu0 %v9021_v0  ;;  %5017 = vmatpush1.bf16.msra.mxu1 %v9024_v1  ;;  %v9111_v0 = vld [vmem:[#allocation13 + $0xc0] ss:$16 sps:$4 sm:$0xff]   ;;  %v9114_v1 = vld [vmem:[#allocation13 + $0xc8] ss:$16 sps:$4 sm:$0xff]  }
 0x45f   :  { %4932 = vmatprep.subr.bf16.mxu0 %v9029_v2  ;;  %5018 = vmatprep.subr.bf16.mxu1 %v9032_v3  ;;  %v9119_v2 = vld [vmem:[#allocation13 + $0xe4] ss:$16 sps:$4 sm:$0xff]   ;;  %v9122_v3 = vld [vmem:[#allocation13 + $0xec] ss:$16 sps:$4 sm:$0xff]  }
 0x462   :  { %4933 = vmatpush1.bf16.msra.mxu0 %v9027_v4  ;;  %5019 = vmatpush1.bf16.msra.mxu1 %v9030_v5  ;;  %v9117_v4 = vld [vmem:[#allocation13 + $0xe0] ss:$16 sps:$4 sm:$0xff]   ;;  %v9120_v5 = vld [vmem:[#allocation13 + $0xe8] ss:$16 sps:$4 sm:$0xff]  }
 0x463   :  { %4934 = vmatprep.subr.bf16.mxu0 %v9035_v6  ;;  %5020 = vmatprep.subr.bf16.mxu1 %v9038_v7  ;;  %v9125_v6 = vld [vmem:[#allocation13 + $0x104] ss:$16 sps:$4 sm:$0xff]   ;;  %v9128_v7 = vld [vmem:[#allocation13 + $0x10c] ss:$16 sps:$4 sm:$0xff]  }
 0x466   :  { %4935 = vmatpush1.bf16.msra.mxu0 %v9033_v51  ;;  %5021 = vmatpush1.bf16.msra.mxu1 %v9036_v8  ;;  %v9123_v51 = vld [vmem:[#allocation13 + $0x100] ss:$16 sps:$4 sm:$0xff]   ;;  %v9126_v8 = vld [vmem:[#allocation13 + $0x108] ss:$16 sps:$4 sm:$0xff]  }
 0x467   :  { %4936 = vmatprep.subr.bf16.mxu0 %v9041_v9  ;;  %5022 = vmatprep.subr.bf16.mxu1 %v9044_v10  ;;  %v9131_v9 = vld [vmem:[#allocation13 + $0x124] ss:$16 sps:$4 sm:$0xff]   ;;  %v9134_v10 = vld [vmem:[#allocation13 + $0x12c] ss:$16 sps:$4 sm:$0xff]  }
 0x46a   :  { %4937 = vmatpush1.bf16.msra.mxu0 %v9039_v11  ;;  %5023 = vmatpush1.bf16.msra.mxu1 %v9042_v12  ;;  %v9129_v11 = vld [vmem:[#allocation13 + $0x120] ss:$16 sps:$4 sm:$0xff]   ;;  %v9132_v12 = vld [vmem:[#allocation13 + $0x128] ss:$16 sps:$4 sm:$0xff]  }
 0x46b   :  { %4938 = vmatprep.subr.bf16.mxu0 %v9047_v13  ;;  %5024 = vmatprep.subr.bf16.mxu1 %v9050_v14  ;;  %v9137_v13 = vld [vmem:[#allocation13 + $0x144] ss:$16 sps:$4 sm:$0xff]   ;;  %v9140_v14 = vld [vmem:[#allocation13 + $0x14c] ss:$16 sps:$4 sm:$0xff]  }
 0x46e   :  { %4939 = vmatpush1.bf16.msra.mxu0 %v9045_v15  ;;  %5025 = vmatpush1.bf16.msra.mxu1 %v9048_v16  ;;  %v9135_v15 = vld [vmem:[#allocation13 + $0x140] ss:$16 sps:$4 sm:$0xff]   ;;  %v9138_v16 = vld [vmem:[#allocation13 + $0x148] ss:$16 sps:$4 sm:$0xff]  }
 0x46f   :  { %4940 = vmatprep.subr.bf16.mxu0 %v9053_v19  ;;  %5026 = vmatprep.subr.bf16.mxu1 %v9056_v22  ;;  %v9143_v19 = vld [vmem:[#allocation13 + $0x164] ss:$16 sps:$4 sm:$0xff]   ;;  %v9146_v22 = vld [vmem:[#allocation13 + $0x16c] ss:$16 sps:$4 sm:$0xff]  }
 0x472   :  { %4941 = vmatpush1.bf16.msra.mxu0 %v9051_v23  ;;  %5027 = vmatpush1.bf16.msra.mxu1 %v9054_v24  ;;  %v9141_v23 = vld [vmem:[#allocation13 + $0x160] ss:$16 sps:$4 sm:$0xff]   ;;  %v9144_v24 = vld [vmem:[#allocation13 + $0x168] ss:$16 sps:$4 sm:$0xff]  }
 0x473   :  { %4942 = vmatprep.subr.bf16.mxu0 %v9059_v25  ;;  %5028 = vmatprep.subr.bf16.mxu1 %v9062_v26  ;;  %v9149_v25 = vld [vmem:[#allocation13 + $0x184] ss:$16 sps:$4 sm:$0xff]   ;;  %v9152_v26 = vld [vmem:[#allocation13 + $0x18c] ss:$16 sps:$4 sm:$0xff]  }
 0x476   :  { %4943 = vmatpush1.bf16.msra.mxu0 %v9057_v27  ;;  %5029 = vmatpush1.bf16.msra.mxu1 %v9060_v28  ;;  %v9147_v27 = vld [vmem:[#allocation13 + $0x180] ss:$16 sps:$4 sm:$0xff]   ;;  %v9150_v28 = vld [vmem:[#allocation13 + $0x188] ss:$16 sps:$4 sm:$0xff]  }
 0x477   :  { %4944 = vmatprep.subr.bf16.mxu0 %v9065_v29  ;;  %5030 = vmatprep.subr.bf16.mxu1 %v9068_v30  ;;  %v9155_v29 = vld [vmem:[#allocation13 + $0x1a4] ss:$16 sps:$4 sm:$0xff]   ;;  %v9158_v30 = vld [vmem:[#allocation13 + $0x1ac] ss:$16 sps:$4 sm:$0xff]  }
 0x47a   :  { %4945 = vmatpush1.bf16.msra.mxu0 %v9063_v31  ;;  %5031 = vmatpush1.bf16.msra.mxu1 %v9066_v33  ;;  %v9153_v31 = vld [vmem:[#allocation13 + $0x1a0] ss:$16 sps:$4 sm:$0xff]   ;;  %v9156_v33 = vld [vmem:[#allocation13 + $0x1a8] ss:$16 sps:$4 sm:$0xff]  }
 0x47b   :  { %4946 = vmatprep.subr.bf16.mxu0 %v9071_v34  ;;  %5032 = vmatprep.subr.bf16.mxu1 %v9074_v35  ;;  %v9161_v34 = vld [vmem:[#allocation13 + $0x1c4] ss:$16 sps:$4 sm:$0xff]   ;;  %v9164_v35 = vld [vmem:[#allocation13 + $0x1cc] ss:$16 sps:$4 sm:$0xff]  }
 0x47e   :  { %4947 = vmatpush1.bf16.msra.mxu0 %v9069_v36  ;;  %5033 = vmatpush1.bf16.msra.mxu1 %v9072_v37  ;;  %v9159_v36 = vld [vmem:[#allocation13 + $0x1c0] ss:$16 sps:$4 sm:$0xff]   ;;  %v9162_v37 = vld [vmem:[#allocation13 + $0x1c8] ss:$16 sps:$4 sm:$0xff]  }
 0x47f   :  { %5847 = vmatprep.subr.bf16.mxu0 %v9077_v38  ;;  %5933 = vmatprep.subr.bf16.mxu1 %v9080_v39  ;;  %v9167_v38 = vld [vmem:[#allocation13 + $0x1e4] ss:$16 sps:$4 sm:$0xff]   ;;  %v9170_v39 = vld [vmem:[#allocation13 + $0x1ec] ss:$16 sps:$4 sm:$0xff]  }
 0x481   :  { %4949 = vmatmul.mubr.bf16.vlgmr.msra.gmra.mrb[8].mxu0 %v10023_v32  ;;  %5035 = vmatmul.mubr.bf16.vlgmr.msra.gmra.mrb[8].mxu1 %v10023_v32  ;;  %v9096_v32 = vld [vmem:[#allocation13 + $0x68] ss:$16 sps:$4 sm:$0xff]  }
 0x482   :  { %5848 = vmatpush1.bf16.msra.mxu0 %v9075_v40  ;;  %5934 = vmatpush1.bf16.msra.mxu1 %v9078_v41  ;;  %v9165_v40 = vld [vmem:[#allocation13 + $0x1e0] ss:$16 sps:$4 sm:$0xff]   ;;  %v9168_v41 = vld [vmem:[#allocation13 + $0x1e8] ss:$16 sps:$4 sm:$0xff]  }
 0x483   :  { %5849 = vmatprep.subr.bf16.mxu0 %v9083_v42  ;;  %5935 = vmatprep.subr.bf16.mxu1 %v9086_v43  ;;  %v9173_v42 = vld [vmem:[#allocation13 + $0x204] ss:$16 sps:$4 sm:$0xff]   ;;  %v9176_v43 = vld [vmem:[#allocation13 + $0x20c] ss:$16 sps:$4 sm:$0xff]  }
 0x486   :  { %5850 = vmatpush1.bf16.msra.mxu0 %v9081_v44  ;;  %5936 = vmatpush1.bf16.msra.mxu1 %v9084_v45  ;;  %v4211_v44 = vld [vmem:[#allocation11] sm:$0xf] }
 0x487   :  { %5851 = vmatprep.subr.bf16.mxu0 %v9089_v46  ;;  %5937 = vmatprep.subr.bf16.mxu1 %v9092_v47  ;;  %v4216_v45 = vrot.slane %v4211_v44, %v10003_v17  ;;  %v4224_v46 = vrot.slane %v4211_v44, %v10005_v18  ;;  %v4220_v47 = vrot.slane %v4211_v44, %v10007_v20 }
 0x48a   :  { %5852 = vmatpush1.bf16.msra.mxu0 %v9087_v48  ;;  %5938 = vmatpush1.bf16.msra.mxu1 %v9090_v49  ;;  %v4228_v48 = vrot.slane %v4211_v44, %v10009_v21  ;;  %v9218_v44 = vld [vmem:[#allocation13 + $0x2ec] ss:$16 sps:$4 sm:$0xff]  }
 0x48b   :  { %5853 = vmatprep.subr.bf16.mxu0 %v9095_v50  ;;  %5939 = vmatprep.subr.bf16.mxu1 %v9098_v52 }
 0x48e   :  { %5854 = vmatpush1.bf16.msra.mxu0 %v9093_v53  ;;  %5940 = vmatpush1.bf16.msra.mxu1 %v9096_v32 }
 0x48f   :  { %5855 = vmatprep.subr.bf16.mxu0 %v9101_v54  ;;  %5941 = vmatprep.subr.bf16.mxu1 %v9104_v55 }
 0x492   :  { %5856 = vmatpush1.bf16.msra.mxu0 %v9099_v56  ;;  %5942 = vmatpush1.bf16.msra.mxu1 %v9102_v57 }
 0x493   :  { %5857 = vmatprep.subr.bf16.mxu0 %v9107_v58  ;;  %5943 = vmatprep.subr.bf16.mxu1 %v9110_v59 }
 0x496   :  { %5858 = vmatpush1.bf16.msra.mxu0 %v9105_v60  ;;  %5944 = vmatpush1.bf16.msra.mxu1 %v9108_v61 }
 0x497   :  { %5859 = vmatprep.subr.bf16.mxu0 %v9113_v62  ;;  %5945 = vmatprep.subr.bf16.mxu1 %v9116_v63 }
 0x49a   :  { %5860 = vmatpush1.bf16.msra.mxu0 %v9111_v0  ;;  %5946 = vmatpush1.bf16.msra.mxu1 %v9114_v1 }
 0x49b   :  { %5861 = vmatprep.subr.bf16.mxu0 %v9119_v2  ;;  %5947 = vmatprep.subr.bf16.mxu1 %v9122_v3 }
 0x49e   :  { %5862 = vmatpush1.bf16.msra.mxu0 %v9117_v4  ;;  %5948 = vmatpush1.bf16.msra.mxu1 %v9120_v5 }
 0x49f   :  { %5863 = vmatprep.subr.bf16.mxu0 %v9125_v6  ;;  %5949 = vmatprep.subr.bf16.mxu1 %v9128_v7 }
 0x4a2   :  { %5864 = vmatpush1.bf16.msra.mxu0 %v9123_v51  ;;  %5950 = vmatpush1.bf16.msra.mxu1 %v9126_v8 }
 0x4a3   :  { %5865 = vmatprep.subr.bf16.mxu0 %v9131_v9  ;;  %5951 = vmatprep.subr.bf16.mxu1 %v9134_v10 }
 0x4a6   :  { %5866 = vmatpush1.bf16.msra.mxu0 %v9129_v11  ;;  %5952 = vmatpush1.bf16.msra.mxu1 %v9132_v12  ;;  %v9171_v12 = vld [vmem:[#allocation13 + $0x200] ss:$16 sps:$4 sm:$0xff]  }
 0x4a7   :  { %5867 = vmatprep.subr.bf16.mxu0 %v9137_v13  ;;  %5953 = vmatprep.subr.bf16.mxu1 %v9140_v14  ;;  %v9174_v13 = vld [vmem:[#allocation13 + $0x208] ss:$16 sps:$4 sm:$0xff]   ;;  %v9179_v14 = vld [vmem:[#allocation13 + $0x224] ss:$16 sps:$4 sm:$0xff]  }
 0x4aa   :  { %5868 = vmatpush1.bf16.msra.mxu0 %v9135_v15  ;;  %5954 = vmatpush1.bf16.msra.mxu1 %v9138_v16  ;;  %v9182_v15 = vld [vmem:[#allocation13 + $0x22c] ss:$16 sps:$4 sm:$0xff]   ;;  %v9177_v16 = vld [vmem:[#allocation13 + $0x220] ss:$16 sps:$4 sm:$0xff]  }
 0x4ab   :  { %5869 = vmatprep.subr.bf16.mxu0 %v9143_v19  ;;  %5955 = vmatprep.subr.bf16.mxu1 %v9146_v22  ;;  %v9180_v19 = vld [vmem:[#allocation13 + $0x228] ss:$16 sps:$4 sm:$0xff]   ;;  %v9185_v22 = vld [vmem:[#allocation13 + $0x244] ss:$16 sps:$4 sm:$0xff]  }
 0x4ae   :  { %5870 = vmatpush1.bf16.msra.mxu0 %v9141_v23  ;;  %5956 = vmatpush1.bf16.msra.mxu1 %v9144_v24  ;;  %v9188_v23 = vld [vmem:[#allocation13 + $0x24c] ss:$16 sps:$4 sm:$0xff]   ;;  %v9183_v24 = vld [vmem:[#allocation13 + $0x240] ss:$16 sps:$4 sm:$0xff]  }
 0x4af   :  { %5871 = vmatprep.subr.bf16.mxu0 %v9149_v25  ;;  %5957 = vmatprep.subr.bf16.mxu1 %v9152_v26  ;;  %v9186_v25 = vld [vmem:[#allocation13 + $0x248] ss:$16 sps:$4 sm:$0xff]   ;;  %v9191_v26 = vld [vmem:[#allocation13 + $0x264] ss:$16 sps:$4 sm:$0xff]  }
 0x4b2   :  { %5872 = vmatpush1.bf16.msra.mxu0 %v9147_v27  ;;  %5958 = vmatpush1.bf16.msra.mxu1 %v9150_v28  ;;  %v9194_v27 = vld [vmem:[#allocation13 + $0x26c] ss:$16 sps:$4 sm:$0xff]   ;;  %v9189_v28 = vld [vmem:[#allocation13 + $0x260] ss:$16 sps:$4 sm:$0xff]  }
 0x4b3   :  { %5873 = vmatprep.subr.bf16.mxu0 %v9155_v29  ;;  %5959 = vmatprep.subr.bf16.mxu1 %v9158_v30  ;;  %v9192_v29 = vld [vmem:[#allocation13 + $0x268] ss:$16 sps:$4 sm:$0xff]   ;;  %v9197_v30 = vld [vmem:[#allocation13 + $0x284] ss:$16 sps:$4 sm:$0xff]  }
 0x4b6   :  { %5874 = vmatpush1.bf16.msra.mxu0 %v9153_v31  ;;  %5960 = vmatpush1.bf16.msra.mxu1 %v9156_v33  ;;  %v9200_v31 = vld [vmem:[#allocation13 + $0x28c] ss:$16 sps:$4 sm:$0xff]   ;;  %v9195_v33 = vld [vmem:[#allocation13 + $0x280] ss:$16 sps:$4 sm:$0xff]  }
 0x4b7   :  { %5875 = vmatprep.subr.bf16.mxu0 %v9161_v34  ;;  %5961 = vmatprep.subr.bf16.mxu1 %v9164_v35  ;;  %v9198_v34 = vld [vmem:[#allocation13 + $0x288] ss:$16 sps:$4 sm:$0xff]   ;;  %v9203_v35 = vld [vmem:[#allocation13 + $0x2a4] ss:$16 sps:$4 sm:$0xff]  }
 0x4ba   :  { %5876 = vmatpush1.bf16.msra.mxu0 %v9159_v36  ;;  %5962 = vmatpush1.bf16.msra.mxu1 %v9162_v37  ;;  %v9206_v36 = vld [vmem:[#allocation13 + $0x2ac] ss:$16 sps:$4 sm:$0xff]   ;;  %v9201_v37 = vld [vmem:[#allocation13 + $0x2a0] ss:$16 sps:$4 sm:$0xff]  }
 0x4bb   :  { %5877 = vmatprep.subr.bf16.mxu0 %v9167_v38  ;;  %5963 = vmatprep.subr.bf16.mxu1 %v9170_v39  ;;  %v9204_v38 = vld [vmem:[#allocation13 + $0x2a8] ss:$16 sps:$4 sm:$0xff]   ;;  %v9209_v39 = vld [vmem:[#allocation13 + $0x2c4] ss:$16 sps:$4 sm:$0xff]  }
 0x4be   :  { %5878 = vmatpush1.bf16.msra.mxu0 %v9165_v40  ;;  %5964 = vmatpush1.bf16.msra.mxu1 %v9168_v41  ;;  %v9212_v40 = vld [vmem:[#allocation13 + $0x2cc] ss:$16 sps:$4 sm:$0xff]   ;;  %v9207_v41 = vld [vmem:[#allocation13 + $0x2c0] ss:$16 sps:$4 sm:$0xff]  }
 0x4bf   :  { %5890 = vmatprep.subr.bf16.mxu0 %v9173_v42  ;;  %5976 = vmatprep.subr.bf16.mxu1 %v9176_v43  ;;  %v9210_v42 = vld [vmem:[#allocation13 + $0x2c8] ss:$16 sps:$4 sm:$0xff]   ;;  %v9215_v43 = vld [vmem:[#allocation13 + $0x2e4] ss:$16 sps:$4 sm:$0xff]  }
 0x554   :  { %v4950_v49 = vpop.f32.mrb[8].mxu0  ;;  %v5036_v50 = vpop.f32.mrb[8].mxu1 }
 0x555   :  { %v7988_v52 = vadd.f32 %v4950_v49, %v4216_v45  ;;  %v7992_v53 = vadd.f32 %v5036_v50, %v4224_v46  ;;  %v4952_v32 = vpop.f32.mrb[9].mxu0  ;;  %v5038_v54 = vpop.f32.mrb[9].mxu1  ;;  %v9219_v49 = vld [vmem:[#allocation13 + $0x300] ss:$16 sps:$4 sm:$0xff]   ;;  %v9222_v50 = vld [vmem:[#allocation13 + $0x308] ss:$16 sps:$4 sm:$0xff]  }
 0x556   :  { %v7989_v55 = vadd.f32 %v4952_v32, %v4220_v47  ;;  %v7993_v56 = vadd.f32 %v5038_v54, %v4228_v48  ;;  %v4954_v57 = vpop.f32.mrb[10].mxu0  ;;  %v5040_v58 = vpop.f32.mrb[10].mxu1  ;;  %v9225_v32 = vld [vmem:[#allocation13 + $0x320] ss:$16 sps:$4 sm:$0xff]   ;;  %v9228_v54 = vld [vmem:[#allocation13 + $0x328] ss:$16 sps:$4 sm:$0xff]  }
 0x557   :  { %v7990_v59 = vadd.f32 %v4954_v57, %v4216_v45  ;;  %v7994_v60 = vadd.f32 %v5040_v58, %v4224_v46  ;;  %v4956_v61 = vpop.f32.mrb[11].mxu0  ;;  %v5042_v62 = vpop.f32.mrb[11].mxu1  ;;  %v5045_v1 = vmax.f32 %v7988_v52, 0.0  ;;  %v5047_v2 = vmax.f32 %v7992_v53, 0.0  ;;  %v9213_v45 = vld [vmem:[#allocation13 + $0x2e0] ss:$16 sps:$4 sm:$0xff]  }
 0x558   :  { %v7991_v63 = vadd.f32 %v4956_v61, %v4220_v47  ;;  %v7995_v0 = vadd.f32 %v5042_v62, %v4228_v48  ;;  %v5046_v5 = vmax.f32 %v7989_v55, 0.0  ;;  %v5048_v6 = vmax.f32 %v7993_v56, 0.0  ;;  %v9216_v46 = vld [vmem:[#allocation13 + $0x2e8] ss:$16 sps:$4 sm:$0xff]   ;;  %v9221_v47 = vld [vmem:[#allocation13 + $0x304] ss:$16 sps:$4 sm:$0xff]  }
 0x559   :  { %v5049_v3 = vmax.f32 %v7990_v59, 0.0  ;;  %v5051_v4 = vmax.f32 %v7994_v60, 0.0  ;;  %v9224_v48 = vld [vmem:[#allocation13 + $0x30c] ss:$16 sps:$4 sm:$0xff]   ;;  %v9227_v52 = vld [vmem:[#allocation13 + $0x324] ss:$16 sps:$4 sm:$0xff]  }
 0x55a   :  { %v5050_v7 = vmax.f32 %v7991_v63, 0.0  ;;  %v5052_v51 = vmax.f32 %v7995_v0, 0.0  ;;  %v9230_v53 = vld [vmem:[#allocation13 + $0x32c] ss:$16 sps:$4 sm:$0xff]   ;;  %v9233_v55 = vld [vmem:[#allocation13 + $0x344] ss:$16 sps:$4 sm:$0xff]  }
 0x55b   :  { %v5053_v8 = vpack.c.bf16 %v5049_v3, %v5045_v1  ;;  %v10031_v9 = vpack.c.bf16 %v5051_v4, %v5047_v2  ;;  %v9236_v56 = vld [vmem:[#allocation13 + $0x34c] ss:$16 sps:$4 sm:$0xff]   ;;  %v9231_v57 = vld [vmem:[#allocation13 + $0x340] ss:$16 sps:$4 sm:$0xff]   ;;  %v9234_v58 = vld [vmem:[#allocation13 + $0x348] ss:$16 sps:$4 sm:$0xff]  }
 0x55c   :  { %v5054_v10 = vpack.c.bf16 %v5050_v7, %v5046_v5  ;;  %v5056_v11 = vpack.c.bf16 %v5052_v51, %v5048_v6  ;;  %v9239_v59 = vld [vmem:[#allocation13 + $0x364] ss:$16 sps:$4 sm:$0xff]   ;;  %v9242_v60 = vld [vmem:[#allocation13 + $0x36c] ss:$16 sps:$4 sm:$0xff]   ;;  %v9237_v61 = vld [vmem:[#allocation13 + $0x360] ss:$16 sps:$4 sm:$0xff]  }
 0x55d   :  { %v9240_v62 = vld [vmem:[#allocation13 + $0x368] ss:$16 sps:$4 sm:$0xff]   ;;  %v9245_v63 = vld [vmem:[#allocation13 + $0x384] ss:$16 sps:$4 sm:$0xff]   ;;  %v9248_v0 = vld [vmem:[#allocation13 + $0x38c] ss:$16 sps:$4 sm:$0xff]  }
 0x55e   :  { %5879 = vmatprep.mubr.bf16.mxu0 %v5054_v10  ;;  %5965 = vmatprep.mubr.bf16.mxu1 %v5054_v10  ;;  %v9243_v1 = vld [vmem:[#allocation13 + $0x380] ss:$16 sps:$4 sm:$0xff]   ;;  %v9246_v2 = vld [vmem:[#allocation13 + $0x388] ss:$16 sps:$4 sm:$0xff]   ;;  %v9251_v3 = vld [vmem:[#allocation13 + $0x3a4] ss:$16 sps:$4 sm:$0xff]  }
 0x55f   :  { %5880 = vmatmul.mubr.bf16.vlgmr.msra.gmra.mrb[12].mxu0 %v5053_v8  ;;  %5966 = vmatmul.mubr.bf16.vlgmr.msra.gmra.mrb[12].mxu1 %v5053_v8  ;;  %v9254_v4 = vld [vmem:[#allocation13 + $0x3ac] ss:$16 sps:$4 sm:$0xff]   ;;  %v9249_v5 = vld [vmem:[#allocation13 + $0x3a0] ss:$16 sps:$4 sm:$0xff]   ;;  %v9252_v6 = vld [vmem:[#allocation13 + $0x3a8] ss:$16 sps:$4 sm:$0xff]  }
 0x560   :  { %5891 = vmatpush1.bf16.msra.mxu0 %v9171_v12  ;;  %5977 = vmatpush1.bf16.msra.mxu1 %v9174_v13  ;;  %v9257_v7 = vld [vmem:[#allocation13 + $0x3c4] ss:$16 sps:$4 sm:$0xff]   ;;  %v9260_v51 = vld [vmem:[#allocation13 + $0x3cc] ss:$16 sps:$4 sm:$0xff]   ;;  %v9255_v8 = vld [vmem:[#allocation13 + $0x3c0] ss:$16 sps:$4 sm:$0xff]  }
 0x561   :  { %5922 = vmatprep.mubr.bf16.mxu0 %v5056_v11  ;;  %6008 = vmatprep.mubr.bf16.mxu1 %v5056_v11  ;;  %v9258_v10 = vld [vmem:[#allocation13 + $0x3c8] ss:$16 sps:$4 sm:$0xff]   ;;  %v9263_v11 = vld [vmem:[#allocation13 + $0x3e4] ss:$16 sps:$4 sm:$0xff]   ;;  %v9266_v12 = vld [vmem:[#allocation13 + $0x3ec] ss:$16 sps:$4 sm:$0xff]  }
 0x562   :  { %5892 = vmatprep.subr.bf16.mxu0 %v9179_v14  ;;  %5978 = vmatprep.subr.bf16.mxu1 %v9182_v15  ;;  %v9261_v13 = vld [vmem:[#allocation13 + $0x3e0] ss:$16 sps:$4 sm:$0xff]   ;;  %v9264_v14 = vld [vmem:[#allocation13 + $0x3e8] ss:$16 sps:$4 sm:$0xff]  }
 0x563   :  { %v9269_v15 = vld [vmem:[#allocation16 + $0x4] ss:$16 sps:$4 sm:$0xff]  }
 0x564   :  { %5893 = vmatpush1.bf16.msra.mxu0 %v9177_v16  ;;  %5979 = vmatpush1.bf16.msra.mxu1 %v9180_v19  ;;  %v9272_v16 = vld [vmem:[#allocation16 + $0xc] ss:$16 sps:$4 sm:$0xff]   ;;  %v9267_v19 = vld [vmem:[#allocation16] ss:$16 sps:$4 sm:$0xff]  }
 0x565   :  { %5894 = vmatprep.subr.bf16.mxu0 %v9185_v22  ;;  %5980 = vmatprep.subr.bf16.mxu1 %v9188_v23  ;;  %v9270_v22 = vld [vmem:[#allocation16 + $0x8] ss:$16 sps:$4 sm:$0xff]   ;;  %v9275_v23 = vld [vmem:[#allocation16 + $0x24] ss:$16 sps:$4 sm:$0xff]  }
 0x568   :  { %5895 = vmatpush1.bf16.msra.mxu0 %v9183_v24  ;;  %5981 = vmatpush1.bf16.msra.mxu1 %v9186_v25  ;;  %v9278_v24 = vld [vmem:[#allocation16 + $0x2c] ss:$16 sps:$4 sm:$0xff]   ;;  %v9273_v25 = vld [vmem:[#allocation16 + $0x20] ss:$16 sps:$4 sm:$0xff]  }
 0x569   :  { %5896 = vmatprep.subr.bf16.mxu0 %v9191_v26  ;;  %5982 = vmatprep.subr.bf16.mxu1 %v9194_v27  ;;  %v9276_v26 = vld [vmem:[#allocation16 + $0x28] ss:$16 sps:$4 sm:$0xff]   ;;  %v9281_v27 = vld [vmem:[#allocation16 + $0x44] ss:$16 sps:$4 sm:$0xff]  }
 0x56c   :  { %5897 = vmatpush1.bf16.msra.mxu0 %v9189_v28  ;;  %5983 = vmatpush1.bf16.msra.mxu1 %v9192_v29  ;;  %v9284_v28 = vld [vmem:[#allocation16 + $0x4c] ss:$16 sps:$4 sm:$0xff]   ;;  %v9279_v29 = vld [vmem:[#allocation16 + $0x40] ss:$16 sps:$4 sm:$0xff]  }
 0x56d   :  { %5898 = vmatprep.subr.bf16.mxu0 %v9197_v30  ;;  %5984 = vmatprep.subr.bf16.mxu1 %v9200_v31  ;;  %v9282_v30 = vld [vmem:[#allocation16 + $0x48] ss:$16 sps:$4 sm:$0xff]   ;;  %v9287_v31 = vld [vmem:[#allocation16 + $0x64] ss:$16 sps:$4 sm:$0xff]  }
 0x570   :  { %5899 = vmatpush1.bf16.msra.mxu0 %v9195_v33  ;;  %5985 = vmatpush1.bf16.msra.mxu1 %v9198_v34  ;;  %v9290_v33 = vld [vmem:[#allocation16 + $0x6c] ss:$16 sps:$4 sm:$0xff]   ;;  %v9285_v34 = vld [vmem:[#allocation16 + $0x60] ss:$16 sps:$4 sm:$0xff]  }
 0x571   :  { %5900 = vmatprep.subr.bf16.mxu0 %v9203_v35  ;;  %5986 = vmatprep.subr.bf16.mxu1 %v9206_v36  ;;  %v9293_v35 = vld [vmem:[#allocation16 + $0x84] ss:$16 sps:$4 sm:$0xff]   ;;  %v9296_v36 = vld [vmem:[#allocation16 + $0x8c] ss:$16 sps:$4 sm:$0xff]  }
 0x574   :  { %5901 = vmatpush1.bf16.msra.mxu0 %v9201_v37  ;;  %5987 = vmatpush1.bf16.msra.mxu1 %v9204_v38  ;;  %v9291_v37 = vld [vmem:[#allocation16 + $0x80] ss:$16 sps:$4 sm:$0xff]   ;;  %v9294_v38 = vld [vmem:[#allocation16 + $0x88] ss:$16 sps:$4 sm:$0xff]  }
 0x575   :  { %5902 = vmatprep.subr.bf16.mxu0 %v9209_v39  ;;  %5988 = vmatprep.subr.bf16.mxu1 %v9212_v40  ;;  %v9299_v39 = vld [vmem:[#allocation16 + $0xa4] ss:$16 sps:$4 sm:$0xff]   ;;  %v9302_v40 = vld [vmem:[#allocation16 + $0xac] ss:$16 sps:$4 sm:$0xff]  }
 0x578   :  { %5903 = vmatpush1.bf16.msra.mxu0 %v9207_v41  ;;  %5989 = vmatpush1.bf16.msra.mxu1 %v9210_v42  ;;  %v9297_v41 = vld [vmem:[#allocation16 + $0xa0] ss:$16 sps:$4 sm:$0xff]   ;;  %v9300_v42 = vld [vmem:[#allocation16 + $0xa8] ss:$16 sps:$4 sm:$0xff]  }
 0x579   :  { %5904 = vmatprep.subr.bf16.mxu0 %v9215_v43  ;;  %5990 = vmatprep.subr.bf16.mxu1 %v9218_v44  ;;  %v9305_v43 = vld [vmem:[#allocation16 + $0xc4] ss:$16 sps:$4 sm:$0xff]   ;;  %v9308_v44 = vld [vmem:[#allocation16 + $0xcc] ss:$16 sps:$4 sm:$0xff]  }
 0x57c   :  { %5905 = vmatpush1.bf16.msra.mxu0 %v9213_v45  ;;  %5991 = vmatpush1.bf16.msra.mxu1 %v9216_v46  ;;  %v9303_v45 = vld [vmem:[#allocation16 + $0xc0] ss:$16 sps:$4 sm:$0xff]   ;;  %v9306_v46 = vld [vmem:[#allocation16 + $0xc8] ss:$16 sps:$4 sm:$0xff]  }
 0x57d   :  { %5906 = vmatprep.subr.bf16.mxu0 %v9221_v47  ;;  %5992 = vmatprep.subr.bf16.mxu1 %v9224_v48  ;;  %v9311_v47 = vld [vmem:[#allocation16 + $0xe4] ss:$16 sps:$4 sm:$0xff]   ;;  %v9314_v48 = vld [vmem:[#allocation16 + $0xec] ss:$16 sps:$4 sm:$0xff]  }
 0x580   :  { %5907 = vmatpush1.bf16.msra.mxu0 %v9219_v49  ;;  %5993 = vmatpush1.bf16.msra.mxu1 %v9222_v50  ;;  %v9309_v49 = vld [vmem:[#allocation16 + $0xe0] ss:$16 sps:$4 sm:$0xff]   ;;  %v9312_v50 = vld [vmem:[#allocation16 + $0xe8] ss:$16 sps:$4 sm:$0xff]  }
 0x581   :  { %5908 = vmatprep.subr.bf16.mxu0 %v9227_v52  ;;  %5994 = vmatprep.subr.bf16.mxu1 %v9230_v53  ;;  %v9317_v52 = vld [vmem:[#allocation16 + $0x104] ss:$16 sps:$4 sm:$0xff]   ;;  %v9320_v53 = vld [vmem:[#allocation16 + $0x10c] ss:$16 sps:$4 sm:$0xff]  }
 0x584   :  { %5909 = vmatpush1.bf16.msra.mxu0 %v9225_v32  ;;  %5995 = vmatpush1.bf16.msra.mxu1 %v9228_v54  ;;  %v9315_v32 = vld [vmem:[#allocation16 + $0x100] ss:$16 sps:$4 sm:$0xff]   ;;  %v9318_v54 = vld [vmem:[#allocation16 + $0x108] ss:$16 sps:$4 sm:$0xff]  }
 0x585   :  { %5910 = vmatprep.subr.bf16.mxu0 %v9233_v55  ;;  %5996 = vmatprep.subr.bf16.mxu1 %v9236_v56  ;;  %v9323_v55 = vld [vmem:[#allocation16 + $0x124] ss:$16 sps:$4 sm:$0xff]   ;;  %v9326_v56 = vld [vmem:[#allocation16 + $0x12c] ss:$16 sps:$4 sm:$0xff]  }
 0x588   :  { %5911 = vmatpush1.bf16.msra.mxu0 %v9231_v57  ;;  %5997 = vmatpush1.bf16.msra.mxu1 %v9234_v58  ;;  %v9321_v57 = vld [vmem:[#allocation16 + $0x120] ss:$16 sps:$4 sm:$0xff]   ;;  %v9324_v58 = vld [vmem:[#allocation16 + $0x128] ss:$16 sps:$4 sm:$0xff]  }
 0x589   :  { %5912 = vmatprep.subr.bf16.mxu0 %v9239_v59  ;;  %5998 = vmatprep.subr.bf16.mxu1 %v9242_v60  ;;  %v9329_v59 = vld [vmem:[#allocation16 + $0x144] ss:$16 sps:$4 sm:$0xff]   ;;  %v9332_v60 = vld [vmem:[#allocation16 + $0x14c] ss:$16 sps:$4 sm:$0xff]  }
 0x58c   :  { %5913 = vmatpush1.bf16.msra.mxu0 %v9237_v61  ;;  %5999 = vmatpush1.bf16.msra.mxu1 %v9240_v62  ;;  %v9327_v61 = vld [vmem:[#allocation16 + $0x140] ss:$16 sps:$4 sm:$0xff]   ;;  %v9330_v62 = vld [vmem:[#allocation16 + $0x148] ss:$16 sps:$4 sm:$0xff]  }
 0x58d   :  { %5914 = vmatprep.subr.bf16.mxu0 %v9245_v63  ;;  %6000 = vmatprep.subr.bf16.mxu1 %v9248_v0  ;;  %v9335_v63 = vld [vmem:[#allocation16 + $0x164] ss:$16 sps:$4 sm:$0xff]   ;;  %v9338_v0 = vld [vmem:[#allocation16 + $0x16c] ss:$16 sps:$4 sm:$0xff]  }
 0x590   :  { %5915 = vmatpush1.bf16.msra.mxu0 %v9243_v1  ;;  %6001 = vmatpush1.bf16.msra.mxu1 %v9246_v2  ;;  %v9333_v1 = vld [vmem:[#allocation16 + $0x160] ss:$16 sps:$4 sm:$0xff]   ;;  %v9336_v2 = vld [vmem:[#allocation16 + $0x168] ss:$16 sps:$4 sm:$0xff]  }
 0x591   :  { %5916 = vmatprep.subr.bf16.mxu0 %v9251_v3  ;;  %6002 = vmatprep.subr.bf16.mxu1 %v9254_v4  ;;  %v9341_v3 = vld [vmem:[#allocation16 + $0x184] ss:$16 sps:$4 sm:$0xff]   ;;  %v9344_v4 = vld [vmem:[#allocation16 + $0x18c] ss:$16 sps:$4 sm:$0xff]  }
 0x594   :  { %5917 = vmatpush1.bf16.msra.mxu0 %v9249_v5  ;;  %6003 = vmatpush1.bf16.msra.mxu1 %v9252_v6  ;;  %v9339_v5 = vld [vmem:[#allocation16 + $0x180] ss:$16 sps:$4 sm:$0xff]   ;;  %v9342_v6 = vld [vmem:[#allocation16 + $0x188] ss:$16 sps:$4 sm:$0xff]  }
 0x595   :  { %5918 = vmatprep.subr.bf16.mxu0 %v9257_v7  ;;  %6004 = vmatprep.subr.bf16.mxu1 %v9260_v51  ;;  %v9347_v7 = vld [vmem:[#allocation16 + $0x1a4] ss:$16 sps:$4 sm:$0xff]   ;;  %v9350_v51 = vld [vmem:[#allocation16 + $0x1ac] ss:$16 sps:$4 sm:$0xff]  }
 0x598   :  { %5919 = vmatpush1.bf16.msra.mxu0 %v9255_v8  ;;  %6005 = vmatpush1.bf16.msra.mxu1 %v9258_v10  ;;  %v9345_v8 = vld [vmem:[#allocation16 + $0x1a0] ss:$16 sps:$4 sm:$0xff]   ;;  %v9348_v10 = vld [vmem:[#allocation16 + $0x1a8] ss:$16 sps:$4 sm:$0xff]  }
 0x599   :  { %5920 = vmatprep.subr.bf16.mxu0 %v9263_v11  ;;  %6006 = vmatprep.subr.bf16.mxu1 %v9266_v12  ;;  %v9353_v11 = vld [vmem:[#allocation16 + $0x1c4] ss:$16 sps:$4 sm:$0xff]   ;;  %v9356_v12 = vld [vmem:[#allocation16 + $0x1cc] ss:$16 sps:$4 sm:$0xff]  }
 0x59c   :  { %5921 = vmatpush1.bf16.msra.mxu0 %v9261_v13  ;;  %6007 = vmatpush1.bf16.msra.mxu1 %v9264_v14  ;;  %v9351_v13 = vld [vmem:[#allocation16 + $0x1c0] ss:$16 sps:$4 sm:$0xff]   ;;  %v9354_v14 = vld [vmem:[#allocation16 + $0x1c8] ss:$16 sps:$4 sm:$0xff]  }
 0x59d   :  { %6821 = vmatprep.subr.bf16.mxu0 %v9269_v15  ;;  %6907 = vmatprep.subr.bf16.mxu1 %v9272_v16  ;;  %v9359_v15 = vld [vmem:[#allocation16 + $0x1e4] ss:$16 sps:$4 sm:$0xff]   ;;  %v9362_v16 = vld [vmem:[#allocation16 + $0x1ec] ss:$16 sps:$4 sm:$0xff]  }
 0x59f   :  { %5923 = vmatmul.mubr.bf16.vlgmr.msra.gmra.mrb[12].mxu0 %v10031_v9  ;;  %6009 = vmatmul.mubr.bf16.vlgmr.msra.gmra.mrb[12].mxu1 %v10031_v9  ;;  %v9288_v9 = vld [vmem:[#allocation16 + $0x68] ss:$16 sps:$4 sm:$0xff]  }
 0x5a0   :  { %6822 = vmatpush1.bf16.msra.mxu0 %v9267_v19  ;;  %6908 = vmatpush1.bf16.msra.mxu1 %v9270_v22  ;;  %v9357_v19 = vld [vmem:[#allocation16 + $0x1e0] ss:$16 sps:$4 sm:$0xff]   ;;  %v9360_v22 = vld [vmem:[#allocation16 + $0x1e8] ss:$16 sps:$4 sm:$0xff]  }
 0x5a1   :  { %6823 = vmatprep.subr.bf16.mxu0 %v9275_v23  ;;  %6909 = vmatprep.subr.bf16.mxu1 %v9278_v24  ;;  %v9365_v23 = vld [vmem:[#allocation16 + $0x204] ss:$16 sps:$4 sm:$0xff]   ;;  %v9368_v24 = vld [vmem:[#allocation16 + $0x20c] ss:$16 sps:$4 sm:$0xff]  }
 0x5a4   :  { %6824 = vmatpush1.bf16.msra.mxu0 %v9273_v25  ;;  %6910 = vmatpush1.bf16.msra.mxu1 %v9276_v26  ;;  %v5185_v25 = vld [vmem:[#allocation14] sm:$0xf] }
 0x5a5   :  { %6825 = vmatprep.subr.bf16.mxu0 %v9281_v27  ;;  %6911 = vmatprep.subr.bf16.mxu1 %v9284_v28  ;;  %v5190_v26 = vrot.slane %v5185_v25, %v10003_v17  ;;  %v5198_v27 = vrot.slane %v5185_v25, %v10005_v18  ;;  %v5194_v28 = vrot.slane %v5185_v25, %v10007_v20 }
 0x5a8   :  { %6826 = vmatpush1.bf16.msra.mxu0 %v9279_v29  ;;  %6912 = vmatpush1.bf16.msra.mxu1 %v9282_v30  ;;  %v5202_v29 = vrot.slane %v5185_v25, %v10009_v21  ;;  %v9410_v25 = vld [vmem:[#allocation16 + $0x2ec] ss:$16 sps:$4 sm:$0xff]  }
 0x5a9   :  { %6827 = vmatprep.subr.bf16.mxu0 %v9287_v31  ;;  %6913 = vmatprep.subr.bf16.mxu1 %v9290_v33 }
 0x5ac   :  { %6828 = vmatpush1.bf16.msra.mxu0 %v9285_v34  ;;  %6914 = vmatpush1.bf16.msra.mxu1 %v9288_v9 }
 0x5ad   :  { %6829 = vmatprep.subr.bf16.mxu0 %v9293_v35  ;;  %6915 = vmatprep.subr.bf16.mxu1 %v9296_v36 }
 0x5b0   :  { %6830 = vmatpush1.bf16.msra.mxu0 %v9291_v37  ;;  %6916 = vmatpush1.bf16.msra.mxu1 %v9294_v38 }
 0x5b1   :  { %6831 = vmatprep.subr.bf16.mxu0 %v9299_v39  ;;  %6917 = vmatprep.subr.bf16.mxu1 %v9302_v40 }
 0x5b4   :  { %6832 = vmatpush1.bf16.msra.mxu0 %v9297_v41  ;;  %6918 = vmatpush1.bf16.msra.mxu1 %v9300_v42 }
 0x5b5   :  { %6833 = vmatprep.subr.bf16.mxu0 %v9305_v43  ;;  %6919 = vmatprep.subr.bf16.mxu1 %v9308_v44 }
 0x5b8   :  { %6834 = vmatpush1.bf16.msra.mxu0 %v9303_v45  ;;  %6920 = vmatpush1.bf16.msra.mxu1 %v9306_v46 }
 0x5b9   :  { %6835 = vmatprep.subr.bf16.mxu0 %v9311_v47  ;;  %6921 = vmatprep.subr.bf16.mxu1 %v9314_v48 }
 0x5bc   :  { %6836 = vmatpush1.bf16.msra.mxu0 %v9309_v49  ;;  %6922 = vmatpush1.bf16.msra.mxu1 %v9312_v50 }
 0x5bd   :  { %6837 = vmatprep.subr.bf16.mxu0 %v9317_v52  ;;  %6923 = vmatprep.subr.bf16.mxu1 %v9320_v53 }
 0x5c0   :  { %6838 = vmatpush1.bf16.msra.mxu0 %v9315_v32  ;;  %6924 = vmatpush1.bf16.msra.mxu1 %v9318_v54 }
 0x5c1   :  { %6839 = vmatprep.subr.bf16.mxu0 %v9323_v55  ;;  %6925 = vmatprep.subr.bf16.mxu1 %v9326_v56 }
 0x5c4   :  { %6840 = vmatpush1.bf16.msra.mxu0 %v9321_v57  ;;  %6926 = vmatpush1.bf16.msra.mxu1 %v9324_v58  ;;  %v9363_v58 = vld [vmem:[#allocation16 + $0x200] ss:$16 sps:$4 sm:$0xff]  }
 0x5c5   :  { %6841 = vmatprep.subr.bf16.mxu0 %v9329_v59  ;;  %6927 = vmatprep.subr.bf16.mxu1 %v9332_v60  ;;  %v9366_v59 = vld [vmem:[#allocation16 + $0x208] ss:$16 sps:$4 sm:$0xff]   ;;  %v9371_v60 = vld [vmem:[#allocation16 + $0x224] ss:$16 sps:$4 sm:$0xff]  }
 0x5c8   :  { %6842 = vmatpush1.bf16.msra.mxu0 %v9327_v61  ;;  %6928 = vmatpush1.bf16.msra.mxu1 %v9330_v62  ;;  %v9374_v61 = vld [vmem:[#allocation16 + $0x22c] ss:$16 sps:$4 sm:$0xff]   ;;  %v9369_v62 = vld [vmem:[#allocation16 + $0x220] ss:$16 sps:$4 sm:$0xff]  }
 0x5c9   :  { %6843 = vmatprep.subr.bf16.mxu0 %v9335_v63  ;;  %6929 = vmatprep.subr.bf16.mxu1 %v9338_v0  ;;  %v9372_v63 = vld [vmem:[#allocation16 + $0x228] ss:$16 sps:$4 sm:$0xff]   ;;  %v9377_v0 = vld [vmem:[#allocation16 + $0x244] ss:$16 sps:$4 sm:$0xff]  }
 0x5cc   :  { %6844 = vmatpush1.bf16.msra.mxu0 %v9333_v1  ;;  %6930 = vmatpush1.bf16.msra.mxu1 %v9336_v2  ;;  %v9380_v1 = vld [vmem:[#allocation16 + $0x24c] ss:$16 sps:$4 sm:$0xff]   ;;  %v9375_v2 = vld [vmem:[#allocation16 + $0x240] ss:$16 sps:$4 sm:$0xff]  }
 0x5cd   :  { %6845 = vmatprep.subr.bf16.mxu0 %v9341_v3  ;;  %6931 = vmatprep.subr.bf16.mxu1 %v9344_v4  ;;  %v9378_v3 = vld [vmem:[#allocation16 + $0x248] ss:$16 sps:$4 sm:$0xff]   ;;  %v9383_v4 = vld [vmem:[#allocation16 + $0x264] ss:$16 sps:$4 sm:$0xff]  }
 0x5d0   :  { %6846 = vmatpush1.bf16.msra.mxu0 %v9339_v5  ;;  %6932 = vmatpush1.bf16.msra.mxu1 %v9342_v6  ;;  %v9386_v5 = vld [vmem:[#allocation16 + $0x26c] ss:$16 sps:$4 sm:$0xff]   ;;  %v9381_v6 = vld [vmem:[#allocation16 + $0x260] ss:$16 sps:$4 sm:$0xff]  }
 0x5d1   :  { %6847 = vmatprep.subr.bf16.mxu0 %v9347_v7  ;;  %6933 = vmatprep.subr.bf16.mxu1 %v9350_v51  ;;  %v9384_v7 = vld [vmem:[#allocation16 + $0x268] ss:$16 sps:$4 sm:$0xff]   ;;  %v9389_v51 = vld [vmem:[#allocation16 + $0x284] ss:$16 sps:$4 sm:$0xff]  }
 0x5d4   :  { %6848 = vmatpush1.bf16.msra.mxu0 %v9345_v8  ;;  %6934 = vmatpush1.bf16.msra.mxu1 %v9348_v10  ;;  %v9392_v8 = vld [vmem:[#allocation16 + $0x28c] ss:$16 sps:$4 sm:$0xff]   ;;  %v9387_v10 = vld [vmem:[#allocation16 + $0x280] ss:$16 sps:$4 sm:$0xff]  }
 0x5d5   :  { %6849 = vmatprep.subr.bf16.mxu0 %v9353_v11  ;;  %6935 = vmatprep.subr.bf16.mxu1 %v9356_v12  ;;  %v9390_v11 = vld [vmem:[#allocation16 + $0x288] ss:$16 sps:$4 sm:$0xff]   ;;  %v9395_v12 = vld [vmem:[#allocation16 + $0x2a4] ss:$16 sps:$4 sm:$0xff]  }
 0x5d8   :  { %6850 = vmatpush1.bf16.msra.mxu0 %v9351_v13  ;;  %6936 = vmatpush1.bf16.msra.mxu1 %v9354_v14  ;;  %v9398_v13 = vld [vmem:[#allocation16 + $0x2ac] ss:$16 sps:$4 sm:$0xff]   ;;  %v9393_v14 = vld [vmem:[#allocation16 + $0x2a0] ss:$16 sps:$4 sm:$0xff]  }
 0x5d9   :  { %6851 = vmatprep.subr.bf16.mxu0 %v9359_v15  ;;  %6937 = vmatprep.subr.bf16.mxu1 %v9362_v16  ;;  %v9396_v15 = vld [vmem:[#allocation16 + $0x2a8] ss:$16 sps:$4 sm:$0xff]   ;;  %v9401_v16 = vld [vmem:[#allocation16 + $0x2c4] ss:$16 sps:$4 sm:$0xff]  }
 0x5dc   :  { %6852 = vmatpush1.bf16.msra.mxu0 %v9357_v19  ;;  %6938 = vmatpush1.bf16.msra.mxu1 %v9360_v22  ;;  %v9404_v19 = vld [vmem:[#allocation16 + $0x2cc] ss:$16 sps:$4 sm:$0xff]   ;;  %v9399_v22 = vld [vmem:[#allocation16 + $0x2c0] ss:$16 sps:$4 sm:$0xff]  }
 0x5dd   :  { %6864 = vmatprep.subr.bf16.mxu0 %v9365_v23  ;;  %6950 = vmatprep.subr.bf16.mxu1 %v9368_v24  ;;  %v9402_v23 = vld [vmem:[#allocation16 + $0x2c8] ss:$16 sps:$4 sm:$0xff]   ;;  %v9407_v24 = vld [vmem:[#allocation16 + $0x2e4] ss:$16 sps:$4 sm:$0xff]  }
 0x672   :  { %v5924_v30 = vpop.f32.mrb[12].mxu0  ;;  %v6010_v31 = vpop.f32.mrb[12].mxu1 }
 0x673   :  { %v7996_v33 = vadd.f32 %v5924_v30, %v5190_v26  ;;  %v8000_v34 = vadd.f32 %v6010_v31, %v5198_v27  ;;  %v5926_v9 = vpop.f32.mrb[13].mxu0  ;;  %v6012_v35 = vpop.f32.mrb[13].mxu1  ;;  %v9411_v30 = vld [vmem:[#allocation16 + $0x300] ss:$16 sps:$4 sm:$0xff]   ;;  %v9414_v31 = vld [vmem:[#allocation16 + $0x308] ss:$16 sps:$4 sm:$0xff]  }
 0x674   :  { %v7997_v36 = vadd.f32 %v5926_v9, %v5194_v28  ;;  %v8001_v37 = vadd.f32 %v6012_v35, %v5202_v29  ;;  %v5928_v38 = vpop.f32.mrb[14].mxu0  ;;  %v6014_v39 = vpop.f32.mrb[14].mxu1  ;;  %v9417_v9 = vld [vmem:[#allocation16 + $0x320] ss:$16 sps:$4 sm:$0xff]   ;;  %v9420_v35 = vld [vmem:[#allocation16 + $0x328] ss:$16 sps:$4 sm:$0xff]  }
 0x675   :  { %v7998_v40 = vadd.f32 %v5928_v38, %v5190_v26  ;;  %v8002_v41 = vadd.f32 %v6014_v39, %v5198_v27  ;;  %v5930_v42 = vpop.f32.mrb[15].mxu0  ;;  %v6016_v43 = vpop.f32.mrb[15].mxu1  ;;  %v6019_v46 = vmax.f32 %v7996_v33, 0.0  ;;  %v6021_v47 = vmax.f32 %v8000_v34, 0.0  ;;  %v9405_v26 = vld [vmem:[#allocation16 + $0x2e0] ss:$16 sps:$4 sm:$0xff]  }
 0x676   :  { %v7999_v44 = vadd.f32 %v5930_v42, %v5194_v28  ;;  %v8003_v45 = vadd.f32 %v6016_v43, %v5202_v29  ;;  %v6020_v50 = vmax.f32 %v7997_v36, 0.0  ;;  %v6022_v52 = vmax.f32 %v8001_v37, 0.0  ;;  %v9408_v27 = vld [vmem:[#allocation16 + $0x2e8] ss:$16 sps:$4 sm:$0xff]   ;;  %v9413_v28 = vld [vmem:[#allocation16 + $0x304] ss:$16 sps:$4 sm:$0xff]  }
 0x677   :  { %v6023_v48 = vmax.f32 %v7998_v40, 0.0  ;;  %v6025_v49 = vmax.f32 %v8002_v41, 0.0  ;;  %v9416_v29 = vld [vmem:[#allocation16 + $0x30c] ss:$16 sps:$4 sm:$0xff]   ;;  %v9419_v33 = vld [vmem:[#allocation16 + $0x324] ss:$16 sps:$4 sm:$0xff]  }
 0x678   :  { %v6024_v53 = vmax.f32 %v7999_v44, 0.0  ;;  %v6026_v32 = vmax.f32 %v8003_v45, 0.0  ;;  %v9422_v34 = vld [vmem:[#allocation16 + $0x32c] ss:$16 sps:$4 sm:$0xff]   ;;  %v9425_v36 = vld [vmem:[#allocation16 + $0x344] ss:$16 sps:$4 sm:$0xff]  }
 0x679   :  { %v6027_v54 = vpack.c.bf16 %v6023_v48, %v6019_v46  ;;  %v10039_v55 = vpack.c.bf16 %v6025_v49, %v6021_v47  ;;  %v9428_v37 = vld [vmem:[#allocation16 + $0x34c] ss:$16 sps:$4 sm:$0xff]   ;;  %v9423_v38 = vld [vmem:[#allocation16 + $0x340] ss:$16 sps:$4 sm:$0xff]   ;;  %v9426_v39 = vld [vmem:[#allocation16 + $0x348] ss:$16 sps:$4 sm:$0xff]  }
 0x67a   :  { %v6028_v56 = vpack.c.bf16 %v6024_v53, %v6020_v50  ;;  %v6030_v57 = vpack.c.bf16 %v6026_v32, %v6022_v52  ;;  %v9431_v40 = vld [vmem:[#allocation16 + $0x364] ss:$16 sps:$4 sm:$0xff]   ;;  %v9434_v41 = vld [vmem:[#allocation16 + $0x36c] ss:$16 sps:$4 sm:$0xff]   ;;  %v9429_v42 = vld [vmem:[#allocation16 + $0x360] ss:$16 sps:$4 sm:$0xff]  }
 0x67b   :  { %v9432_v43 = vld [vmem:[#allocation16 + $0x368] ss:$16 sps:$4 sm:$0xff]   ;;  %v9437_v44 = vld [vmem:[#allocation16 + $0x384] ss:$16 sps:$4 sm:$0xff]   ;;  %v9440_v45 = vld [vmem:[#allocation16 + $0x38c] ss:$16 sps:$4 sm:$0xff]  }
 0x67c   :  { %6853 = vmatprep.mubr.bf16.mxu0 %v6028_v56  ;;  %6939 = vmatprep.mubr.bf16.mxu1 %v6028_v56  ;;  %v9435_v46 = vld [vmem:[#allocation16 + $0x380] ss:$16 sps:$4 sm:$0xff]   ;;  %v9438_v47 = vld [vmem:[#allocation16 + $0x388] ss:$16 sps:$4 sm:$0xff]   ;;  %v9443_v48 = vld [vmem:[#allocation16 + $0x3a4] ss:$16 sps:$4 sm:$0xff]  }
 0x67d   :  { %6854 = vmatmul.mubr.bf16.vlgmr.msra.gmra.mrb[16].mxu0 %v6027_v54  ;;  %6940 = vmatmul.mubr.bf16.vlgmr.msra.gmra.mrb[16].mxu1 %v6027_v54  ;;  %v9446_v49 = vld [vmem:[#allocation16 + $0x3ac] ss:$16 sps:$4 sm:$0xff]   ;;  %v9441_v50 = vld [vmem:[#allocation16 + $0x3a0] ss:$16 sps:$4 sm:$0xff]   ;;  %v9444_v52 = vld [vmem:[#allocation16 + $0x3a8] ss:$16 sps:$4 sm:$0xff]  }
 0x67e   :  { %6865 = vmatpush1.bf16.msra.mxu0 %v9363_v58  ;;  %6951 = vmatpush1.bf16.msra.mxu1 %v9366_v59  ;;  %v9449_v53 = vld [vmem:[#allocation16 + $0x3c4] ss:$16 sps:$4 sm:$0xff]   ;;  %v9452_v32 = vld [vmem:[#allocation16 + $0x3cc] ss:$16 sps:$4 sm:$0xff]   ;;  %v9447_v54 = vld [vmem:[#allocation16 + $0x3c0] ss:$16 sps:$4 sm:$0xff]  }
 0x67f   :  { %6896 = vmatprep.mubr.bf16.mxu0 %v6030_v57  ;;  %6982 = vmatprep.mubr.bf16.mxu1 %v6030_v57  ;;  %v9450_v56 = vld [vmem:[#allocation16 + $0x3c8] ss:$16 sps:$4 sm:$0xff]   ;;  %v9455_v57 = vld [vmem:[#allocation16 + $0x3e4] ss:$16 sps:$4 sm:$0xff]   ;;  %v9458_v58 = vld [vmem:[#allocation16 + $0x3ec] ss:$16 sps:$4 sm:$0xff]  }
 0x680   :  { %6866 = vmatprep.subr.bf16.mxu0 %v9371_v60  ;;  %6952 = vmatprep.subr.bf16.mxu1 %v9374_v61  ;;  %v9453_v59 = vld [vmem:[#allocation16 + $0x3e0] ss:$16 sps:$4 sm:$0xff]   ;;  %v9456_v60 = vld [vmem:[#allocation16 + $0x3e8] ss:$16 sps:$4 sm:$0xff]  }
 0x681   :  { %v6159_v61 = vld [vmem:[#allocation17] sm:$0xf] }
 0x682   :  { %6867 = vmatpush1.bf16.msra.mxu0 %v9369_v62  ;;  %6953 = vmatpush1.bf16.msra.mxu1 %v9372_v63  ;;  %v6164_v62 = vrot.slane %v6159_v61, %v10003_v17  ;;  %v6172_v63 = vrot.slane %v6159_v61, %v10005_v18 }
 0x683   :  { %6868 = vmatprep.subr.bf16.mxu0 %v9377_v0  ;;  %6954 = vmatprep.subr.bf16.mxu1 %v9380_v1  ;;  %v7001_v0 = vld [vmem:[#allocation19] sm:$0xf]  ;;  %v6168_v1 = vrot.slane %v6159_v61, %v10007_v20 }
 0x686   :  { %6869 = vmatpush1.bf16.msra.mxu0 %v9375_v2  ;;  %6955 = vmatpush1.bf16.msra.mxu1 %v9378_v3  ;;  %v6176_v2 = vrot.slane %v6159_v61, %v10009_v21 }
 0x687   :  { %6870 = vmatprep.subr.bf16.mxu0 %v9383_v4  ;;  %6956 = vmatprep.subr.bf16.mxu1 %v9386_v5 }
 0x68a   :  { %6871 = vmatpush1.bf16.msra.mxu0 %v9381_v6  ;;  %6957 = vmatpush1.bf16.msra.mxu1 %v9384_v7  ;;  %v7006_v6 = vrot.slane %v7001_v0, %v10003_v17 }
 0x68b   :  { %6872 = vmatprep.subr.bf16.mxu0 %v9389_v51  ;;  %6958 = vmatprep.subr.bf16.mxu1 %v9392_v8 }
 0x68e   :  { %6873 = vmatpush1.bf16.msra.mxu0 %v9387_v10  ;;  %6959 = vmatpush1.bf16.msra.mxu1 %v9390_v11 }
 0x68f   :  { %6874 = vmatprep.subr.bf16.mxu0 %v9395_v12  ;;  %6960 = vmatprep.subr.bf16.mxu1 %v9398_v13 }
 0x692   :  { %6875 = vmatpush1.bf16.msra.mxu0 %v9393_v14  ;;  %6961 = vmatpush1.bf16.msra.mxu1 %v9396_v15  ;;  %v7014_v15 = vrot.slane %v7001_v0, %v10005_v18 }
 0x693   :  { %6876 = vmatprep.subr.bf16.mxu0 %v9401_v16  ;;  %6962 = vmatprep.subr.bf16.mxu1 %v9404_v19 }
 0x696   :  { %6877 = vmatpush1.bf16.msra.mxu0 %v9399_v22  ;;  %6963 = vmatpush1.bf16.msra.mxu1 %v9402_v23 }
 0x697   :  { %6878 = vmatprep.subr.bf16.mxu0 %v9407_v24  ;;  %6964 = vmatprep.subr.bf16.mxu1 %v9410_v25 }
 0x69a   :  { %6879 = vmatpush1.bf16.msra.mxu0 %v9405_v26  ;;  %6965 = vmatpush1.bf16.msra.mxu1 %v9408_v27 }
 0x69b   :  { %6880 = vmatprep.subr.bf16.mxu0 %v9413_v28  ;;  %6966 = vmatprep.subr.bf16.mxu1 %v9416_v29  ;;  %v7018_v29 = vrot.slane %v7001_v0, %v10009_v21  ;;  %v7971_v21 = vld [vmem:[#allocation2] ss:$0 sm:$0xff] }
 0x69e   :  { %6881 = vmatpush1.bf16.msra.mxu0 %v9411_v30  ;;  %6967 = vmatpush1.bf16.msra.mxu1 %v9414_v31 }
 0x69f   :  { %6882 = vmatprep.subr.bf16.mxu0 %v9419_v33  ;;  %6968 = vmatprep.subr.bf16.mxu1 %v9422_v34 }
 0x6a2   :  { %6883 = vmatpush1.bf16.msra.mxu0 %v9417_v9  ;;  %6969 = vmatpush1.bf16.msra.mxu1 %v9420_v35 }
 0x6a3   :  { %6884 = vmatprep.subr.bf16.mxu0 %v9425_v36  ;;  %6970 = vmatprep.subr.bf16.mxu1 %v9428_v37 }
 0x6a6   :  { %6885 = vmatpush1.bf16.msra.mxu0 %v9423_v38  ;;  %6971 = vmatpush1.bf16.msra.mxu1 %v9426_v39 }
 0x6a7   :  { %6886 = vmatprep.subr.bf16.mxu0 %v9431_v40  ;;  %6972 = vmatprep.subr.bf16.mxu1 %v9434_v41 }
 0x6aa   :  { %6887 = vmatpush1.bf16.msra.mxu0 %v9429_v42  ;;  %6973 = vmatpush1.bf16.msra.mxu1 %v9432_v43 }
 0x6ab   :  { %6888 = vmatprep.subr.bf16.mxu0 %v9437_v44  ;;  %6974 = vmatprep.subr.bf16.mxu1 %v9440_v45 }
 0x6ae   :  { %6889 = vmatpush1.bf16.msra.mxu0 %v9435_v46  ;;  %6975 = vmatpush1.bf16.msra.mxu1 %v9438_v47 }
 0x6af   :  { %6890 = vmatprep.subr.bf16.mxu0 %v9443_v48  ;;  %6976 = vmatprep.subr.bf16.mxu1 %v9446_v49 }
 0x6b2   :  { %6891 = vmatpush1.bf16.msra.mxu0 %v9441_v50  ;;  %6977 = vmatpush1.bf16.msra.mxu1 %v9444_v52 }
 0x6b3   :  { %6892 = vmatprep.subr.bf16.mxu0 %v9449_v53  ;;  %6978 = vmatprep.subr.bf16.mxu1 %v9452_v32 }
 0x6b6   :  { %6893 = vmatpush1.bf16.msra.mxu0 %v9447_v54  ;;  %6979 = vmatpush1.bf16.msra.mxu1 %v9450_v56 }
 0x6b7   :  { %6894 = vmatprep.subr.bf16.mxu0 %v9455_v57  ;;  %6980 = vmatprep.subr.bf16.mxu1 %v9458_v58 }
 0x6ba   :  { %6895 = vmatpush1.bf16.msra.mxu0 %v9453_v59  ;;  %6981 = vmatpush1.bf16.msra.mxu1 %v9456_v60 }
 0x6bd   :  { %6897 = vmatmul.mubr.bf16.vlgmr.msra.gmra.mrb[16].mxu0 %v10039_v55  ;;  %6983 = vmatmul.mubr.bf16.vlgmr.msra.gmra.mrb[16].mxu1 %v10039_v55  ;;  %v7010_v55 = vrot.slane %v7001_v0, %v10007_v20 }
 0x790   :  { %v6898_v3 = vpop.f32.mrb[16].mxu0  ;;  %v6984_v4 = vpop.f32.mrb[16].mxu1 }
 0x791   :  { %v8004_v5 = vadd.f32 %v6898_v3, %v6164_v62  ;;  %v8008_v7 = vadd.f32 %v6984_v4, %v6172_v63  ;;  %v6900_v51 = vpop.f32.mrb[17].mxu0  ;;  %v6986_v8 = vpop.f32.mrb[17].mxu1 }
 0x792   :  { %v8005_v10 = vadd.f32 %v6900_v51, %v6168_v1  ;;  %v8009_v11 = vadd.f32 %v6986_v8, %v6176_v2  ;;  %v6902_v12 = vpop.f32.mrb[18].mxu0  ;;  %v6988_v13 = vpop.f32.mrb[18].mxu1 }
 0x793   :  { %v6993_v14 = vmax.f32 %v8004_v5, 0.0  ;;  %v8006_v16 = vadd.f32 %v6902_v12, %v6164_v62  ;;  %v8010_v19 = vadd.f32 %v6988_v13, %v6172_v63  ;;  %v6904_v22 = vpop.f32.mrb[19].mxu0  ;;  %v6990_v23 = vpop.f32.mrb[19].mxu1  ;;  %v6995_v24 = vmax.f32 %v8008_v7, 0.0 }
 0x794   :  { %v6994_v25 = vmax.f32 %v8005_v10, 0.0  ;;  %v8007_v26 = vadd.f32 %v6904_v22, %v6168_v1  ;;  %v8011_v17 = vadd.f32 %v6990_v23, %v6176_v2  ;;  %v6996_v20 = vmax.f32 %v8009_v11, 0.0 }
 0x795   :  { %v7023_v27 = vmul.f32 %v7006_v6, %v6993_v14  ;;  %v6997_v28 = vmax.f32 %v8006_v16, 0.0  ;;  %v6999_v31 = vmax.f32 %v8010_v19, 0.0  ;;  %v7025_v9 = vmul.f32 %v7014_v15, %v6995_v24 }
 0x796   :  { %v7024_v30 = vmul.f32 %v7010_v55, %v6994_v25  ;;  %v6998_v33 = vmax.f32 %v8007_v26, 0.0  ;;  %v7000_v18 = vmax.f32 %v8011_v17, 0.0  ;;  %v7026_v39 = vmul.f32 %v7018_v29, %v6996_v20 }
 0x797   :  { %v7027_v34 = vmul.f32 %v7006_v6, %v6997_v28  ;;  %v7029_v37 = vmul.f32 %v7014_v15, %v6999_v31 }
 0x798   :  { %v7028_v35 = vmul.f32 %v7010_v55, %v6998_v33  ;;  %v7031_v36 = vadd.f32 %v7024_v30, %v7023_v27  ;;  %v7030_v41 = vmul.f32 %v7018_v29, %v7000_v18 }
 0x79a   :  { %v7036_v38 = vadd.f32 %v7028_v35, %v7027_v34  ;;  %v7032_v40 = vadd.f32 %v7031_v36, %v7025_v9 }
 0x79c   :  { %v7033_v42 = vadd.f32 %v7032_v40, %v7026_v39  ;;  %v7037_v43 = vadd.f32 %v7036_v38, %v7029_v37 }
 0x79e   :  { %7034 = vadd.xlane.f32.xlu0 %v7033_v42  ;;  %v7038_v44 = vadd.f32 %v7037_v43, %v7030_v41 }
 0x7a2   :  { %7039 = vadd.xlane.f32.xlu0 %v7038_v44 }
 0x82b   :  { %v7035_v45 = vpop.xlane.xlu0 %7034 }
 0x82c   :  { %v7048_v46 = vadd.f32 %v7971_v21, %v7035_v45 }
 0x82e   :  { %7051 = vst.msk [vmem:[%s10070_s13] sm:$0xff] %vm7050_vm0, %v7048_v46 }
 0x82f   :  { %v7040_v47 = vpop.xlane.xlu0 %7039 }
 0x830   :  { %v7049_v48 = vadd.f32 %v7971_v21, %v7040_v47 }
 0x832   :  { %7052 = vst.msk [vmem:[%s10070_s13 + $0x8] sm:$0xff] %vm7050_vm0, %v7049_v48 }
 0x833   :  { %7057 = vsyncpa [#allocation4], 1 }
 0x834   :  { %7058 = vsyncpa [#allocation6], 1 }
 0x835   :  { %7059 = vsyncpa [#allocation9], 1 }
 0x836   :  { %7060 = vsyncpa [#allocation12], 1 }
 0x837   :  { %7061 = vsyncpa [#allocation15], 1 }
 0x838   :  { %7062 = vsyncpa [#allocation18], 1 }

</bundles_post_ra>
